<compile_context>
chip_gen: v7x
topology: tpu7x:2x2x1
jax: 0.10.0
libtpu: 0.0.40
codegen_flags: <defaults>
</compile_context>

<pallas_src>
import jax
import jax.numpy as jnp
from jax.experimental import pallas as pl
from jax.experimental.pallas import tpu as pltpu


def _silu(x):
    return x * jax.nn.sigmoid(x)


# ---------------------------------------------------------------------------
# Fused kernel: one batch element per grid step, all layers in VMEM.
# ---------------------------------------------------------------------------
def proto_fused_kernel(x_ref, w1_ref, b1_ref, wt_ref, bt_ref,
                       w2_ref, b2_ref, w3_ref, b3_ref,
                       o_ref,
                       xp_ref, p1_ref, pp_ref, p2_ref):
    # Block shapes:
    #   x_ref : (1, H, W, c1)      NHWC input (f32)
    #   w1_ref: (9*c1, c_)   bf16  im2col cv1 weight (BN scale folded)
    #   b1_ref: (1, c_)      f32   folded BN shift
    #   wt_ref: (c_, 4*c_)   bf16  deconv weight, columns ordered (dy, dx, co)
    #   bt_ref: (1, 4*c_)    f32   deconv bias tiled over the 4 phases
    #   w2_ref: (9*c_, c_)   bf16  im2col cv2 weight (BN scale folded)
    #   b2_ref: (1, c_)      f32
    #   w3_ref: (c_, c2)     bf16  1x1 cv3 weight (BN scale folded)
    #   b3_ref: (1, c2)      f32
    #   o_ref : (1, H, W, 4*c2)    o[0,i,j,(2dy+dx)*c2+c] = out[2i+dy, 2j+dx, c]
    # Scratch (VMEM):
    #   xp_ref: (H+2, W+2, c1)       f32  zero-halo padded input
    #   p1_ref: (H*W, 9*c1)          bf16 im2col patches for cv1
    #   pp_ref: (4, H+2, W+2, c_)    f32  zero-halo padded upsample phases
    #   p2_ref: (4*H*W, 9*c_)        bf16 stacked im2col patches for cv2
    H, W, Cin = x_ref.shape[1], x_ref.shape[2], x_ref.shape[3]
    Cmid = w1_ref.shape[1]
    Cout = w3_ref.shape[1]
    HW = H * W
    bf16 = jnp.bfloat16

    # ---- zero only the 1-px halo borders (interior is fully overwritten) --
    xp_ref[0:1, :, :] = jnp.zeros((1, W + 2, Cin), xp_ref.dtype)
    xp_ref[H + 1:H + 2, :, :] = jnp.zeros((1, W + 2, Cin), xp_ref.dtype)
    xp_ref[:, 0:1, :] = jnp.zeros((H + 2, 1, Cin), xp_ref.dtype)
    xp_ref[:, W + 1:W + 2, :] = jnp.zeros((H + 2, 1, Cin), xp_ref.dtype)
    for ph in range(4):
        pp_ref[ph, 0:1, :, :] = jnp.zeros((1, W + 2, Cmid), pp_ref.dtype)
        pp_ref[ph, H + 1:H + 2, :, :] = jnp.zeros((1, W + 2, Cmid), pp_ref.dtype)
        pp_ref[ph, :, 0:1, :] = jnp.zeros((H + 2, 1, Cmid), pp_ref.dtype)
        pp_ref[ph, :, W + 1:W + 2, :] = jnp.zeros((H + 2, 1, Cmid), pp_ref.dtype)

    # ---- cv1: 3x3 conv (pad 1) + folded BN + SiLU, im2col, bf16 x bf16 ----
    xp_ref[1:H + 1, 1:W + 1, :] = x_ref[0]
    for ky in range(3):
        for kx in range(3):
            t = ky * 3 + kx
            p1_ref[:, t * Cin:(t + 1) * Cin] = (
                xp_ref[ky:ky + H, kx:kx + W, :].reshape(HW, Cin).astype(bf16))
    y1 = jnp.dot(p1_ref[...], w1_ref[...],
                 preferred_element_type=jnp.float32)
    y1 = _silu(y1 + b1_ref[0]).astype(bf16)                     # (HW, Cmid)

    # ---- upsample: ConvTranspose2d(k=2, s=2), one dot per output phase ----
    # Results (+bias) go straight into the padded phase buffers (no up4 temp).
    bt = bt_ref[0]
    for ph in range(4):
        up = jnp.dot(y1, wt_ref[:, ph * Cmid:(ph + 1) * Cmid],
                     preferred_element_type=jnp.float32)
        up = up + bt[ph * Cmid:(ph + 1) * Cmid]
        pp_ref[ph, 1:H + 1, 1:W + 1, :] = up.reshape(H, W, Cmid)

    # ---- cv2 (3x3, pad 1 on 2Hx2W) + cv3 (1x1), all 4 phases stacked ------
    # Sub-pixel convolution: output pixel (2i+dy_o, 2j+dx_o), tap (ky, kx)
    # reads upsample phase ((dy_o+ky-1) mod 2, (dx_o+kx-1) mod 2) at spatial
    # shift floor((dy_o+ky-1)/2), floor((dx_o+kx-1)/2); the zero halo of the
    # phase buffers supplies cv2's zero padding.
    for ph_o in range(4):
        dy_o, dx_o = ph_o // 2, ph_o % 2
        base = ph_o * HW
        for ky in range(3):
            dr = dy_o + ky - 1
            sdy, si = dr % 2, dr // 2
            for kx in range(3):
                dc = dx_o + kx - 1
                sdx, sj = dc % 2, dc // 2
                src = sdy * 2 + sdx
                t = ky * 3 + kx
                p2_ref[base:base + HW, t * Cmid:(t + 1) * Cmid] = (
                    pp_ref[src, 1 + si:1 + si + H, 1 + sj:1 + sj + W, :]
                    .reshape(HW, Cmid).astype(bf16))
    y2 = jnp.dot(p2_ref[...], w2_ref[...],
                 preferred_element_type=jnp.float32)
    y2 = _silu(y2 + b2_ref[0]).astype(bf16)                     # (4*HW, Cmid)
    y3 = jnp.dot(y2, w3_ref[...],
                 preferred_element_type=jnp.float32)
    y3 = _silu(y3 + b3_ref[0])                                  # (4*HW, Cout)

    for ph_o in range(4):
        o_ref[0, :, :, ph_o * Cout:(ph_o + 1) * Cout] = (
            y3[ph_o * HW:(ph_o + 1) * HW].reshape(H, W, Cout)
            .astype(o_ref.dtype))


def proto_forward(x_nchw, kp):
    """NCHW in, NCHW out, matching the PyTorch Proto module (inference BN)."""
    N, c1, H, W = x_nchw.shape
    c_ = kp["w1k"].shape[1]
    c2 = kp["w3k"].shape[1]
    x = jnp.transpose(x_nchw, (0, 2, 3, 1))                    # NCHW -> NHWC

    out4 = pl.pallas_call(
        proto_fused_kernel,
        out_shape=jax.ShapeDtypeStruct((N, H, W, 4 * c2), jnp.float32),
        grid=(N,),
        in_specs=[
            pl.BlockSpec((1, H, W, c1), lambda n: (n, 0, 0, 0)),
            pl.BlockSpec((9 * c1, c_), lambda n: (0, 0)),
            pl.BlockSpec((1, c_), lambda n: (0, 0)),
            pl.BlockSpec((c_, 4 * c_), lambda n: (0, 0)),
            pl.BlockSpec((1, 4 * c_), lambda n: (0, 0)),
            pl.BlockSpec((9 * c_, c_), lambda n: (0, 0)),
            pl.BlockSpec((1, c_), lambda n: (0, 0)),
            pl.BlockSpec((c_, c2), lambda n: (0, 0)),
            pl.BlockSpec((1, c2), lambda n: (0, 0)),
        ],
        out_specs=pl.BlockSpec((1, H, W, 4 * c2), lambda n: (n, 0, 0, 0)),
        scratch_shapes=[
            pltpu.VMEM((H + 2, W + 2, c1), jnp.float32),
            pltpu.VMEM((H * W, 9 * c1), jnp.bfloat16),
            pltpu.VMEM((4, H + 2, W + 2, c_), jnp.float32),
            pltpu.VMEM((4 * H * W, 9 * c_), jnp.bfloat16),
        ],
        compiler_params=pltpu.CompilerParams(
            dimension_semantics=("parallel",),
            vmem_limit_bytes=64 * 1024 * 1024),
    )(x, kp["w1k"], kp["b1k"], kp["wtk"], kp["btk"],
      kp["w2k"], kp["b2k"], kp["w3k"], kp["b3k"])

    # (n, i, j, dy, dx, c) -> (n, c, 2i+dy, 2j+dx): the single (mandatory)
    # channels-last -> NCHW transpose also performs the phase interleave.
    out6 = out4.reshape(N, H, W, 2, 2, c2)
    return out6.transpose(0, 5, 1, 3, 2, 4).reshape(N, c2, 2 * H, 2 * W)


# ---------------------------------------------------------------------------
# Parameters: synthetic PyTorch-shaped weights -> HWIO with BN folded (f32)
# ---------------------------------------------------------------------------
def make_params(key, c1, c_, c2):
    ks = jax.random.split(key, 17)

    def bn_fold(kg, kb, km, kv, c, eps=1e-5):
        gamma = 0.5 + jax.random.uniform(kg, (c,), jnp.float32)
        beta = 0.1 * jax.random.normal(kb, (c,), jnp.float32)
        mean = 0.1 * jax.random.normal(km, (c,), jnp.float32)
        var = 0.5 + jax.random.uniform(kv, (c,), jnp.float32)
        scale = gamma / jnp.sqrt(var + eps)
        shift = beta - mean * scale
        return scale.reshape(1, c), shift.reshape(1, c)

    w1 = 0.1 * jax.random.normal(ks[0], (c_, c1, 3, 3), jnp.float32)   # OIHW
    s1, b1 = bn_fold(ks[1], ks[2], ks[3], ks[4], c_)
    wt = 0.1 * jax.random.normal(ks[5], (c_, c_, 2, 2), jnp.float32)   # (Ci,Co,kH,kW)
    bt = 0.05 * jax.random.normal(ks[6], (c_,), jnp.float32)
    w2 = 0.1 * jax.random.normal(ks[7], (c_, c_, 3, 3), jnp.float32)
    s2, b2 = bn_fold(ks[8], ks[9], ks[10], ks[11], c_)
    w3 = 0.1 * jax.random.normal(ks[12], (c2, c_, 1, 1), jnp.float32)
    s3, b3 = bn_fold(ks[13], ks[14], ks[15], ks[16], c2)

    return dict(
        w1f=jnp.transpose(w1, (2, 3, 1, 0)) * s1[0], b1=b1,            # (3,3,c1,c_)
        wtf=jnp.transpose(wt, (2, 3, 0, 1)), bt=bt.reshape(1, c_),     # (2,2,ci,co)
        w2f=jnp.transpose(w2, (2, 3, 1, 0)) * s2[0], b2=b2,            # (3,3,c_,c_)
        w3f=jnp.transpose(w3.reshape(c2, c_), (1, 0)) * s3[0], b3=b3,  # (c_,c2)
    )


def prep_kernel_params(p):
    """Reshape folded weights to the kernel's im2col layouts and cast to bf16."""
    bf16 = jnp.bfloat16
    c1, c_ = p["w1f"].shape[2], p["w1f"].shape[3]
    return dict(
        w1k=p["w1f"].reshape(9 * c1, c_).astype(bf16),
        b1k=p["b1"],
        wtk=jnp.transpose(p["wtf"], (2, 0, 1, 3)).reshape(c_, 4 * c_).astype(bf16),
        btk=jnp.tile(p["bt"], (1, 4)),
        w2k=p["w2f"].reshape(9 * c_, c_).astype(bf16),
        b2k=p["b2"],
        w3k=p["w3f"].astype(bf16),
        b3k=p["b3"],
    )


# ---------------------------------------------------------------------------
# Pure-JAX reference mirroring the kernel's precision choices:
# bf16 conv/matmul operands, f32 accumulation, f32 bias + SiLU.
# ---------------------------------------------------------------------------
def _ref_conv(x, w_hwio, pad):
    return jax.lax.conv_general_dilated(
        x, w_hwio, window_strides=(1, 1),
        padding=[(pad, pad), (pad, pad)],
        dimension_numbers=("NHWC", "HWIO", "NHWC"),
        preferred_element_type=jnp.float32)


def proto_ref(x_nchw, p):
    bf16 = jnp.bfloat16
    x = jnp.transpose(x_nchw, (0, 2, 3, 1))
    y = _silu(_ref_conv(x.astype(bf16), p["w1f"].astype(bf16), 1) + p["b1"])
    N, H, W, _ = y.shape
    up = jnp.einsum("nhwc,ijco->nhiwjo", y.astype(bf16), p["wtf"].astype(bf16),
                    preferred_element_type=jnp.float32)
    up = up.reshape(N, 2 * H, 2 * W, -1) + p["bt"]
    y = _silu(_ref_conv(up.astype(bf16), p["w2f"].astype(bf16), 1) + p["b2"])
    Ci, Co = p["w3f"].shape
    y = _silu(_ref_conv(y.astype(bf16),
                        p["w3f"].astype(bf16).reshape(1, 1, Ci, Co), 0) + p["b3"])
    return jnp.transpose(y, (0, 3, 1, 2))


if __name__ == "__main__":
    key = jax.random.PRNGKey(0)
    kx, kp = jax.random.split(key)

    N, c1, c_, c2 = 2, 8, 32, 8
    H = W = 8                      # keep W a multiple of 8 (sublane-clean reshapes)
    x = jax.random.normal(kx, (N, c1, H, W), jnp.float32)   # NCHW input
    params = make_params(kp, c1, c_, c2)
    kparams = prep_kernel_params(params)

    out = jax.block_until_ready(jax.jit(proto_forward)(x, kparams))
    ref = jax.block_until_ready(proto_ref(x, params))

    assert out.shape == (N, c2, 2 * H, 2 * W), out.shape
    err = float(jnp.max(jnp.abs(out - ref)))
    # bf16 matmul operands: tolerance is bf16-level (reference mirrors the casts).
    assert jnp.allclose(out, ref, atol=2e-2, rtol=2e-2), err
    print("KERNEL_OK")
</pallas_src>

<mosaic_0001>
module attributes {stable_mosaic.version = 11 : i64} {
  func.func @proto_fused_kernel(%arg0: i32, %arg1: memref<1x8x8x8xf32, #tpu.memory_space<vmem>>, %arg2: memref<72x32xbf16, #tpu.memory_space<vmem>>, %arg3: memref<1x32xf32, #tpu.memory_space<vmem>>, %arg4: memref<32x128xbf16, #tpu.memory_space<vmem>>, %arg5: memref<1x128xf32, #tpu.memory_space<vmem>>, %arg6: memref<288x32xbf16, #tpu.memory_space<vmem>>, %arg7: memref<1x32xf32, #tpu.memory_space<vmem>>, %arg8: memref<32x8xbf16, #tpu.memory_space<vmem>>, %arg9: memref<1x8xf32, #tpu.memory_space<vmem>>, %arg10: memref<1x8x8x32xf32, #tpu.memory_space<vmem>>, %arg11: memref<10x10x8xf32, #tpu.memory_space<vmem>>, %arg12: memref<64x72xbf16, #tpu.memory_space<vmem>>, %arg13: memref<4x10x10x32xf32, #tpu.memory_space<vmem>>, %arg14: memref<256x288xbf16, #tpu.memory_space<vmem>>) attributes {dimension_semantics = [#tpu.dimension_semantics<parallel>], iteration_bounds = array<i64: 2>, scalar_prefetch = 0 : i64, scratch_operands = 4 : i64, tpu.core_type = #tpu.core_type<tc>, window_params = [{transform_indices = @transform_0, window_bounds = array<i64: 1, 8, 8, 8>}, {pipeline_mode = #tpu.pipeline_mode<synchronous>, transform_indices = @transform_1, window_bounds = array<i64: 72, 32>}, {pipeline_mode = #tpu.pipeline_mode<synchronous>, transform_indices = @transform_2, window_bounds = array<i64: 1, 32>}, {pipeline_mode = #tpu.pipeline_mode<synchronous>, transform_indices = @transform_3, window_bounds = array<i64: 32, 128>}, {pipeline_mode = #tpu.pipeline_mode<synchronous>, transform_indices = @transform_4, window_bounds = array<i64: 1, 128>}, {pipeline_mode = #tpu.pipeline_mode<synchronous>, transform_indices = @transform_5, window_bounds = array<i64: 288, 32>}, {pipeline_mode = #tpu.pipeline_mode<synchronous>, transform_indices = @transform_6, window_bounds = array<i64: 1, 32>}, {pipeline_mode = #tpu.pipeline_mode<synchronous>, transform_indices = @transform_7, window_bounds = array<i64: 32, 8>}, {pipeline_mode = #tpu.pipeline_mode<synchronous>, transform_indices = @transform_8, window_bounds = array<i64: 1, 8>}, {transform_indices = @transform_9, window_bounds = array<i64: 1, 8, 8, 32>}]} {
    %cst = arith.constant 0.000000e+00 : f32
    %0 = vector.broadcast %cst : f32 to vector<1x10x8xf32>
    %c0 = arith.constant 0 : index
    %c0_0 = arith.constant 0 : index
    %c0_1 = arith.constant 0 : index
    %1 = vector.load %arg11[%c0, %c0_0, %c0_1] : memref<10x10x8xf32, #tpu.memory_space<vmem>>, vector<1x10x8xf32>
    tpu.vector_store %arg11[%c0, %c0_0, %c0_1], %0 {strides = array<i32>} : memref<10x10x8xf32, #tpu.memory_space<vmem>>, vector<1x10x8xf32>,
    %cst_2 = arith.constant 0.000000e+00 : f32
    %2 = vector.broadcast %cst_2 : f32 to vector<1x10x8xf32>
    %c9 = arith.constant 9 : index
    %c0_3 = arith.constant 0 : index
    %c0_4 = arith.constant 0 : index
    %3 = vector.load %arg11[%c9, %c0_3, %c0_4] : memref<10x10x8xf32, #tpu.memory_space<vmem>>, vector<1x10x8xf32>
    tpu.vector_store %arg11[%c9, %c0_3, %c0_4], %2 {strides = array<i32>} : memref<10x10x8xf32, #tpu.memory_space<vmem>>, vector<1x10x8xf32>,
    %cst_5 = arith.constant 0.000000e+00 : f32
    %4 = vector.broadcast %cst_5 : f32 to vector<10x1x8xf32>
    %c0_6 = arith.constant 0 : index
    %c0_7 = arith.constant 0 : index
    %c0_8 = arith.constant 0 : index
    %5 = vector.load %arg11[%c0_6, %c0_7, %c0_8] : memref<10x10x8xf32, #tpu.memory_space<vmem>>, vector<10x1x8xf32>
    tpu.vector_store %arg11[%c0_6, %c0_7, %c0_8], %4 {strides = array<i32>} : memref<10x10x8xf32, #tpu.memory_space<vmem>>, vector<10x1x8xf32>,
    %cst_9 = arith.constant 0.000000e+00 : f32
    %6 = vector.broadcast %cst_9 : f32 to vector<10x1x8xf32>
    %c0_10 = arith.constant 0 : index
    %c9_11 = arith.constant 9 : index
    %c0_12 = arith.constant 0 : index
    %7 = vector.load %arg11[%c0_10, %c9_11, %c0_12] : memref<10x10x8xf32, #tpu.memory_space<vmem>>, vector<10x1x8xf32>
    tpu.vector_store %arg11[%c0_10, %c9_11, %c0_12], %6 {strides = array<i32>} : memref<10x10x8xf32, #tpu.memory_space<vmem>>, vector<10x1x8xf32>,
    %cst_13 = arith.constant 0.000000e+00 : f32
    %8 = vector.broadcast %cst_13 : f32 to vector<1x10x32xf32>
    %c0_14 = arith.constant 0 : index
    %c0_15 = arith.constant 0 : index
    %c0_16 = arith.constant 0 : index
    %c0_17 = arith.constant 0 : index
    %9 = vector.load %arg13[%c0_14, %c0_15, %c0_16, %c0_17] : memref<4x10x10x32xf32, #tpu.memory_space<vmem>>, vector<1x1x10x32xf32>
    %10 = vector.shape_cast %9 : vector<1x1x10x32xf32> to vector<1x10x32xf32>
    %11 = vector.shape_cast %8 : vector<1x10x32xf32> to vector<1x1x10x32xf32>
    tpu.vector_store %arg13[%c0_14, %c0_15, %c0_16, %c0_17], %11 {strides = array<i32>} : memref<4x10x10x32xf32, #tpu.memory_space<vmem>>, vector<1x1x10x32xf32>,
    %cst_18 = arith.constant 0.000000e+00 : f32
    %12 = vector.broadcast %cst_18 : f32 to vector<1x10x32xf32>
    %c0_19 = arith.constant 0 : index
    %c9_20 = arith.constant 9 : index
    %c0_21 = arith.constant 0 : index
    %c0_22 = arith.constant 0 : index
    %13 = vector.load %arg13[%c0_19, %c9_20, %c0_21, %c0_22] : memref<4x10x10x32xf32, #tpu.memory_space<vmem>>, vector<1x1x10x32xf32>
    %14 = vector.shape_cast %13 : vector<1x1x10x32xf32> to vector<1x10x32xf32>
    %15 = vector.shape_cast %12 : vector<1x10x32xf32> to vector<1x1x10x32xf32>
    tpu.vector_store %arg13[%c0_19, %c9_20, %c0_21, %c0_22], %15 {strides = array<i32>} : memref<4x10x10x32xf32, #tpu.memory_space<vmem>>, vector<1x1x10x32xf32>,
    %cst_23 = arith.constant 0.000000e+00 : f32
    %16 = vector.broadcast %cst_23 : f32 to vector<10x1x32xf32>
    %c0_24 = arith.constant 0 : index
    %c0_25 = arith.constant 0 : index
    %c0_26 = arith.constant 0 : index
    %c0_27 = arith.constant 0 : index
    %17 = vector.load %arg13[%c0_24, %c0_25, %c0_26, %c0_27] : memref<4x10x10x32xf32, #tpu.memory_space<vmem>>, vector<1x10x1x32xf32>
    %18 = vector.shape_cast %17 : vector<1x10x1x32xf32> to vector<10x1x32xf32>
    %19 = vector.shape_cast %16 : vector<10x1x32xf32> to vector<1x10x1x32xf32>
    tpu.vector_store %arg13[%c0_24, %c0_25, %c0_26, %c0_27], %19 {strides = array<i32>} : memref<4x10x10x32xf32, #tpu.memory_space<vmem>>, vector<1x10x1x32xf32>,
    %cst_28 = arith.constant 0.000000e+00 : f32
    %20 = vector.broadcast %cst_28 : f32 to vector<10x1x32xf32>
    %c0_29 = arith.constant 0 : index
    %c0_30 = arith.constant 0 : index
    %c9_31 = arith.constant 9 : index
    %c0_32 = arith.constant 0 : index
    %21 = vector.load %arg13[%c0_29, %c0_30, %c9_31, %c0_32] : memref<4x10x10x32xf32, #tpu.memory_space<vmem>>, vector<1x10x1x32xf32>
    %22 = vector.shape_cast %21 : vector<1x10x1x32xf32> to vector<10x1x32xf32>
    %23 = vector.shape_cast %20 : vector<10x1x32xf32> to vector<1x10x1x32xf32>
    tpu.vector_store %arg13[%c0_29, %c0_30, %c9_31, %c0_32], %23 {strides = array<i32>} : memref<4x10x10x32xf32, #tpu.memory_space<vmem>>, vector<1x10x1x32xf32>,
    %cst_33 = arith.constant 0.000000e+00 : f32
    %24 = vector.broadcast %cst_33 : f32 to vector<1x10x32xf32>
    %c1 = arith.constant 1 : index
    %c0_34 = arith.constant 0 : index
    %c0_35 = arith.constant 0 : index
    %c0_36 = arith.constant 0 : index
    %25 = vector.load %arg13[%c1, %c0_34, %c0_35, %c0_36] : memref<4x10x10x32xf32, #tpu.memory_space<vmem>>, vector<1x1x10x32xf32>
    %26 = vector.shape_cast %25 : vector<1x1x10x32xf32> to vector<1x10x32xf32>
    %27 = vector.shape_cast %24 : vector<1x10x32xf32> to vector<1x1x10x32xf32>
    tpu.vector_store %arg13[%c1, %c0_34, %c0_35, %c0_36], %27 {strides = array<i32>} : memref<4x10x10x32xf32, #tpu.memory_space<vmem>>, vector<1x1x10x32xf32>,
    %cst_37 = arith.constant 0.000000e+00 : f32
    %28 = vector.broadcast %cst_37 : f32 to vector<1x10x32xf32>
    %c1_38 = arith.constant 1 : index
    %c9_39 = arith.constant 9 : index
    %c0_40 = arith.constant 0 : index
    %c0_41 = arith.constant 0 : index
    %29 = vector.load %arg13[%c1_38, %c9_39, %c0_40, %c0_41] : memref<4x10x10x32xf32, #tpu.memory_space<vmem>>, vector<1x1x10x32xf32>
    %30 = vector.shape_cast %29 : vector<1x1x10x32xf32> to vector<1x10x32xf32>
    %31 = vector.shape_cast %28 : vector<1x10x32xf32> to vector<1x1x10x32xf32>
    tpu.vector_store %arg13[%c1_38, %c9_39, %c0_40, %c0_41], %31 {strides = array<i32>} : memref<4x10x10x32xf32, #tpu.memory_space<vmem>>, vector<1x1x10x32xf32>,
    %cst_42 = arith.constant 0.000000e+00 : f32
    %32 = vector.broadcast %cst_42 : f32 to vector<10x1x32xf32>
    %c1_43 = arith.constant 1 : index
    %c0_44 = arith.constant 0 : index
    %c0_45 = arith.constant 0 : index
    %c0_46 = arith.constant 0 : index
    %33 = vector.load %arg13[%c1_43, %c0_44, %c0_45, %c0_46] : memref<4x10x10x32xf32, #tpu.memory_space<vmem>>, vector<1x10x1x32xf32>
    %34 = vector.shape_cast %33 : vector<1x10x1x32xf32> to vector<10x1x32xf32>
    %35 = vector.shape_cast %32 : vector<10x1x32xf32> to vector<1x10x1x32xf32>
    tpu.vector_store %arg13[%c1_43, %c0_44, %c0_45, %c0_46], %35 {strides = array<i32>} : memref<4x10x10x32xf32, #tpu.memory_space<vmem>>, vector<1x10x1x32xf32>,
    %cst_47 = arith.constant 0.000000e+00 : f32
    %36 = vector.broadcast %cst_47 : f32 to vector<10x1x32xf32>
    %c1_48 = arith.constant 1 : index
    %c0_49 = arith.constant 0 : index
    %c9_50 = arith.constant 9 : index
    %c0_51 = arith.constant 0 : index
    %37 = vector.load %arg13[%c1_48, %c0_49, %c9_50, %c0_51] : memref<4x10x10x32xf32, #tpu.memory_space<vmem>>, vector<1x10x1x32xf32>
    %38 = vector.shape_cast %37 : vector<1x10x1x32xf32> to vector<10x1x32xf32>
    %39 = vector.shape_cast %36 : vector<10x1x32xf32> to vector<1x10x1x32xf32>
    tpu.vector_store %arg13[%c1_48, %c0_49, %c9_50, %c0_51], %39 {strides = array<i32>} : memref<4x10x10x32xf32, #tpu.memory_space<vmem>>, vector<1x10x1x32xf32>,
    %cst_52 = arith.constant 0.000000e+00 : f32
    %40 = vector.broadcast %cst_52 : f32 to vector<1x10x32xf32>
    %c2 = arith.constant 2 : index
    %c0_53 = arith.constant 0 : index
    %c0_54 = arith.constant 0 : index
    %c0_55 = arith.constant 0 : index
    %41 = vector.load %arg13[%c2, %c0_53, %c0_54, %c0_55] : memref<4x10x10x32xf32, #tpu.memory_space<vmem>>, vector<1x1x10x32xf32>
    %42 = vector.shape_cast %41 : vector<1x1x10x32xf32> to vector<1x10x32xf32>
    %43 = vector.shape_cast %40 : vector<1x10x32xf32> to vector<1x1x10x32xf32>
    tpu.vector_store %arg13[%c2, %c0_53, %c0_54, %c0_55], %43 {strides = array<i32>} : memref<4x10x10x32xf32, #tpu.memory_space<vmem>>, vector<1x1x10x32xf32>,
    %cst_56 = arith.constant 0.000000e+00 : f32
    %44 = vector.broadcast %cst_56 : f32 to vector<1x10x32xf32>
    %c2_57 = arith.constant 2 : index
    %c9_58 = arith.constant 9 : index
    %c0_59 = arith.constant 0 : index
    %c0_60 = arith.constant 0 : index
    %45 = vector.load %arg13[%c2_57, %c9_58, %c0_59, %c0_60] : memref<4x10x10x32xf32, #tpu.memory_space<vmem>>, vector<1x1x10x32xf32>
    %46 = vector.shape_cast %45 : vector<1x1x10x32xf32> to vector<1x10x32xf32>
    %47 = vector.shape_cast %44 : vector<1x10x32xf32> to vector<1x1x10x32xf32>
    tpu.vector_store %arg13[%c2_57, %c9_58, %c0_59, %c0_60], %47 {strides = array<i32>} : memref<4x10x10x32xf32, #tpu.memory_space<vmem>>, vector<1x1x10x32xf32>,
    %cst_61 = arith.constant 0.000000e+00 : f32
    %48 = vector.broadcast %cst_61 : f32 to vector<10x1x32xf32>
    %c2_62 = arith.constant 2 : index
    %c0_63 = arith.constant 0 : index
    %c0_64 = arith.constant 0 : index
    %c0_65 = arith.constant 0 : index
    %49 = vector.load %arg13[%c2_62, %c0_63, %c0_64, %c0_65] : memref<4x10x10x32xf32, #tpu.memory_space<vmem>>, vector<1x10x1x32xf32>
    %50 = vector.shape_cast %49 : vector<1x10x1x32xf32> to vector<10x1x32xf32>
    %51 = vector.shape_cast %48 : vector<10x1x32xf32> to vector<1x10x1x32xf32>
    tpu.vector_store %arg13[%c2_62, %c0_63, %c0_64, %c0_65], %51 {strides = array<i32>} : memref<4x10x10x32xf32, #tpu.memory_space<vmem>>, vector<1x10x1x32xf32>,
    %cst_66 = arith.constant 0.000000e+00 : f32
    %52 = vector.broadcast %cst_66 : f32 to vector<10x1x32xf32>
    %c2_67 = arith.constant 2 : index
    %c0_68 = arith.constant 0 : index
    %c9_69 = arith.constant 9 : index
    %c0_70 = arith.constant 0 : index
    %53 = vector.load %arg13[%c2_67, %c0_68, %c9_69, %c0_70] : memref<4x10x10x32xf32, #tpu.memory_space<vmem>>, vector<1x10x1x32xf32>
    %54 = vector.shape_cast %53 : vector<1x10x1x32xf32> to vector<10x1x32xf32>
    %55 = vector.shape_cast %52 : vector<10x1x32xf32> to vector<1x10x1x32xf32>
    tpu.vector_store %arg13[%c2_67, %c0_68, %c9_69, %c0_70], %55 {strides = array<i32>} : memref<4x10x10x32xf32, #tpu.memory_space<vmem>>, vector<1x10x1x32xf32>,
    %cst_71 = arith.constant 0.000000e+00 : f32
    %56 = vector.broadcast %cst_71 : f32 to vector<1x10x32xf32>
    %c3 = arith.constant 3 : index
    %c0_72 = arith.constant 0 : index
    %c0_73 = arith.constant 0 : index
    %c0_74 = arith.constant 0 : index
    %57 = vector.load %arg13[%c3, %c0_72, %c0_73, %c0_74] : memref<4x10x10x32xf32, #tpu.memory_space<vmem>>, vector<1x1x10x32xf32>
    %58 = vector.shape_cast %57 : vector<1x1x10x32xf32> to vector<1x10x32xf32>
    %59 = vector.shape_cast %56 : vector<1x10x32xf32> to vector<1x1x10x32xf32>
    tpu.vector_store %arg13[%c3, %c0_72, %c0_73, %c0_74], %59 {strides = array<i32>} : memref<4x10x10x32xf32, #tpu.memory_space<vmem>>, vector<1x1x10x32xf32>,
    %cst_75 = arith.constant 0.000000e+00 : f32
    %60 = vector.broadcast %cst_75 : f32 to vector<1x10x32xf32>
    %c3_76 = arith.constant 3 : index
    %c9_77 = arith.constant 9 : index
    %c0_78 = arith.constant 0 : index
    %c0_79 = arith.constant 0 : index
    %61 = vector.load %arg13[%c3_76, %c9_77, %c0_78, %c0_79] : memref<4x10x10x32xf32, #tpu.memory_space<vmem>>, vector<1x1x10x32xf32>
    %62 = vector.shape_cast %61 : vector<1x1x10x32xf32> to vector<1x10x32xf32>
    %63 = vector.shape_cast %60 : vector<1x10x32xf32> to vector<1x1x10x32xf32>
    tpu.vector_store %arg13[%c3_76, %c9_77, %c0_78, %c0_79], %63 {strides = array<i32>} : memref<4x10x10x32xf32, #tpu.memory_space<vmem>>, vector<1x1x10x32xf32>,
    %cst_80 = arith.constant 0.000000e+00 : f32
    %64 = vector.broadcast %cst_80 : f32 to vector<10x1x32xf32>
    %c3_81 = arith.constant 3 : index
    %c0_82 = arith.constant 0 : index
    %c0_83 = arith.constant 0 : index
    %c0_84 = arith.constant 0 : index
    %65 = vector.load %arg13[%c3_81, %c0_82, %c0_83, %c0_84] : memref<4x10x10x32xf32, #tpu.memory_space<vmem>>, vector<1x10x1x32xf32>
    %66 = vector.shape_cast %65 : vector<1x10x1x32xf32> to vector<10x1x32xf32>
    %67 = vector.shape_cast %64 : vector<10x1x32xf32> to vector<1x10x1x32xf32>
    tpu.vector_store %arg13[%c3_81, %c0_82, %c0_83, %c0_84], %67 {strides = array<i32>} : memref<4x10x10x32xf32, #tpu.memory_space<vmem>>, vector<1x10x1x32xf32>,
    %cst_85 = arith.constant 0.000000e+00 : f32
    %68 = vector.broadcast %cst_85 : f32 to vector<10x1x32xf32>
    %c3_86 = arith.constant 3 : index
    %c0_87 = arith.constant 0 : index
    %c9_88 = arith.constant 9 : index
    %c0_89 = arith.constant 0 : index
    %69 = vector.load %arg13[%c3_86, %c0_87, %c9_88, %c0_89] : memref<4x10x10x32xf32, #tpu.memory_space<vmem>>, vector<1x10x1x32xf32>
    %70 = vector.shape_cast %69 : vector<1x10x1x32xf32> to vector<10x1x32xf32>
    %71 = vector.shape_cast %68 : vector<10x1x32xf32> to vector<1x10x1x32xf32>
    tpu.vector_store %arg13[%c3_86, %c0_87, %c9_88, %c0_89], %71 {strides = array<i32>} : memref<4x10x10x32xf32, #tpu.memory_space<vmem>>, vector<1x10x1x32xf32>,
    %c0_90 = arith.constant 0 : index
    %c0_91 = arith.constant 0 : index
    %c0_92 = arith.constant 0 : index
    %c0_93 = arith.constant 0 : index
    %72 = vector.load %arg1[%c0_90, %c0_91, %c0_92, %c0_93] : memref<1x8x8x8xf32, #tpu.memory_space<vmem>>, vector<1x8x8x8xf32>
    %73 = vector.shape_cast %72 : vector<1x8x8x8xf32> to vector<8x8x8xf32>
    %c1_94 = arith.constant 1 : index
    %c1_95 = arith.constant 1 : index
    %c0_96 = arith.constant 0 : index
    %74 = vector.load %arg11[%c1_94, %c1_95, %c0_96] : memref<10x10x8xf32, #tpu.memory_space<vmem>>, vector<8x8x8xf32>
    tpu.vector_store %arg11[%c1_94, %c1_95, %c0_96], %73 {strides = array<i32>} : memref<10x10x8xf32, #tpu.memory_space<vmem>>, vector<8x8x8xf32>,
    %c0_97 = arith.constant 0 : index
    %c0_98 = arith.constant 0 : index
    %c0_99 = arith.constant 0 : index
    %75 = vector.load %arg11[%c0_97, %c0_98, %c0_99] : memref<10x10x8xf32, #tpu.memory_space<vmem>>, vector<8x8x8xf32>
    %76 = vector.shape_cast %75 : vector<8x8x8xf32> to vector<64x8xf32>
    %77 = arith.truncf %76 : vector<64x8xf32> to vector<64x8xbf16>
    %c0_100 = arith.constant 0 : index
    %c0_101 = arith.constant 0 : index
    %78 = vector.load %arg12[%c0_100, %c0_101] : memref<64x72xbf16, #tpu.memory_space<vmem>>, vector<64x8xbf16>
    tpu.vector_store %arg12[%c0_100, %c0_101], %77 {strides = array<i32>} : memref<64x72xbf16, #tpu.memory_space<vmem>>, vector<64x8xbf16>,
    %c0_102 = arith.constant 0 : index
    %c1_103 = arith.constant 1 : index
    %c0_104 = arith.constant 0 : index
    %79 = vector.load %arg11[%c0_102, %c1_103, %c0_104] : memref<10x10x8xf32, #tpu.memory_space<vmem>>, vector<8x8x8xf32>
    %80 = vector.shape_cast %79 : vector<8x8x8xf32> to vector<64x8xf32>
    %81 = arith.truncf %80 : vector<64x8xf32> to vector<64x8xbf16>
    %c0_105 = arith.constant 0 : index
    %c8 = arith.constant 8 : index
    %82 = vector.load %arg12[%c0_105, %c8] : memref<64x72xbf16, #tpu.memory_space<vmem>>, vector<64x8xbf16>
    tpu.vector_store %arg12[%c0_105, %c8], %81 {strides = array<i32>} : memref<64x72xbf16, #tpu.memory_space<vmem>>, vector<64x8xbf16>,
    %c0_106 = arith.constant 0 : index
    %c2_107 = arith.constant 2 : index
    %c0_108 = arith.constant 0 : index
    %83 = vector.load %arg11[%c0_106, %c2_107, %c0_108] : memref<10x10x8xf32, #tpu.memory_space<vmem>>, vector<8x8x8xf32>
    %84 = vector.shape_cast %83 : vector<8x8x8xf32> to vector<64x8xf32>
    %85 = arith.truncf %84 : vector<64x8xf32> to vector<64x8xbf16>
    %c0_109 = arith.constant 0 : index
    %c16 = arith.constant 16 : index
    %86 = vector.load %arg12[%c0_109, %c16] : memref<64x72xbf16, #tpu.memory_space<vmem>>, vector<64x8xbf16>
    tpu.vector_store %arg12[%c0_109, %c16], %85 {strides = array<i32>} : memref<64x72xbf16, #tpu.memory_space<vmem>>, vector<64x8xbf16>,
    %c1_110 = arith.constant 1 : index
    %c0_111 = arith.constant 0 : index
    %c0_112 = arith.constant 0 : index
    %87 = vector.load %arg11[%c1_110, %c0_111, %c0_112] : memref<10x10x8xf32, #tpu.memory_space<vmem>>, vector<8x8x8xf32>
    %88 = vector.shape_cast %87 : vector<8x8x8xf32> to vector<64x8xf32>
    %89 = arith.truncf %88 : vector<64x8xf32> to vector<64x8xbf16>
    %c0_113 = arith.constant 0 : index
    %c24 = arith.constant 24 : index
    %90 = vector.load %arg12[%c0_113, %c24] : memref<64x72xbf16, #tpu.memory_space<vmem>>, vector<64x8xbf16>
    tpu.vector_store %arg12[%c0_113, %c24], %89 {strides = array<i32>} : memref<64x72xbf16, #tpu.memory_space<vmem>>, vector<64x8xbf16>,
    %c1_114 = arith.constant 1 : index
    %c1_115 = arith.constant 1 : index
    %c0_116 = arith.constant 0 : index
    %91 = vector.load %arg11[%c1_114, %c1_115, %c0_116] : memref<10x10x8xf32, #tpu.memory_space<vmem>>, vector<8x8x8xf32>
    %92 = vector.shape_cast %91 : vector<8x8x8xf32> to vector<64x8xf32>
    %93 = arith.truncf %92 : vector<64x8xf32> to vector<64x8xbf16>
    %c0_117 = arith.constant 0 : index
    %c32 = arith.constant 32 : index
    %94 = vector.load %arg12[%c0_117, %c32] : memref<64x72xbf16, #tpu.memory_space<vmem>>, vector<64x8xbf16>
    tpu.vector_store %arg12[%c0_117, %c32], %93 {strides = array<i32>} : memref<64x72xbf16, #tpu.memory_space<vmem>>, vector<64x8xbf16>,
    %c1_118 = arith.constant 1 : index
    %c2_119 = arith.constant 2 : index
    %c0_120 = arith.constant 0 : index
    %95 = vector.load %arg11[%c1_118, %c2_119, %c0_120] : memref<10x10x8xf32, #tpu.memory_space<vmem>>, vector<8x8x8xf32>
    %96 = vector.shape_cast %95 : vector<8x8x8xf32> to vector<64x8xf32>
    %97 = arith.truncf %96 : vector<64x8xf32> to vector<64x8xbf16>
    %c0_121 = arith.constant 0 : index
    %c40 = arith.constant 40 : index
    %98 = vector.load %arg12[%c0_121, %c40] : memref<64x72xbf16, #tpu.memory_space<vmem>>, vector<64x8xbf16>
    tpu.vector_store %arg12[%c0_121, %c40], %97 {strides = array<i32>} : memref<64x72xbf16, #tpu.memory_space<vmem>>, vector<64x8xbf16>,
    %c2_122 = arith.constant 2 : index
    %c0_123 = arith.constant 0 : index
    %c0_124 = arith.constant 0 : index
    %99 = vector.load %arg11[%c2_122, %c0_123, %c0_124] : memref<10x10x8xf32, #tpu.memory_space<vmem>>, vector<8x8x8xf32>
    %100 = vector.shape_cast %99 : vector<8x8x8xf32> to vector<64x8xf32>
    %101 = arith.truncf %100 : vector<64x8xf32> to vector<64x8xbf16>
    %c0_125 = arith.constant 0 : index
    %c48 = arith.constant 48 : index
    %102 = vector.load %arg12[%c0_125, %c48] : memref<64x72xbf16, #tpu.memory_space<vmem>>, vector<64x8xbf16>
    tpu.vector_store %arg12[%c0_125, %c48], %101 {strides = array<i32>} : memref<64x72xbf16, #tpu.memory_space<vmem>>, vector<64x8xbf16>,
    %c2_126 = arith.constant 2 : index
    %c1_127 = arith.constant 1 : index
    %c0_128 = arith.constant 0 : index
    %103 = vector.load %arg11[%c2_126, %c1_127, %c0_128] : memref<10x10x8xf32, #tpu.memory_space<vmem>>, vector<8x8x8xf32>
    %104 = vector.shape_cast %103 : vector<8x8x8xf32> to vector<64x8xf32>
    %105 = arith.truncf %104 : vector<64x8xf32> to vector<64x8xbf16>
    %c0_129 = arith.constant 0 : index
    %c56 = arith.constant 56 : index
    %106 = vector.load %arg12[%c0_129, %c56] : memref<64x72xbf16, #tpu.memory_space<vmem>>, vector<64x8xbf16>
    tpu.vector_store %arg12[%c0_129, %c56], %105 {strides = array<i32>} : memref<64x72xbf16, #tpu.memory_space<vmem>>, vector<64x8xbf16>,
    %c2_130 = arith.constant 2 : index
    %c2_131 = arith.constant 2 : index
    %c0_132 = arith.constant 0 : index
    %107 = vector.load %arg11[%c2_130, %c2_131, %c0_132] : memref<10x10x8xf32, #tpu.memory_space<vmem>>, vector<8x8x8xf32>
    %108 = vector.shape_cast %107 : vector<8x8x8xf32> to vector<64x8xf32>
    %109 = arith.truncf %108 : vector<64x8xf32> to vector<64x8xbf16>
    %c0_133 = arith.constant 0 : index
    %c64 = arith.constant 64 : index
    %110 = vector.load %arg12[%c0_133, %c64] : memref<64x72xbf16, #tpu.memory_space<vmem>>, vector<64x8xbf16>
    tpu.vector_store %arg12[%c0_133, %c64], %109 {strides = array<i32>} : memref<64x72xbf16, #tpu.memory_space<vmem>>, vector<64x8xbf16>,
    %c0_134 = arith.constant 0 : index
    %c0_135 = arith.constant 0 : index
    %111 = vector.load %arg12[%c0_134, %c0_135] : memref<64x72xbf16, #tpu.memory_space<vmem>>, vector<64x72xbf16>
    %c0_136 = arith.constant 0 : index
    %c0_137 = arith.constant 0 : index
    %112 = vector.load %arg2[%c0_136, %c0_137] : memref<72x32xbf16, #tpu.memory_space<vmem>>, vector<72x32xbf16>
    %cst_138 = arith.constant dense<0.000000e+00> : vector<64x32xf32>
    %113 = tpu.matmul %111, %112, %cst_138 {dimension_numbers = #tpu.dot_dimension_numbers<[1], [0], [0], [1], [0, 0, 1, 1], [], []>} : vector<64x72xbf16>, vector<72x32xbf16>, vector<64x32xf32> -> vector<64x32xf32>
    %c0_139 = arith.constant 0 : index
    %c0_140 = arith.constant 0 : index
    %114 = vector.load %arg3[%c0_139, %c0_140] : memref<1x32xf32, #tpu.memory_space<vmem>>, vector<1x32xf32>
    %115 = vector.shape_cast %114 : vector<1x32xf32> to vector<32xf32>
    %116 = vector.shape_cast %115 : vector<32xf32> to vector<1x32xf32>
    %117 = vector.broadcast %116 : vector<1x32xf32> to vector<64x32xf32>
    %118 = arith.addf %113, %117 : vector<64x32xf32>
    %119 = arith.negf %118 : vector<64x32xf32>
    %120 = math.exp %119 : vector<64x32xf32>
    %cst_141 = arith.constant 1.000000e+00 : f32
    %121 = vector.broadcast %cst_141 : f32 to vector<64x32xf32>
    %122 = arith.addf %121, %120 : vector<64x32xf32>
    %123 = arith.divf %121, %122 : vector<64x32xf32>
    %124 = arith.mulf %118, %123 : vector<64x32xf32>
    %125 = arith.truncf %124 : vector<64x32xf32> to vector<64x32xbf16>
    %c0_142 = arith.constant 0 : index
    %c0_143 = arith.constant 0 : index
    %126 = vector.load %arg5[%c0_142, %c0_143] : memref<1x128xf32, #tpu.memory_space<vmem>>, vector<1x128xf32>
    %127 = vector.shape_cast %126 : vector<1x128xf32> to vector<128xf32>
    %c0_144 = arith.constant 0 : index
    %c0_145 = arith.constant 0 : index
    %128 = vector.load %arg4[%c0_144, %c0_145] : memref<32x128xbf16, #tpu.memory_space<vmem>>, vector<32x32xbf16>
    %cst_146 = arith.constant dense<0.000000e+00> : vector<64x32xf32>
    %129 = tpu.matmul %125, %128, %cst_146 {dimension_numbers = #tpu.dot_dimension_numbers<[1], [0], [0], [1], [0, 0, 1, 1], [], []>} : vector<64x32xbf16>, vector<32x32xbf16>, vector<64x32xf32> -> vector<64x32xf32>
    %130 = vector.extract_strided_slice %127 {offsets = [0], sizes = [32], strides = [1]} : vector<128xf32> to vector<32xf32>
    %131 = vector.shape_cast %130 : vector<32xf32> to vector<1x32xf32>
    %132 = vector.broadcast %131 : vector<1x32xf32> to vector<64x32xf32>
    %133 = arith.addf %129, %132 : vector<64x32xf32>
    %134 = vector.shape_cast %133 : vector<64x32xf32> to vector<8x8x32xf32>
    %c0_147 = arith.constant 0 : index
    %c1_148 = arith.constant 1 : index
    %c1_149 = arith.constant 1 : index
    %c0_150 = arith.constant 0 : index
    %135 = vector.load %arg13[%c0_147, %c1_148, %c1_149, %c0_150] : memref<4x10x10x32xf32, #tpu.memory_space<vmem>>, vector<1x8x8x32xf32>
    %136 = vector.shape_cast %135 : vector<1x8x8x32xf32> to vector<8x8x32xf32>
    %137 = vector.shape_cast %134 : vector<8x8x32xf32> to vector<1x8x8x32xf32>
    tpu.vector_store %arg13[%c0_147, %c1_148, %c1_149, %c0_150], %137 {strides = array<i32>} : memref<4x10x10x32xf32, #tpu.memory_space<vmem>>, vector<1x8x8x32xf32>,
    %c0_151 = arith.constant 0 : index
    %c32_152 = arith.constant 32 : index
    %138 = vector.load %arg4[%c0_151, %c32_152] : memref<32x128xbf16, #tpu.memory_space<vmem>>, vector<32x32xbf16>
    %cst_153 = arith.constant dense<0.000000e+00> : vector<64x32xf32>
    %139 = tpu.matmul %125, %138, %cst_153 {dimension_numbers = #tpu.dot_dimension_numbers<[1], [0], [0], [1], [0, 0, 1, 1], [], []>} : vector<64x32xbf16>, vector<32x32xbf16>, vector<64x32xf32> -> vector<64x32xf32>
    %140 = vector.extract_strided_slice %127 {offsets = [32], sizes = [32], strides = [1]} : vector<128xf32> to vector<32xf32>
    %141 = vector.shape_cast %140 : vector<32xf32> to vector<1x32xf32>
    %142 = vector.broadcast %141 : vector<1x32xf32> to vector<64x32xf32>
    %143 = arith.addf %139, %142 : vector<64x32xf32>
    %144 = vector.shape_cast %143 : vector<64x32xf32> to vector<8x8x32xf32>
    %c1_154 = arith.constant 1 : index
    %c1_155 = arith.constant 1 : index
    %c1_156 = arith.constant 1 : index
    %c0_157 = arith.constant 0 : index
    %145 = vector.load %arg13[%c1_154, %c1_155, %c1_156, %c0_157] : memref<4x10x10x32xf32, #tpu.memory_space<vmem>>, vector<1x8x8x32xf32>
    %146 = vector.shape_cast %145 : vector<1x8x8x32xf32> to vector<8x8x32xf32>
    %147 = vector.shape_cast %144 : vector<8x8x32xf32> to vector<1x8x8x32xf32>
    tpu.vector_store %arg13[%c1_154, %c1_155, %c1_156, %c0_157], %147 {strides = array<i32>} : memref<4x10x10x32xf32, #tpu.memory_space<vmem>>, vector<1x8x8x32xf32>,
    %c0_158 = arith.constant 0 : index
    %c64_159 = arith.constant 64 : index
    %148 = vector.load %arg4[%c0_158, %c64_159] : memref<32x128xbf16, #tpu.memory_space<vmem>>, vector<32x32xbf16>
    %cst_160 = arith.constant dense<0.000000e+00> : vector<64x32xf32>
    %149 = tpu.matmul %125, %148, %cst_160 {dimension_numbers = #tpu.dot_dimension_numbers<[1], [0], [0], [1], [0, 0, 1, 1], [], []>} : vector<64x32xbf16>, vector<32x32xbf16>, vector<64x32xf32> -> vector<64x32xf32>
    %150 = vector.extract_strided_slice %127 {offsets = [64], sizes = [32], strides = [1]} : vector<128xf32> to vector<32xf32>
    %151 = vector.shape_cast %150 : vector<32xf32> to vector<1x32xf32>
    %152 = vector.broadcast %151 : vector<1x32xf32> to vector<64x32xf32>
    %153 = arith.addf %149, %152 : vector<64x32xf32>
    %154 = vector.shape_cast %153 : vector<64x32xf32> to vector<8x8x32xf32>
    %c2_161 = arith.constant 2 : index
    %c1_162 = arith.constant 1 : index
    %c1_163 = arith.constant 1 : index
    %c0_164 = arith.constant 0 : index
    %155 = vector.load %arg13[%c2_161, %c1_162, %c1_163, %c0_164] : memref<4x10x10x32xf32, #tpu.memory_space<vmem>>, vector<1x8x8x32xf32>
    %156 = vector.shape_cast %155 : vector<1x8x8x32xf32> to vector<8x8x32xf32>
    %157 = vector.shape_cast %154 : vector<8x8x32xf32> to vector<1x8x8x32xf32>
    tpu.vector_store %arg13[%c2_161, %c1_162, %c1_163, %c0_164], %157 {strides = array<i32>} : memref<4x10x10x32xf32, #tpu.memory_space<vmem>>, vector<1x8x8x32xf32>,
    %c0_165 = arith.constant 0 : index
    %c96 = arith.constant 96 : index
    %158 = vector.load %arg4[%c0_165, %c96] : memref<32x128xbf16, #tpu.memory_space<vmem>>, vector<32x32xbf16>
    %cst_166 = arith.constant dense<0.000000e+00> : vector<64x32xf32>
    %159 = tpu.matmul %125, %158, %cst_166 {dimension_numbers = #tpu.dot_dimension_numbers<[1], [0], [0], [1], [0, 0, 1, 1], [], []>} : vector<64x32xbf16>, vector<32x32xbf16>, vector<64x32xf32> -> vector<64x32xf32>
    %160 = vector.extract_strided_slice %127 {offsets = [96], sizes = [32], strides = [1]} : vector<128xf32> to vector<32xf32>
    %161 = vector.shape_cast %160 : vector<32xf32> to vector<1x32xf32>
    %162 = vector.broadcast %161 : vector<1x32xf32> to vector<64x32xf32>
    %163 = arith.addf %159, %162 : vector<64x32xf32>
    %164 = vector.shape_cast %163 : vector<64x32xf32> to vector<8x8x32xf32>
    %c3_167 = arith.constant 3 : index
    %c1_168 = arith.constant 1 : index
    %c1_169 = arith.constant 1 : index
    %c0_170 = arith.constant 0 : index
    %165 = vector.load %arg13[%c3_167, %c1_168, %c1_169, %c0_170] : memref<4x10x10x32xf32, #tpu.memory_space<vmem>>, vector<1x8x8x32xf32>
    %166 = vector.shape_cast %165 : vector<1x8x8x32xf32> to vector<8x8x32xf32>
    %167 = vector.shape_cast %164 : vector<8x8x32xf32> to vector<1x8x8x32xf32>
    tpu.vector_store %arg13[%c3_167, %c1_168, %c1_169, %c0_170], %167 {strides = array<i32>} : memref<4x10x10x32xf32, #tpu.memory_space<vmem>>, vector<1x8x8x32xf32>,
    %c3_171 = arith.constant 3 : index
    %c0_172 = arith.constant 0 : index
    %c0_173 = arith.constant 0 : index
    %c0_174 = arith.constant 0 : index
    %168 = vector.load %arg13[%c3_171, %c0_172, %c0_173, %c0_174] : memref<4x10x10x32xf32, #tpu.memory_space<vmem>>, vector<1x8x8x32xf32>
    %169 = vector.shape_cast %168 : vector<1x8x8x32xf32> to vector<8x8x32xf32>
    %170 = vector.shape_cast %169 : vector<8x8x32xf32> to vector<64x32xf32>
    %171 = arith.truncf %170 : vector<64x32xf32> to vector<64x32xbf16>
    %c0_175 = arith.constant 0 : index
    %c0_176 = arith.constant 0 : index
    %172 = vector.load %arg14[%c0_175, %c0_176] : memref<256x288xbf16, #tpu.memory_space<vmem>>, vector<64x32xbf16>
    tpu.vector_store %arg14[%c0_175, %c0_176], %171 {strides = array<i32>} : memref<256x288xbf16, #tpu.memory_space<vmem>>, vector<64x32xbf16>,
    %c2_177 = arith.constant 2 : index
    %c0_178 = arith.constant 0 : index
    %c1_179 = arith.constant 1 : index
    %c0_180 = arith.constant 0 : index
    %173 = vector.load %arg13[%c2_177, %c0_178, %c1_179, %c0_180] : memref<4x10x10x32xf32, #tpu.memory_space<vmem>>, vector<1x8x8x32xf32>
    %174 = vector.shape_cast %173 : vector<1x8x8x32xf32> to vector<8x8x32xf32>
    %175 = vector.shape_cast %174 : vector<8x8x32xf32> to vector<64x32xf32>
    %176 = arith.truncf %175 : vector<64x32xf32> to vector<64x32xbf16>
    %c0_181 = arith.constant 0 : index
    %c32_182 = arith.constant 32 : index
    %177 = vector.load %arg14[%c0_181, %c32_182] : memref<256x288xbf16, #tpu.memory_space<vmem>>, vector<64x32xbf16>
    tpu.vector_store %arg14[%c0_181, %c32_182], %176 {strides = array<i32>} : memref<256x288xbf16, #tpu.memory_space<vmem>>, vector<64x32xbf16>,
    %c3_183 = arith.constant 3 : index
    %c0_184 = arith.constant 0 : index
    %c1_185 = arith.constant 1 : index
    %c0_186 = arith.constant 0 : index
    %178 = vector.load %arg13[%c3_183, %c0_184, %c1_185, %c0_186] : memref<4x10x10x32xf32, #tpu.memory_space<vmem>>, vector<1x8x8x32xf32>
    %179 = vector.shape_cast %178 : vector<1x8x8x32xf32> to vector<8x8x32xf32>
    %180 = vector.shape_cast %179 : vector<8x8x32xf32> to vector<64x32xf32>
    %181 = arith.truncf %180 : vector<64x32xf32> to vector<64x32xbf16>
    %c0_187 = arith.constant 0 : index
    %c64_188 = arith.constant 64 : index
    %182 = vector.load %arg14[%c0_187, %c64_188] : memref<256x288xbf16, #tpu.memory_space<vmem>>, vector<64x32xbf16>
    tpu.vector_store %arg14[%c0_187, %c64_188], %181 {strides = array<i32>} : memref<256x288xbf16, #tpu.memory_space<vmem>>, vector<64x32xbf16>,
    %c1_189 = arith.constant 1 : index
    %c1_190 = arith.constant 1 : index
    %c0_191 = arith.constant 0 : index
    %c0_192 = arith.constant 0 : index
    %183 = vector.load %arg13[%c1_189, %c1_190, %c0_191, %c0_192] : memref<4x10x10x32xf32, #tpu.memory_space<vmem>>, vector<1x8x8x32xf32>
    %184 = vector.shape_cast %183 : vector<1x8x8x32xf32> to vector<8x8x32xf32>
    %185 = vector.shape_cast %184 : vector<8x8x32xf32> to vector<64x32xf32>
    %186 = arith.truncf %185 : vector<64x32xf32> to vector<64x32xbf16>
    %c0_193 = arith.constant 0 : index
    %c96_194 = arith.constant 96 : index
    %187 = vector.load %arg14[%c0_193, %c96_194] : memref<256x288xbf16, #tpu.memory_space<vmem>>, vector<64x32xbf16>
    tpu.vector_store %arg14[%c0_193, %c96_194], %186 {strides = array<i32>} : memref<256x288xbf16, #tpu.memory_space<vmem>>, vector<64x32xbf16>,
    %c0_195 = arith.constant 0 : index
    %c1_196 = arith.constant 1 : index
    %c1_197 = arith.constant 1 : index
    %c0_198 = arith.constant 0 : index
    %188 = vector.load %arg13[%c0_195, %c1_196, %c1_197, %c0_198] : memref<4x10x10x32xf32, #tpu.memory_space<vmem>>, vector<1x8x8x32xf32>
    %189 = vector.shape_cast %188 : vector<1x8x8x32xf32> to vector<8x8x32xf32>
    %190 = vector.shape_cast %189 : vector<8x8x32xf32> to vector<64x32xf32>
    %191 = arith.truncf %190 : vector<64x32xf32> to vector<64x32xbf16>
    %c0_199 = arith.constant 0 : index
    %c128 = arith.constant 128 : index
    %192 = vector.load %arg14[%c0_199, %c128] : memref<256x288xbf16, #tpu.memory_space<vmem>>, vector<64x32xbf16>
    tpu.vector_store %arg14[%c0_199, %c128], %191 {strides = array<i32>} : memref<256x288xbf16, #tpu.memory_space<vmem>>, vector<64x32xbf16>,
    %c1_200 = arith.constant 1 : index
    %c1_201 = arith.constant 1 : index
    %c1_202 = arith.constant 1 : index
    %c0_203 = arith.constant 0 : index
    %193 = vector.load %arg13[%c1_200, %c1_201, %c1_202, %c0_203] : memref<4x10x10x32xf32, #tpu.memory_space<vmem>>, vector<1x8x8x32xf32>
    %194 = vector.shape_cast %193 : vector<1x8x8x32xf32> to vector<8x8x32xf32>
    %195 = vector.shape_cast %194 : vector<8x8x32xf32> to vector<64x32xf32>
    %196 = arith.truncf %195 : vector<64x32xf32> to vector<64x32xbf16>
    %c0_204 = arith.constant 0 : index
    %c160 = arith.constant 160 : index
    %197 = vector.load %arg14[%c0_204, %c160] : memref<256x288xbf16, #tpu.memory_space<vmem>>, vector<64x32xbf16>
    tpu.vector_store %arg14[%c0_204, %c160], %196 {strides = array<i32>} : memref<256x288xbf16, #tpu.memory_space<vmem>>, vector<64x32xbf16>,
    %c3_205 = arith.constant 3 : index
    %c1_206 = arith.constant 1 : index
    %c0_207 = arith.constant 0 : index
    %c0_208 = arith.constant 0 : index
    %198 = vector.load %arg13[%c3_205, %c1_206, %c0_207, %c0_208] : memref<4x10x10x32xf32, #tpu.memory_space<vmem>>, vector<1x8x8x32xf32>
    %199 = vector.shape_cast %198 : vector<1x8x8x32xf32> to vector<8x8x32xf32>
    %200 = vector.shape_cast %199 : vector<8x8x32xf32> to vector<64x32xf32>
    %201 = arith.truncf %200 : vector<64x32xf32> to vector<64x32xbf16>
    %c0_209 = arith.constant 0 : index
    %c192 = arith.constant 192 : index
    %202 = vector.load %arg14[%c0_209, %c192] : memref<256x288xbf16, #tpu.memory_space<vmem>>, vector<64x32xbf16>
    tpu.vector_store %arg14[%c0_209, %c192], %201 {strides = array<i32>} : memref<256x288xbf16, #tpu.memory_space<vmem>>, vector<64x32xbf16>,
    %c2_210 = arith.constant 2 : index
    %c1_211 = arith.constant 1 : index
    %c1_212 = arith.constant 1 : index
    %c0_213 = arith.constant 0 : index
    %203 = vector.load %arg13[%c2_210, %c1_211, %c1_212, %c0_213] : memref<4x10x10x32xf32, #tpu.memory_space<vmem>>, vector<1x8x8x32xf32>
    %204 = vector.shape_cast %203 : vector<1x8x8x32xf32> to vector<8x8x32xf32>
    %205 = vector.shape_cast %204 : vector<8x8x32xf32> to vector<64x32xf32>
    %206 = arith.truncf %205 : vector<64x32xf32> to vector<64x32xbf16>
    %c0_214 = arith.constant 0 : index
    %c224 = arith.constant 224 : index
    %207 = vector.load %arg14[%c0_214, %c224] : memref<256x288xbf16, #tpu.memory_space<vmem>>, vector<64x32xbf16>
    tpu.vector_store %arg14[%c0_214, %c224], %206 {strides = array<i32>} : memref<256x288xbf16, #tpu.memory_space<vmem>>, vector<64x32xbf16>,
    %c3_215 = arith.constant 3 : index
    %c1_216 = arith.constant 1 : index
    %c1_217 = arith.constant 1 : index
    %c0_218 = arith.constant 0 : index
    %208 = vector.load %arg13[%c3_215, %c1_216, %c1_217, %c0_218] : memref<4x10x10x32xf32, #tpu.memory_space<vmem>>, vector<1x8x8x32xf32>
    %209 = vector.shape_cast %208 : vector<1x8x8x32xf32> to vector<8x8x32xf32>
    %210 = vector.shape_cast %209 : vector<8x8x32xf32> to vector<64x32xf32>
    %211 = arith.truncf %210 : vector<64x32xf32> to vector<64x32xbf16>
    %c0_219 = arith.constant 0 : index
    %c256 = arith.constant 256 : index
    %212 = vector.load %arg14[%c0_219, %c256] : memref<256x288xbf16, #tpu.memory_space<vmem>>, vector<64x32xbf16>
    tpu.vector_store %arg14[%c0_219, %c256], %211 {strides = array<i32>} : memref<256x288xbf16, #tpu.memory_space<vmem>>, vector<64x32xbf16>,
    %c2_220 = arith.constant 2 : index
    %c0_221 = arith.constant 0 : index
    %c1_222 = arith.constant 1 : index
    %c0_223 = arith.constant 0 : index
    %213 = vector.load %arg13[%c2_220, %c0_221, %c1_222, %c0_223] : memref<4x10x10x32xf32, #tpu.memory_space<vmem>>, vector<1x8x8x32xf32>
    %214 = vector.shape_cast %213 : vector<1x8x8x32xf32> to vector<8x8x32xf32>
    %215 = vector.shape_cast %214 : vector<8x8x32xf32> to vector<64x32xf32>
    %216 = arith.truncf %215 : vector<64x32xf32> to vector<64x32xbf16>
    %c64_224 = arith.constant 64 : index
    %c0_225 = arith.constant 0 : index
    %217 = vector.load %arg14[%c64_224, %c0_225] : memref<256x288xbf16, #tpu.memory_space<vmem>>, vector<64x32xbf16>
    tpu.vector_store %arg14[%c64_224, %c0_225], %216 {strides = array<i32>} : memref<256x288xbf16, #tpu.memory_space<vmem>>, vector<64x32xbf16>,
    %c3_226 = arith.constant 3 : index
    %c0_227 = arith.constant 0 : index
    %c1_228 = arith.constant 1 : index
    %c0_229 = arith.constant 0 : index
    %218 = vector.load %arg13[%c3_226, %c0_227, %c1_228, %c0_229] : memref<4x10x10x32xf32, #tpu.memory_space<vmem>>, vector<1x8x8x32xf32>
    %219 = vector.shape_cast %218 : vector<1x8x8x32xf32> to vector<8x8x32xf32>
    %220 = vector.shape_cast %219 : vector<8x8x32xf32> to vector<64x32xf32>
    %221 = arith.truncf %220 : vector<64x32xf32> to vector<64x32xbf16>
    %c64_230 = arith.constant 64 : index
    %c32_231 = arith.constant 32 : index
    %222 = vector.load %arg14[%c64_230, %c32_231] : memref<256x288xbf16, #tpu.memory_space<vmem>>, vector<64x32xbf16>
    tpu.vector_store %arg14[%c64_230, %c32_231], %221 {strides = array<i32>} : memref<256x288xbf16, #tpu.memory_space<vmem>>, vector<64x32xbf16>,
    %c2_232 = arith.constant 2 : index
    %c0_233 = arith.constant 0 : index
    %c2_234 = arith.constant 2 : index
    %c0_235 = arith.constant 0 : index
    %223 = vector.load %arg13[%c2_232, %c0_233, %c2_234, %c0_235] : memref<4x10x10x32xf32, #tpu.memory_space<vmem>>, vector<1x8x8x32xf32>
    %224 = vector.shape_cast %223 : vector<1x8x8x32xf32> to vector<8x8x32xf32>
    %225 = vector.shape_cast %224 : vector<8x8x32xf32> to vector<64x32xf32>
    %226 = arith.truncf %225 : vector<64x32xf32> to vector<64x32xbf16>
    %c64_236 = arith.constant 64 : index
    %c64_237 = arith.constant 64 : index
    %227 = vector.load %arg14[%c64_236, %c64_237] : memref<256x288xbf16, #tpu.memory_space<vmem>>, vector<64x32xbf16>
    tpu.vector_store %arg14[%c64_236, %c64_237], %226 {strides = array<i32>} : memref<256x288xbf16, #tpu.memory_space<vmem>>, vector<64x32xbf16>,
    %c0_238 = arith.constant 0 : index
    %c1_239 = arith.constant 1 : index
    %c1_240 = arith.constant 1 : index
    %c0_241 = arith.constant 0 : index
    %228 = vector.load %arg13[%c0_238, %c1_239, %c1_240, %c0_241] : memref<4x10x10x32xf32, #tpu.memory_space<vmem>>, vector<1x8x8x32xf32>
    %229 = vector.shape_cast %228 : vector<1x8x8x32xf32> to vector<8x8x32xf32>
    %230 = vector.shape_cast %229 : vector<8x8x32xf32> to vector<64x32xf32>
    %231 = arith.truncf %230 : vector<64x32xf32> to vector<64x32xbf16>
    %c64_242 = arith.constant 64 : index
    %c96_243 = arith.constant 96 : index
    %232 = vector.load %arg14[%c64_242, %c96_243] : memref<256x288xbf16, #tpu.memory_space<vmem>>, vector<64x32xbf16>
    tpu.vector_store %arg14[%c64_242, %c96_243], %231 {strides = array<i32>} : memref<256x288xbf16, #tpu.memory_space<vmem>>, vector<64x32xbf16>,
    %c1_244 = arith.constant 1 : index
    %c1_245 = arith.constant 1 : index
    %c1_246 = arith.constant 1 : index
    %c0_247 = arith.constant 0 : index
    %233 = vector.load %arg13[%c1_244, %c1_245, %c1_246, %c0_247] : memref<4x10x10x32xf32, #tpu.memory_space<vmem>>, vector<1x8x8x32xf32>
    %234 = vector.shape_cast %233 : vector<1x8x8x32xf32> to vector<8x8x32xf32>
    %235 = vector.shape_cast %234 : vector<8x8x32xf32> to vector<64x32xf32>
    %236 = arith.truncf %235 : vector<64x32xf32> to vector<64x32xbf16>
    %c64_248 = arith.constant 64 : index
    %c128_249 = arith.constant 128 : index
    %237 = vector.load %arg14[%c64_248, %c128_249] : memref<256x288xbf16, #tpu.memory_space<vmem>>, vector<64x32xbf16>
    tpu.vector_store %arg14[%c64_248, %c128_249], %236 {strides = array<i32>} : memref<256x288xbf16, #tpu.memory_space<vmem>>, vector<64x32xbf16>,
    %c0_250 = arith.constant 0 : index
    %c1_251 = arith.constant 1 : index
    %c2_252 = arith.constant 2 : index
    %c0_253 = arith.constant 0 : index
    %238 = vector.load %arg13[%c0_250, %c1_251, %c2_252, %c0_253] : memref<4x10x10x32xf32, #tpu.memory_space<vmem>>, vector<1x8x8x32xf32>
    %239 = vector.shape_cast %238 : vector<1x8x8x32xf32> to vector<8x8x32xf32>
    %240 = vector.shape_cast %239 : vector<8x8x32xf32> to vector<64x32xf32>
    %241 = arith.truncf %240 : vector<64x32xf32> to vector<64x32xbf16>
    %c64_254 = arith.constant 64 : index
    %c160_255 = arith.constant 160 : index
    %242 = vector.load %arg14[%c64_254, %c160_255] : memref<256x288xbf16, #tpu.memory_space<vmem>>, vector<64x32xbf16>
    tpu.vector_store %arg14[%c64_254, %c160_255], %241 {strides = array<i32>} : memref<256x288xbf16, #tpu.memory_space<vmem>>, vector<64x32xbf16>,
    %c2_256 = arith.constant 2 : index
    %c1_257 = arith.constant 1 : index
    %c1_258 = arith.constant 1 : index
    %c0_259 = arith.constant 0 : index
    %243 = vector.load %arg13[%c2_256, %c1_257, %c1_258, %c0_259] : memref<4x10x10x32xf32, #tpu.memory_space<vmem>>, vector<1x8x8x32xf32>
    %244 = vector.shape_cast %243 : vector<1x8x8x32xf32> to vector<8x8x32xf32>
    %245 = vector.shape_cast %244 : vector<8x8x32xf32> to vector<64x32xf32>
    %246 = arith.truncf %245 : vector<64x32xf32> to vector<64x32xbf16>
    %c64_260 = arith.constant 64 : index
    %c192_261 = arith.constant 192 : index
    %247 = vector.load %arg14[%c64_260, %c192_261] : memref<256x288xbf16, #tpu.memory_space<vmem>>, vector<64x32xbf16>
    tpu.vector_store %arg14[%c64_260, %c192_261], %246 {strides = array<i32>} : memref<256x288xbf16, #tpu.memory_space<vmem>>, vector<64x32xbf16>,
    %c3_262 = arith.constant 3 : index
    %c1_263 = arith.constant 1 : index
    %c1_264 = arith.constant 1 : index
    %c0_265 = arith.constant 0 : index
    %248 = vector.load %arg13[%c3_262, %c1_263, %c1_264, %c0_265] : memref<4x10x10x32xf32, #tpu.memory_space<vmem>>, vector<1x8x8x32xf32>
    %249 = vector.shape_cast %248 : vector<1x8x8x32xf32> to vector<8x8x32xf32>
    %250 = vector.shape_cast %249 : vector<8x8x32xf32> to vector<64x32xf32>
    %251 = arith.truncf %250 : vector<64x32xf32> to vector<64x32xbf16>
    %c64_266 = arith.constant 64 : index
    %c224_267 = arith.constant 224 : index
    %252 = vector.load %arg14[%c64_266, %c224_267] : memref<256x288xbf16, #tpu.memory_space<vmem>>, vector<64x32xbf16>
    tpu.vector_store %arg14[%c64_266, %c224_267], %251 {strides = array<i32>} : memref<256x288xbf16, #tpu.memory_space<vmem>>, vector<64x32xbf16>,
    %c2_268 = arith.constant 2 : index
    %c1_269 = arith.constant 1 : index
    %c2_270 = arith.constant 2 : index
    %c0_271 = arith.constant 0 : index
    %253 = vector.load %arg13[%c2_268, %c1_269, %c2_270, %c0_271] : memref<4x10x10x32xf32, #tpu.memory_space<vmem>>, vector<1x8x8x32xf32>
    %254 = vector.shape_cast %253 : vector<1x8x8x32xf32> to vector<8x8x32xf32>
    %255 = vector.shape_cast %254 : vector<8x8x32xf32> to vector<64x32xf32>
    %256 = arith.truncf %255 : vector<64x32xf32> to vector<64x32xbf16>
    %c64_272 = arith.constant 64 : index
    %c256_273 = arith.constant 256 : index
    %257 = vector.load %arg14[%c64_272, %c256_273] : memref<256x288xbf16, #tpu.memory_space<vmem>>, vector<64x32xbf16>
    tpu.vector_store %arg14[%c64_272, %c256_273], %256 {strides = array<i32>} : memref<256x288xbf16, #tpu.memory_space<vmem>>, vector<64x32xbf16>,
    %c1_274 = arith.constant 1 : index
    %c1_275 = arith.constant 1 : index
    %c0_276 = arith.constant 0 : index
    %c0_277 = arith.constant 0 : index
    %258 = vector.load %arg13[%c1_274, %c1_275, %c0_276, %c0_277] : memref<4x10x10x32xf32, #tpu.memory_space<vmem>>, vector<1x8x8x32xf32>
    %259 = vector.shape_cast %258 : vector<1x8x8x32xf32> to vector<8x8x32xf32>
    %260 = vector.shape_cast %259 : vector<8x8x32xf32> to vector<64x32xf32>
    %261 = arith.truncf %260 : vector<64x32xf32> to vector<64x32xbf16>
    %c128_278 = arith.constant 128 : index
    %c0_279 = arith.constant 0 : index
    %262 = vector.load %arg14[%c128_278, %c0_279] : memref<256x288xbf16, #tpu.memory_space<vmem>>, vector<64x32xbf16>
    tpu.vector_store %arg14[%c128_278, %c0_279], %261 {strides = array<i32>} : memref<256x288xbf16, #tpu.memory_space<vmem>>, vector<64x32xbf16>,
    %c0_280 = arith.constant 0 : index
    %c1_281 = arith.constant 1 : index
    %c1_282 = arith.constant 1 : index
    %c0_283 = arith.constant 0 : index
    %263 = vector.load %arg13[%c0_280, %c1_281, %c1_282, %c0_283] : memref<4x10x10x32xf32, #tpu.memory_space<vmem>>, vector<1x8x8x32xf32>
    %264 = vector.shape_cast %263 : vector<1x8x8x32xf32> to vector<8x8x32xf32>
    %265 = vector.shape_cast %264 : vector<8x8x32xf32> to vector<64x32xf32>
    %266 = arith.truncf %265 : vector<64x32xf32> to vector<64x32xbf16>
    %c128_284 = arith.constant 128 : index
    %c32_285 = arith.constant 32 : index
    %267 = vector.load %arg14[%c128_284, %c32_285] : memref<256x288xbf16, #tpu.memory_space<vmem>>, vector<64x32xbf16>
    tpu.vector_store %arg14[%c128_284, %c32_285], %266 {strides = array<i32>} : memref<256x288xbf16, #tpu.memory_space<vmem>>, vector<64x32xbf16>,
    %c1_286 = arith.constant 1 : index
    %c1_287 = arith.constant 1 : index
    %c1_288 = arith.constant 1 : index
    %c0_289 = arith.constant 0 : index
    %268 = vector.load %arg13[%c1_286, %c1_287, %c1_288, %c0_289] : memref<4x10x10x32xf32, #tpu.memory_space<vmem>>, vector<1x8x8x32xf32>
    %269 = vector.shape_cast %268 : vector<1x8x8x32xf32> to vector<8x8x32xf32>
    %270 = vector.shape_cast %269 : vector<8x8x32xf32> to vector<64x32xf32>
    %271 = arith.truncf %270 : vector<64x32xf32> to vector<64x32xbf16>
    %c128_290 = arith.constant 128 : index
    %c64_291 = arith.constant 64 : index
    %272 = vector.load %arg14[%c128_290, %c64_291] : memref<256x288xbf16, #tpu.memory_space<vmem>>, vector<64x32xbf16>
    tpu.vector_store %arg14[%c128_290, %c64_291], %271 {strides = array<i32>} : memref<256x288xbf16, #tpu.memory_space<vmem>>, vector<64x32xbf16>,
    %c3_292 = arith.constant 3 : index
    %c1_293 = arith.constant 1 : index
    %c0_294 = arith.constant 0 : index
    %c0_295 = arith.constant 0 : index
    %273 = vector.load %arg13[%c3_292, %c1_293, %c0_294, %c0_295] : memref<4x10x10x32xf32, #tpu.memory_space<vmem>>, vector<1x8x8x32xf32>
    %274 = vector.shape_cast %273 : vector<1x8x8x32xf32> to vector<8x8x32xf32>
    %275 = vector.shape_cast %274 : vector<8x8x32xf32> to vector<64x32xf32>
    %276 = arith.truncf %275 : vector<64x32xf32> to vector<64x32xbf16>
    %c128_296 = arith.constant 128 : index
    %c96_297 = arith.constant 96 : index
    %277 = vector.load %arg14[%c128_296, %c96_297] : memref<256x288xbf16, #tpu.memory_space<vmem>>, vector<64x32xbf16>
    tpu.vector_store %arg14[%c128_296, %c96_297], %276 {strides = array<i32>} : memref<256x288xbf16, #tpu.memory_space<vmem>>, vector<64x32xbf16>,
    %c2_298 = arith.constant 2 : index
    %c1_299 = arith.constant 1 : index
    %c1_300 = arith.constant 1 : index
    %c0_301 = arith.constant 0 : index
    %278 = vector.load %arg13[%c2_298, %c1_299, %c1_300, %c0_301] : memref<4x10x10x32xf32, #tpu.memory_space<vmem>>, vector<1x8x8x32xf32>
    %279 = vector.shape_cast %278 : vector<1x8x8x32xf32> to vector<8x8x32xf32>
    %280 = vector.shape_cast %279 : vector<8x8x32xf32> to vector<64x32xf32>
    %281 = arith.truncf %280 : vector<64x32xf32> to vector<64x32xbf16>
    %c128_302 = arith.constant 128 : index
    %c128_303 = arith.constant 128 : index
    %282 = vector.load %arg14[%c128_302, %c128_303] : memref<256x288xbf16, #tpu.memory_space<vmem>>, vector<64x32xbf16>
    tpu.vector_store %arg14[%c128_302, %c128_303], %281 {strides = array<i32>} : memref<256x288xbf16, #tpu.memory_space<vmem>>, vector<64x32xbf16>,
    %c3_304 = arith.constant 3 : index
    %c1_305 = arith.constant 1 : index
    %c1_306 = arith.constant 1 : index
    %c0_307 = arith.constant 0 : index
    %283 = vector.load %arg13[%c3_304, %c1_305, %c1_306, %c0_307] : memref<4x10x10x32xf32, #tpu.memory_space<vmem>>, vector<1x8x8x32xf32>
    %284 = vector.shape_cast %283 : vector<1x8x8x32xf32> to vector<8x8x32xf32>
    %285 = vector.shape_cast %284 : vector<8x8x32xf32> to vector<64x32xf32>
    %286 = arith.truncf %285 : vector<64x32xf32> to vector<64x32xbf16>
    %c128_308 = arith.constant 128 : index
    %c160_309 = arith.constant 160 : index
    %287 = vector.load %arg14[%c128_308, %c160_309] : memref<256x288xbf16, #tpu.memory_space<vmem>>, vector<64x32xbf16>
    tpu.vector_store %arg14[%c128_308, %c160_309], %286 {strides = array<i32>} : memref<256x288xbf16, #tpu.memory_space<vmem>>, vector<64x32xbf16>,
    %c1_310 = arith.constant 1 : index
    %c2_311 = arith.constant 2 : index
    %c0_312 = arith.constant 0 : index
    %c0_313 = arith.constant 0 : index
    %288 = vector.load %arg13[%c1_310, %c2_311, %c0_312, %c0_313] : memref<4x10x10x32xf32, #tpu.memory_space<vmem>>, vector<1x8x8x32xf32>
    %289 = vector.shape_cast %288 : vector<1x8x8x32xf32> to vector<8x8x32xf32>
    %290 = vector.shape_cast %289 : vector<8x8x32xf32> to vector<64x32xf32>
    %291 = arith.truncf %290 : vector<64x32xf32> to vector<64x32xbf16>
    %c128_314 = arith.constant 128 : index
    %c192_315 = arith.constant 192 : index
    %292 = vector.load %arg14[%c128_314, %c192_315] : memref<256x288xbf16, #tpu.memory_space<vmem>>, vector<64x32xbf16>
    tpu.vector_store %arg14[%c128_314, %c192_315], %291 {strides = array<i32>} : memref<256x288xbf16, #tpu.memory_space<vmem>>, vector<64x32xbf16>,
    %c0_316 = arith.constant 0 : index
    %c2_317 = arith.constant 2 : index
    %c1_318 = arith.constant 1 : index
    %c0_319 = arith.constant 0 : index
    %293 = vector.load %arg13[%c0_316, %c2_317, %c1_318, %c0_319] : memref<4x10x10x32xf32, #tpu.memory_space<vmem>>, vector<1x8x8x32xf32>
    %294 = vector.shape_cast %293 : vector<1x8x8x32xf32> to vector<8x8x32xf32>
    %295 = vector.shape_cast %294 : vector<8x8x32xf32> to vector<64x32xf32>
    %296 = arith.truncf %295 : vector<64x32xf32> to vector<64x32xbf16>
    %c128_320 = arith.constant 128 : index
    %c224_321 = arith.constant 224 : index
    %297 = vector.load %arg14[%c128_320, %c224_321] : memref<256x288xbf16, #tpu.memory_space<vmem>>, vector<64x32xbf16>
    tpu.vector_store %arg14[%c128_320, %c224_321], %296 {strides = array<i32>} : memref<256x288xbf16, #tpu.memory_space<vmem>>, vector<64x32xbf16>,
    %c1_322 = arith.constant 1 : index
    %c2_323 = arith.constant 2 : index
    %c1_324 = arith.constant 1 : index
    %c0_325 = arith.constant 0 : index
    %298 = vector.load %arg13[%c1_322, %c2_323, %c1_324, %c0_325] : memref<4x10x10x32xf32, #tpu.memory_space<vmem>>, vector<1x8x8x32xf32>
    %299 = vector.shape_cast %298 : vector<1x8x8x32xf32> to vector<8x8x32xf32>
    %300 = vector.shape_cast %299 : vector<8x8x32xf32> to vector<64x32xf32>
    %301 = arith.truncf %300 : vector<64x32xf32> to vector<64x32xbf16>
    %c128_326 = arith.constant 128 : index
    %c256_327 = arith.constant 256 : index
    %302 = vector.load %arg14[%c128_326, %c256_327] : memref<256x288xbf16, #tpu.memory_space<vmem>>, vector<64x32xbf16>
    tpu.vector_store %arg14[%c128_326, %c256_327], %301 {strides = array<i32>} : memref<256x288xbf16, #tpu.memory_space<vmem>>, vector<64x32xbf16>,
    %c0_328 = arith.constant 0 : index
    %c1_329 = arith.constant 1 : index
    %c1_330 = arith.constant 1 : index
    %c0_331 = arith.constant 0 : index
    %303 = vector.load %arg13[%c0_328, %c1_329, %c1_330, %c0_331] : memref<4x10x10x32xf32, #tpu.memory_space<vmem>>, vector<1x8x8x32xf32>
    %304 = vector.shape_cast %303 : vector<1x8x8x32xf32> to vector<8x8x32xf32>
    %305 = vector.shape_cast %304 : vector<8x8x32xf32> to vector<64x32xf32>
    %306 = arith.truncf %305 : vector<64x32xf32> to vector<64x32xbf16>
    %c192_332 = arith.constant 192 : index
    %c0_333 = arith.constant 0 : index
    %307 = vector.load %arg14[%c192_332, %c0_333] : memref<256x288xbf16, #tpu.memory_space<vmem>>, vector<64x32xbf16>
    tpu.vector_store %arg14[%c192_332, %c0_333], %306 {strides = array<i32>} : memref<256x288xbf16, #tpu.memory_space<vmem>>, vector<64x32xbf16>,
    %c1_334 = arith.constant 1 : index
    %c1_335 = arith.constant 1 : index
    %c1_336 = arith.constant 1 : index
    %c0_337 = arith.constant 0 : index
    %308 = vector.load %arg13[%c1_334, %c1_335, %c1_336, %c0_337] : memref<4x10x10x32xf32, #tpu.memory_space<vmem>>, vector<1x8x8x32xf32>
    %309 = vector.shape_cast %308 : vector<1x8x8x32xf32> to vector<8x8x32xf32>
    %310 = vector.shape_cast %309 : vector<8x8x32xf32> to vector<64x32xf32>
    %311 = arith.truncf %310 : vector<64x32xf32> to vector<64x32xbf16>
    %c192_338 = arith.constant 192 : index
    %c32_339 = arith.constant 32 : index
    %312 = vector.load %arg14[%c192_338, %c32_339] : memref<256x288xbf16, #tpu.memory_space<vmem>>, vector<64x32xbf16>
    tpu.vector_store %arg14[%c192_338, %c32_339], %311 {strides = array<i32>} : memref<256x288xbf16, #tpu.memory_space<vmem>>, vector<64x32xbf16>,
    %c0_340 = arith.constant 0 : index
    %c1_341 = arith.constant 1 : index
    %c2_342 = arith.constant 2 : index
    %c0_343 = arith.constant 0 : index
    %313 = vector.load %arg13[%c0_340, %c1_341, %c2_342, %c0_343] : memref<4x10x10x32xf32, #tpu.memory_space<vmem>>, vector<1x8x8x32xf32>
    %314 = vector.shape_cast %313 : vector<1x8x8x32xf32> to vector<8x8x32xf32>
    %315 = vector.shape_cast %314 : vector<8x8x32xf32> to vector<64x32xf32>
    %316 = arith.truncf %315 : vector<64x32xf32> to vector<64x32xbf16>
    %c192_344 = arith.constant 192 : index
    %c64_345 = arith.constant 64 : index
    %317 = vector.load %arg14[%c192_344, %c64_345] : memref<256x288xbf16, #tpu.memory_space<vmem>>, vector<64x32xbf16>
    tpu.vector_store %arg14[%c192_344, %c64_345], %316 {strides = array<i32>} : memref<256x288xbf16, #tpu.memory_space<vmem>>, vector<64x32xbf16>,
    %c2_346 = arith.constant 2 : index
    %c1_347 = arith.constant 1 : index
    %c1_348 = arith.constant 1 : index
    %c0_349 = arith.constant 0 : index
    %318 = vector.load %arg13[%c2_346, %c1_347, %c1_348, %c0_349] : memref<4x10x10x32xf32, #tpu.memory_space<vmem>>, vector<1x8x8x32xf32>
    %319 = vector.shape_cast %318 : vector<1x8x8x32xf32> to vector<8x8x32xf32>
    %320 = vector.shape_cast %319 : vector<8x8x32xf32> to vector<64x32xf32>
    %321 = arith.truncf %320 : vector<64x32xf32> to vector<64x32xbf16>
    %c192_350 = arith.constant 192 : index
    %c96_351 = arith.constant 96 : index
    %322 = vector.load %arg14[%c192_350, %c96_351] : memref<256x288xbf16, #tpu.memory_space<vmem>>, vector<64x32xbf16>
    tpu.vector_store %arg14[%c192_350, %c96_351], %321 {strides = array<i32>} : memref<256x288xbf16, #tpu.memory_space<vmem>>, vector<64x32xbf16>,
    %c3_352 = arith.constant 3 : index
    %c1_353 = arith.constant 1 : index
    %c1_354 = arith.constant 1 : index
    %c0_355 = arith.constant 0 : index
    %323 = vector.load %arg13[%c3_352, %c1_353, %c1_354, %c0_355] : memref<4x10x10x32xf32, #tpu.memory_space<vmem>>, vector<1x8x8x32xf32>
    %324 = vector.shape_cast %323 : vector<1x8x8x32xf32> to vector<8x8x32xf32>
    %325 = vector.shape_cast %324 : vector<8x8x32xf32> to vector<64x32xf32>
    %326 = arith.truncf %325 : vector<64x32xf32> to vector<64x32xbf16>
    %c192_356 = arith.constant 192 : index
    %c128_357 = arith.constant 128 : index
    %327 = vector.load %arg14[%c192_356, %c128_357] : memref<256x288xbf16, #tpu.memory_space<vmem>>, vector<64x32xbf16>
    tpu.vector_store %arg14[%c192_356, %c128_357], %326 {strides = array<i32>} : memref<256x288xbf16, #tpu.memory_space<vmem>>, vector<64x32xbf16>,
    %c2_358 = arith.constant 2 : index
    %c1_359 = arith.constant 1 : index
    %c2_360 = arith.constant 2 : index
    %c0_361 = arith.constant 0 : index
    %328 = vector.load %arg13[%c2_358, %c1_359, %c2_360, %c0_361] : memref<4x10x10x32xf32, #tpu.memory_space<vmem>>, vector<1x8x8x32xf32>
    %329 = vector.shape_cast %328 : vector<1x8x8x32xf32> to vector<8x8x32xf32>
    %330 = vector.shape_cast %329 : vector<8x8x32xf32> to vector<64x32xf32>
    %331 = arith.truncf %330 : vector<64x32xf32> to vector<64x32xbf16>
    %c192_362 = arith.constant 192 : index
    %c160_363 = arith.constant 160 : index
    %332 = vector.load %arg14[%c192_362, %c160_363] : memref<256x288xbf16, #tpu.memory_space<vmem>>, vector<64x32xbf16>
    tpu.vector_store %arg14[%c192_362, %c160_363], %331 {strides = array<i32>} : memref<256x288xbf16, #tpu.memory_space<vmem>>, vector<64x32xbf16>,
    %c0_364 = arith.constant 0 : index
    %c2_365 = arith.constant 2 : index
    %c1_366 = arith.constant 1 : index
    %c0_367 = arith.constant 0 : index
    %333 = vector.load %arg13[%c0_364, %c2_365, %c1_366, %c0_367] : memref<4x10x10x32xf32, #tpu.memory_space<vmem>>, vector<1x8x8x32xf32>
    %334 = vector.shape_cast %333 : vector<1x8x8x32xf32> to vector<8x8x32xf32>
    %335 = vector.shape_cast %334 : vector<8x8x32xf32> to vector<64x32xf32>
    %336 = arith.truncf %335 : vector<64x32xf32> to vector<64x32xbf16>
    %c192_368 = arith.constant 192 : index
    %c192_369 = arith.constant 192 : index
    %337 = vector.load %arg14[%c192_368, %c192_369] : memref<256x288xbf16, #tpu.memory_space<vmem>>, vector<64x32xbf16>
    tpu.vector_store %arg14[%c192_368, %c192_369], %336 {strides = array<i32>} : memref<256x288xbf16, #tpu.memory_space<vmem>>, vector<64x32xbf16>,
    %c1_370 = arith.constant 1 : index
    %c2_371 = arith.constant 2 : index
    %c1_372 = arith.constant 1 : index
    %c0_373 = arith.constant 0 : index
    %338 = vector.load %arg13[%c1_370, %c2_371, %c1_372, %c0_373] : memref<4x10x10x32xf32, #tpu.memory_space<vmem>>, vector<1x8x8x32xf32>
    %339 = vector.shape_cast %338 : vector<1x8x8x32xf32> to vector<8x8x32xf32>
    %340 = vector.shape_cast %339 : vector<8x8x32xf32> to vector<64x32xf32>
    %341 = arith.truncf %340 : vector<64x32xf32> to vector<64x32xbf16>
    %c192_374 = arith.constant 192 : index
    %c224_375 = arith.constant 224 : index
    %342 = vector.load %arg14[%c192_374, %c224_375] : memref<256x288xbf16, #tpu.memory_space<vmem>>, vector<64x32xbf16>
    tpu.vector_store %arg14[%c192_374, %c224_375], %341 {strides = array<i32>} : memref<256x288xbf16, #tpu.memory_space<vmem>>, vector<64x32xbf16>,
    %c0_376 = arith.constant 0 : index
    %c2_377 = arith.constant 2 : index
    %c2_378 = arith.constant 2 : index
    %c0_379 = arith.constant 0 : index
    %343 = vector.load %arg13[%c0_376, %c2_377, %c2_378, %c0_379] : memref<4x10x10x32xf32, #tpu.memory_space<vmem>>, vector<1x8x8x32xf32>
    %344 = vector.shape_cast %343 : vector<1x8x8x32xf32> to vector<8x8x32xf32>
    %345 = vector.shape_cast %344 : vector<8x8x32xf32> to vector<64x32xf32>
    %346 = arith.truncf %345 : vector<64x32xf32> to vector<64x32xbf16>
    %c192_380 = arith.constant 192 : index
    %c256_381 = arith.constant 256 : index
    %347 = vector.load %arg14[%c192_380, %c256_381] : memref<256x288xbf16, #tpu.memory_space<vmem>>, vector<64x32xbf16>
    tpu.vector_store %arg14[%c192_380, %c256_381], %346 {strides = array<i32>} : memref<256x288xbf16, #tpu.memory_space<vmem>>, vector<64x32xbf16>,
    %c0_382 = arith.constant 0 : index
    %c0_383 = arith.constant 0 : index
    %348 = vector.load %arg14[%c0_382, %c0_383] : memref<256x288xbf16, #tpu.memory_space<vmem>>, vector<256x288xbf16>
    %c0_384 = arith.constant 0 : index
    %c0_385 = arith.constant 0 : index
    %349 = vector.load %arg6[%c0_384, %c0_385] : memref<288x32xbf16, #tpu.memory_space<vmem>>, vector<288x32xbf16>
    %cst_386 = arith.constant dense<0.000000e+00> : vector<256x32xf32>
    %350 = tpu.matmul %348, %349, %cst_386 {dimension_numbers = #tpu.dot_dimension_numbers<[1], [0], [0], [1], [0, 0, 1, 1], [], []>} : vector<256x288xbf16>, vector<288x32xbf16>, vector<256x32xf32> -> vector<256x32xf32>
    %c0_387 = arith.constant 0 : index
    %c0_388 = arith.constant 0 : index
    %351 = vector.load %arg7[%c0_387, %c0_388] : memref<1x32xf32, #tpu.memory_space<vmem>>, vector<1x32xf32>
    %352 = vector.shape_cast %351 : vector<1x32xf32> to vector<32xf32>
    %353 = vector.shape_cast %352 : vector<32xf32> to vector<1x32xf32>
    %354 = vector.broadcast %353 : vector<1x32xf32> to vector<256x32xf32>
    %355 = arith.addf %350, %354 : vector<256x32xf32>
    %356 = arith.negf %355 : vector<256x32xf32>
    %357 = math.exp %356 : vector<256x32xf32>
    %cst_389 = arith.constant 1.000000e+00 : f32
    %358 = vector.broadcast %cst_389 : f32 to vector<256x32xf32>
    %359 = arith.addf %358, %357 : vector<256x32xf32>
    %360 = arith.divf %358, %359 : vector<256x32xf32>
    %361 = arith.mulf %355, %360 : vector<256x32xf32>
    %362 = arith.truncf %361 : vector<256x32xf32> to vector<256x32xbf16>
    %c0_390 = arith.constant 0 : index
    %c0_391 = arith.constant 0 : index
    %363 = vector.load %arg8[%c0_390, %c0_391] : memref<32x8xbf16, #tpu.memory_space<vmem>>, vector<32x8xbf16>
    %cst_392 = arith.constant dense<0.000000e+00> : vector<256x8xf32>
    %364 = tpu.matmul %362, %363, %cst_392 {dimension_numbers = #tpu.dot_dimension_numbers<[1], [0], [0], [1], [0, 0, 1, 1], [], []>} : vector<256x32xbf16>, vector<32x8xbf16>, vector<256x8xf32> -> vector<256x8xf32>
    %c0_393 = arith.constant 0 : index
    %c0_394 = arith.constant 0 : index
    %365 = vector.load %arg9[%c0_393, %c0_394] : memref<1x8xf32, #tpu.memory_space<vmem>>, vector<1x8xf32>
    %366 = vector.shape_cast %365 : vector<1x8xf32> to vector<8xf32>
    %367 = vector.shape_cast %366 : vector<8xf32> to vector<1x8xf32>
    %368 = vector.broadcast %367 : vector<1x8xf32> to vector<256x8xf32>
    %369 = arith.addf %364, %368 : vector<256x8xf32>
    %370 = arith.negf %369 : vector<256x8xf32>
    %371 = math.exp %370 : vector<256x8xf32>
    %cst_395 = arith.constant 1.000000e+00 : f32
    %372 = vector.broadcast %cst_395 : f32 to vector<256x8xf32>
    %373 = arith.addf %372, %371 : vector<256x8xf32>
    %374 = arith.divf %372, %373 : vector<256x8xf32>
    %375 = arith.mulf %369, %374 : vector<256x8xf32>
    %376 = vector.extract_strided_slice %375 {offsets = [0, 0], sizes = [64, 8], strides = [1, 1]} : vector<256x8xf32> to vector<64x8xf32>
    %377 = vector.shape_cast %376 : vector<64x8xf32> to vector<8x8x8xf32>
    %c0_396 = arith.constant 0 : index
    %c0_397 = arith.constant 0 : index
    %c0_398 = arith.constant 0 : index
    %c0_399 = arith.constant 0 : index
    %378 = vector.load %arg10[%c0_396, %c0_397, %c0_398, %c0_399] : memref<1x8x8x32xf32, #tpu.memory_space<vmem>>, vector<1x8x8x8xf32>
    %379 = vector.shape_cast %378 : vector<1x8x8x8xf32> to vector<8x8x8xf32>
    %380 = vector.shape_cast %377 : vector<8x8x8xf32> to vector<1x8x8x8xf32>
    tpu.vector_store %arg10[%c0_396, %c0_397, %c0_398, %c0_399], %380 {strides = array<i32>} : memref<1x8x8x32xf32, #tpu.memory_space<vmem>>, vector<1x8x8x8xf32>,
    %381 = vector.extract_strided_slice %375 {offsets = [64, 0], sizes = [64, 8], strides = [1, 1]} : vector<256x8xf32> to vector<64x8xf32>
    %382 = vector.shape_cast %381 : vector<64x8xf32> to vector<8x8x8xf32>
    %c0_400 = arith.constant 0 : index
    %c0_401 = arith.constant 0 : index
    %c0_402 = arith.constant 0 : index
    %c8_403 = arith.constant 8 : index
    %383 = vector.load %arg10[%c0_400, %c0_401, %c0_402, %c8_403] : memref<1x8x8x32xf32, #tpu.memory_space<vmem>>, vector<1x8x8x8xf32>
    %384 = vector.shape_cast %383 : vector<1x8x8x8xf32> to vector<8x8x8xf32>
    %385 = vector.shape_cast %382 : vector<8x8x8xf32> to vector<1x8x8x8xf32>
    tpu.vector_store %arg10[%c0_400, %c0_401, %c0_402, %c8_403], %385 {strides = array<i32>} : memref<1x8x8x32xf32, #tpu.memory_space<vmem>>, vector<1x8x8x8xf32>,
    %386 = vector.extract_strided_slice %375 {offsets = [128, 0], sizes = [64, 8], strides = [1, 1]} : vector<256x8xf32> to vector<64x8xf32>
    %387 = vector.shape_cast %386 : vector<64x8xf32> to vector<8x8x8xf32>
    %c0_404 = arith.constant 0 : index
    %c0_405 = arith.constant 0 : index
    %c0_406 = arith.constant 0 : index
    %c16_407 = arith.constant 16 : index
    %388 = vector.load %arg10[%c0_404, %c0_405, %c0_406, %c16_407] : memref<1x8x8x32xf32, #tpu.memory_space<vmem>>, vector<1x8x8x8xf32>
    %389 = vector.shape_cast %388 : vector<1x8x8x8xf32> to vector<8x8x8xf32>
    %390 = vector.shape_cast %387 : vector<8x8x8xf32> to vector<1x8x8x8xf32>
    tpu.vector_store %arg10[%c0_404, %c0_405, %c0_406, %c16_407], %390 {strides = array<i32>} : memref<1x8x8x32xf32, #tpu.memory_space<vmem>>, vector<1x8x8x8xf32>,
    %391 = vector.extract_strided_slice %375 {offsets = [192, 0], sizes = [64, 8], strides = [1, 1]} : vector<256x8xf32> to vector<64x8xf32>
    %392 = vector.shape_cast %391 : vector<64x8xf32> to vector<8x8x8xf32>
    %c0_408 = arith.constant 0 : index
    %c0_409 = arith.constant 0 : index
    %c0_410 = arith.constant 0 : index
    %c24_411 = arith.constant 24 : index
    %393 = vector.load %arg10[%c0_408, %c0_409, %c0_410, %c24_411] : memref<1x8x8x32xf32, #tpu.memory_space<vmem>>, vector<1x8x8x8xf32>
    %394 = vector.shape_cast %393 : vector<1x8x8x8xf32> to vector<8x8x8xf32>
    %395 = vector.shape_cast %392 : vector<8x8x8xf32> to vector<1x8x8x8xf32>
    tpu.vector_store %arg10[%c0_408, %c0_409, %c0_410, %c24_411], %395 {strides = array<i32>} : memref<1x8x8x32xf32, #tpu.memory_space<vmem>>, vector<1x8x8x8xf32>,
    return
  }
  func.func @transform_0(%arg0: i32) -> (i32, i32, i32, i32) {
    %c0_i32 = arith.constant 0 : i32
    %c0_i32_0 = arith.constant 0 : i32
    %c0_i32_1 = arith.constant 0 : i32
    %c0_i32_2 = arith.constant 0 : i32
    return %arg0, %c0_i32, %c0_i32_0, %c0_i32_1 : i32, i32, i32, i32
  }
  func.func @transform_1(%arg0: i32) -> (i32, i32) {
    %c0_i32 = arith.constant 0 : i32
    %c0_i32_0 = arith.constant 0 : i32
    %c0_i32_1 = arith.constant 0 : i32
    return %c0_i32, %c0_i32_0 : i32, i32
  }
  func.func @transform_2(%arg0: i32) -> (i32, i32) {
    %c0_i32 = arith.constant 0 : i32
    %c0_i32_0 = arith.constant 0 : i32
    %c0_i32_1 = arith.constant 0 : i32
    return %c0_i32, %c0_i32_0 : i32, i32
  }
  func.func @transform_3(%arg0: i32) -> (i32, i32) {
    %c0_i32 = arith.constant 0 : i32
    %c0_i32_0 = arith.constant 0 : i32
    %c0_i32_1 = arith.constant 0 : i32
    return %c0_i32, %c0_i32_0 : i32, i32
  }
  func.func @transform_4(%arg0: i32) -> (i32, i32) {
    %c0_i32 = arith.constant 0 : i32
    %c0_i32_0 = arith.constant 0 : i32
    %c0_i32_1 = arith.constant 0 : i32
    return %c0_i32, %c0_i32_0 : i32, i32
  }
  func.func @transform_5(%arg0: i32) -> (i32, i32) {
    %c0_i32 = arith.constant 0 : i32
    %c0_i32_0 = arith.constant 0 : i32
    %c0_i32_1 = arith.constant 0 : i32
    return %c0_i32, %c0_i32_0 : i32, i32
  }
  func.func @transform_6(%arg0: i32) -> (i32, i32) {
    %c0_i32 = arith.constant 0 : i32
    %c0_i32_0 = arith.constant 0 : i32
    %c0_i32_1 = arith.constant 0 : i32
    return %c0_i32, %c0_i32_0 : i32, i32
  }
  func.func @transform_7(%arg0: i32) -> (i32, i32) {
    %c0_i32 = arith.constant 0 : i32
    %c0_i32_0 = arith.constant 0 : i32
    %c0_i32_1 = arith.constant 0 : i32
    return %c0_i32, %c0_i32_0 : i32, i32
  }
  func.func @transform_8(%arg0: i32) -> (i32, i32) {
    %c0_i32 = arith.constant 0 : i32
    %c0_i32_0 = arith.constant 0 : i32
    %c0_i32_1 = arith.constant 0 : i32
    return %c0_i32, %c0_i32_0 : i32, i32
  }
  func.func @transform_9(%arg0: i32) -> (i32, i32, i32, i32) {
    %c0_i32 = arith.constant 0 : i32
    %c0_i32_0 = arith.constant 0 : i32
    %c0_i32_1 = arith.constant 0 : i32
    %c0_i32_2 = arith.constant 0 : i32
    return %arg0, %c0_i32, %c0_i32_0, %c0_i32_1 : i32, i32, i32, i32
  }
}

</mosaic_0001>

<bundles_post_ra>
// kernel: proto_forward.1
= control target key start
LH: loop header
LB: loop body
LE: loop exit
PB: predicated region body
PF: predicated region fallthrough
CT: control target
= control target key end

     0   :  { %s7152_s0 = inlined_call_operand.hbm [shape: f32[2,8,8,8], index: 0, kind: input, shape index: {}]   ;;  %s7153_s1 = inlined_call_operand.hbm [shape: bf16[72,32], index: 1, kind: input, shape index: {}]   ;;  %s7154_s2 = inlined_call_operand.hbm [shape: f32[1,32], index: 2, kind: input, shape index: {}]   ;;  %s7155_s3 = inlined_call_operand.hbm [shape: bf16[32,128], index: 3, kind: input, shape index: {}]   ;;  %s7156_s4 = inlined_call_operand.hbm [shape: f32[1,128], index: 4, kind: input, shape index: {}]   ;;  %s7157_s5 = inlined_call_operand.hbm [shape: bf16[288,32], index: 5, kind: input, shape index: {}]   ;;  %s7158_s6 = inlined_call_operand.hbm [shape: f32[1,32], index: 6, kind: input, shape index: {}]   ;;  %s7159_s7 = inlined_call_operand.hbm [shape: bf16[32,8], index: 7, kind: input, shape index: {}]   ;;  %s7160_s8 = inlined_call_operand.hbm [shape: f32[1,8], index: 8, kind: input, shape index: {}]   ;;  %s7161_s9 = inlined_call_operand.hbm [shape: f32[2,8,8,32], index: 9, kind: output, shape index: {}]  }
   0x1   :  { %7168 = sst [smem:[#allocation30_spill]] %s7153_s1 }
   0x2   :  { %7169 = sst [smem:[#allocation31_spill]] %s7161_s9 }
   0x3   :  { %14 = vsyncpa [#allocation7], 0 }
   0x4   :  { %16 = vsyncpa [#allocation7 + $0x1], 0 }
   0x5   :  { %17 = vsyncpa [#allocation10], 0 }
   0x6   :  { %18 = vsyncpa [#allocation13], 0 }
   0x7   :  { %19 = vsyncpa [#allocation16], 0 }
   0x8   :  { %20 = vsyncpa [#allocation19], 0 }
   0x9   :  { %21 = vsyncpa [#allocation8], 0 }
   0xa   :  { %23 = vsyncpa [#allocation8 + $0x1], 0  ;;  %s5391_s30 = smov 0   ;;  %s5393_s10 = smov 0  }
   0xb   :  { %s5395_s11 = smov 0   ;;  %s5397_s12 = smov 0  }
   0xc LB: > { %s5316_s13 = smov [#allocation9]   ;;  %s5412_s15 = sadd.s32 4294967295, %s5314_s12   ;;  %s5314_s12 = sphi %s5397_s12, %s7204_s12   ;;  %s5310_s11 = sphi %s5395_s11, %s7203_s11   ;;  %s5306_s10 = sphi %s5393_s10, %s7202_s10   ;;  %s5302_s30 = sphi %s5391_s30, %s7201_s30  }
   0xd   : > { %s266_s14 = sshll.u32 %s5316_s13, 4  ;;  %p4003_p0 = scmp.ge.s32.totalorder %s5314_s12, 1  ;;  %s5417_s14 = int_to_ptr.vmem [resolvable:$true] %s266_s14 }
   0xe   : > { %p7163_p1 = scmp.eq.s32.totalorder %s5412_s15, 0  ;;  %p254_p2 = scmp.lt.s32.totalorder %s5314_s12, 3 }
   0xf   : > { %s5317_s17 = smov [#allocation12]   ;;  %s5318_s20 = smov [#allocation15]  }
  0x10   : > { %p5419_p3 = pnand %p4003_p0, %p254_p2  ;;  %s290_s18 = sshll.u32 %s5317_s17, 4  ;;  %s5432_s18 = int_to_ptr.vmem [resolvable:$true] %s290_s18 }
  0x11   : > { %s314_s21 = sshll.u32 %s5318_s20, 4  ;;  %s7172_s1 = sld [smem:[#allocation30_spill]]  ;;  %s5434_s21 = int_to_ptr.vmem [resolvable:$true] %s314_s21 }
  0x12   : > { %s7170_s16 = scalar_select %p5419_p3, 1, 0 }
  0x13   : > { %p4551_p5 = pneg %p5419_p3 }
  0x15   : > { %p5428_p6 = pnand %p4551_p5, %p7163_p1 }
  0x17   : > { %s4978_s24 = scalar_lea.hbm %s7172_s1, 576  ;;  %p5444_p8 = pneg %p5428_p6 }
  0x18   : > { %p4979_p7 = scmp.ne.s32.totalorder %s7172_s1, %s4978_s24  ;;  %p4985_p11 = scmp.lt.u32.totalorder %s4978_s24, %s7172_s1 }
  0x1a   : > { %p4981_p9 = pnand %p5444_p8, %p4979_p7 }
  0x1c   : > { %p4982_p10 = pneg %p4981_p9 }
  0x1e   : > { %p4987_p12 = pnand %p4985_p11, %p4982_p10 }
  0x20   : > { %4990 = shalt.err (!%p4987_p12)
}
  0x21   : > { %s4991_s13 = scalar_lea.vmem %s5417_s14, 576  ;;  %p4999_p5 = scmp.lt.s32.totalorder %s5417_s14, %s5417_s14 }
  0x22   : > { %p4992_p13 = scmp.ne.s32.totalorder %s5417_s14, %s4991_s13  ;;  %p5000_p4 = scmp.lt.s32.totalorder %s4991_s13, %s4991_s13 }
  0x24   : > { %p4994_p0 = pnand %p4992_p13, %p5444_p8  ;;  %p5001_p7 = por %p5000_p4, %p4999_p5 }
  0x26   : > { %p4995_p2 = pneg %p4994_p0 }
  0x28   : > { %p5002_p9 = pnand %p5001_p7, %p4995_p2 }
  0x2a   : > { %5005 = shalt.err (!%p5002_p9)
}
  0x2b   : > { %s5319_s17 = smov 64   ;;  %s5320_s20 = smov 4  }
  0x2c   : > { %4554 = dma.hbm_to_vmem [thread:$0]  (!%p5428_p6), %s7172_s1, 576, %s5417_s14, [#allocation10], %s5319_s17, %s5319_s17, %s5320_s20  }
  0x2d   : > { %s5006_s26 = scalar_lea.hbm %s7155_s3, 256 }
  0x2e   : > { %p5007_p4 = scmp.ne.s32.totalorder %s7155_s3, %s5006_s26  ;;  %p5013_p12 = scmp.lt.u32.totalorder %s5006_s26, %s7155_s3 }
  0x30   : > { %p5009_p10 = pnand %p5007_p4, %p5444_p8 }
  0x32   : > { %p5010_p11 = pneg %p5009_p10 }
  0x34   : > { %p5015_p13 = pnand %p5013_p12, %p5010_p11 }
  0x36   : > { %5018 = shalt.err (!%p5015_p13)
}
  0x37   : > { %s5019_s14 = scalar_lea.vmem %s5432_s18, 256  ;;  %p5027_p7 = scmp.lt.s32.totalorder %s5432_s18, %s5432_s18 }
  0x38   : > { %p5020_p0 = scmp.ne.s32.totalorder %s5432_s18, %s5019_s14  ;;  %p5028_p9 = scmp.lt.s32.totalorder %s5019_s14, %s5019_s14 }
  0x3a   : > { %p5022_p2 = pnand %p5020_p0, %p5444_p8  ;;  %p5029_p4 = por %p5028_p9, %p5027_p7 }
  0x3c   : > { %p5023_p5 = pneg %p5022_p2 }
  0x3e   : > { %p5030_p10 = pnand %p5029_p4, %p5023_p5 }
  0x40   : > { %5033 = shalt.err (!%p5030_p10)
}
  0x41   : > { %4560 = dma.hbm_to_vmem [thread:$0]  (!%p5428_p6), %s7155_s3, 256, %s5432_s18, [#allocation13], %s5319_s17, %s5319_s17, %s5320_s20  }
  0x42   : > { %s5034_s25 = scalar_lea.hbm %s7157_s5, 2304 }
  0x43   : > { %p5035_p11 = scmp.ne.s32.totalorder %s7157_s5, %s5034_s25  ;;  %p5041_p0 = scmp.lt.u32.totalorder %s5034_s25, %s7157_s5 }
  0x45   : > { %p5037_p12 = pnand %p5035_p11, %p5444_p8 }
  0x47   : > { %p5038_p13 = pneg %p5037_p12 }
  0x49   : > { %p5043_p2 = pnand %p5041_p0, %p5038_p13 }
  0x4b   : > { %5046 = shalt.err (!%p5043_p2)
}
  0x4c   : > { %s5047_s18 = scalar_lea.vmem %s5434_s21, 2304  ;;  %p5055_p4 = scmp.lt.s32.totalorder %s5434_s21, %s5434_s21 }
  0x4d   : > { %p5048_p5 = scmp.ne.s32.totalorder %s5434_s21, %s5047_s18  ;;  %p5056_p10 = scmp.lt.s32.totalorder %s5047_s18, %s5047_s18 }
  0x4f   : > { %p5050_p7 = pnand %p5048_p5, %p5444_p8  ;;  %p5057_p11 = por %p5056_p10, %p5055_p4 }
  0x51   : > { %p5051_p9 = pneg %p5050_p7 }
  0x53   : > { %p5058_p12 = pnand %p5057_p11, %p5051_p9 }
  0x55   : > { %5061 = shalt.err (!%p5058_p12)
}
  0x56   : > { %4566 = dma.hbm_to_vmem [thread:$0]  (!%p5428_p6), %s7157_s5, 2304, %s5434_s21, [#allocation16], %s5319_s17, %s5319_s17, %s5320_s20  }
  0x57   : > { %s5321_s22 = smov [#allocation18]   ;;  %s5322_s24 = smov [#allocation11]  }
  0x58   : > { %s338_s23 = sshll.u32 %s5321_s22, 4  ;;  %s280_s25 = sshll.u32 %s5322_s24, 4  ;;  %s339_s23 = int_to_ptr.vmem [resolvable:$true] %s338_s23  ;;  %s281_s25 = int_to_ptr.vmem [resolvable:$true] %s280_s25 }
  0x59   : > { %s5062_s29 = scalar_lea.hbm %s7159_s7, 256 }
  0x5a   : > { %p5063_p13 = scmp.ne.s32.totalorder %s7159_s7, %s5062_s29  ;;  %p5069_p5 = scmp.lt.u32.totalorder %s5062_s29, %s7159_s7 }
  0x5c   : > { %p5065_p0 = pnand %p5063_p13, %p5444_p8 }
  0x5e   : > { %p5066_p2 = pneg %p5065_p0 }
  0x60   : > { %p5071_p7 = pnand %p5069_p5, %p5066_p2 }
  0x62   : > { %5074 = shalt.err (!%p5071_p7)
}
  0x63   : > { %s5075_s21 = scalar_lea.vmem %s339_s23, 256  ;;  %p5083_p11 = scmp.lt.s32.totalorder %s339_s23, %s339_s23 }
  0x64   : > { %p5076_p9 = scmp.ne.s32.totalorder %s339_s23, %s5075_s21  ;;  %p5084_p12 = scmp.lt.s32.totalorder %s5075_s21, %s5075_s21 }
  0x66   : > { %p5078_p4 = pnand %p5076_p9, %p5444_p8  ;;  %p5085_p1 = por %p5084_p12, %p5083_p11 }
  0x68   : > { %p5079_p10 = pneg %p5078_p4 }
  0x6a   : > { %p5086_p3 = pnand %p5085_p1, %p5079_p10 }
  0x6c   : > { %5089 = shalt.err (!%p5086_p3)
}
  0x6d   : > { %4572 = dma.hbm_to_vmem [thread:$0]  (!%p5428_p6), %s7159_s7, 256, %s339_s23, [#allocation19], %s5319_s17, %s5319_s17, %s5320_s20  }
  0x6e   : > { %s5090_s26 = scalar_lea.hbm %s7154_s2, 16 }
  0x6f   : > { %p5091_p1 = scmp.ne.s32.totalorder %s7154_s2, %s5090_s26  ;;  %p5097_p0 = scmp.lt.u32.totalorder %s5090_s26, %s7154_s2 }
  0x71   : > { %p5093_p3 = pnand %p5091_p1, %p5444_p8 }
  0x73   : > { %p5094_p13 = pneg %p5093_p3 }
  0x75   : > { %p5099_p2 = pnand %p5097_p0, %p5094_p13 }
  0x77   : > { %5102 = shalt.err (!%p5099_p2)
}
  0x78   : > { %s5103_s14 = scalar_lea.vmem %s281_s25, 16  ;;  %s5110_s17 = scalar_lea.vmem %s281_s25, 32 }
  0x79   : > { %p5104_p5 = scmp.ne.s32.totalorder %s281_s25, %s5103_s14  ;;  %p5111_p4 = scmp.lt.s32.totalorder %s281_s25, %s281_s25 }
  0x7a   : > { %p5112_p10 = scmp.lt.s32.totalorder %s5110_s17, %s5103_s14 }
  0x7b   : > { %p5106_p7 = pnand %p5104_p5, %p5444_p8 }
  0x7c   : > { %p5113_p11 = por %p5112_p10, %p5111_p4 }
  0x7d   : > { %p5107_p9 = pneg %p5106_p7 }
  0x7f   : > { %p5114_p12 = pnand %p5113_p11, %p5107_p9 }
  0x81   : > { %5117 = shalt.err (!%p5114_p12)
}
  0x82   : > { %4557 = dma.hbm_to_vmem [thread:$0]  (!%p5428_p6), %s7154_s2, 16, %s281_s25, [#allocation10]  }
  0x83   : > { %s5323_s21 = smov [#allocation14]   ;;  %s5324_s9 = smov [#allocation17]  }
  0x84   : > { %s304_s1 = sshll.u32 %s5323_s21, 4  ;;  %s328_s22 = sshll.u32 %s5324_s9, 4  ;;  %s305_s1 = int_to_ptr.vmem [resolvable:$true] %s304_s1  ;;  %s329_s22 = int_to_ptr.vmem [resolvable:$true] %s328_s22 }
  0x85   : > { %s5118_s28 = scalar_lea.hbm %s7156_s4, 16 }
  0x86   : > { %p5119_p1 = scmp.ne.s32.totalorder %s7156_s4, %s5118_s28  ;;  %p5125_p0 = scmp.lt.u32.totalorder %s5118_s28, %s7156_s4 }
  0x88   : > { %p5121_p3 = pnand %p5119_p1, %p5444_p8 }
  0x8a   : > { %p5122_p13 = pneg %p5121_p3 }
  0x8c   : > { %p5127_p2 = pnand %p5125_p0, %p5122_p13 }
  0x8e   : > { %5130 = shalt.err (!%p5127_p2)
}
  0x8f   : > { %s5131_s25 = scalar_lea.vmem %s305_s1, 16  ;;  %s5138_s17 = scalar_lea.vmem %s305_s1, 32 }
  0x90   : > { %p5132_p5 = scmp.ne.s32.totalorder %s305_s1, %s5131_s25  ;;  %p5139_p4 = scmp.lt.s32.totalorder %s305_s1, %s305_s1 }
  0x91   : > { %p5140_p10 = scmp.lt.s32.totalorder %s5138_s17, %s5131_s25 }
  0x92   : > { %p5134_p7 = pnand %p5132_p5, %p5444_p8 }
  0x93   : > { %p5141_p11 = por %p5140_p10, %p5139_p4 }
  0x94   : > { %p5135_p9 = pneg %p5134_p7 }
  0x96   : > { %p5142_p12 = pnand %p5141_p11, %p5135_p9 }
  0x98   : > { %5145 = shalt.err (!%p5142_p12)
}
  0x99   : > { %4563 = dma.hbm_to_vmem [thread:$0]  (!%p5428_p6), %s7156_s4, 16, %s305_s1, [#allocation13]  }
  0x9a   : > { %s5146_s24 = scalar_lea.hbm %s7158_s6, 16 }
  0x9b   : > { %p5147_p1 = scmp.ne.s32.totalorder %s7158_s6, %s5146_s24  ;;  %p5153_p0 = scmp.lt.u32.totalorder %s5146_s24, %s7158_s6 }
  0x9d   : > { %p5149_p3 = pnand %p5147_p1, %p5444_p8 }
  0x9f   : > { %p5150_p13 = pneg %p5149_p3 }
  0xa1   : > { %p5155_p2 = pnand %p5153_p0, %p5150_p13 }
  0xa3   : > { %5158 = shalt.err (!%p5155_p2)
}
  0xa4   : > { %s5159_s18 = scalar_lea.vmem %s329_s22, 16  ;;  %s5166_s1 = scalar_lea.vmem %s329_s22, 32 }
  0xa5   : > { %p5160_p5 = scmp.ne.s32.totalorder %s329_s22, %s5159_s18  ;;  %p5167_p4 = scmp.lt.s32.totalorder %s329_s22, %s329_s22 }
  0xa6   : > { %p5168_p10 = scmp.lt.s32.totalorder %s5166_s1, %s5159_s18 }
  0xa7   : > { %p5162_p7 = pnand %p5160_p5, %p5444_p8 }
  0xa8   : > { %p5169_p11 = por %p5168_p10, %p5167_p4 }
  0xa9   : > { %p5163_p9 = pneg %p5162_p7 }
  0xab   : > { %p5170_p12 = pnand %p5169_p11, %p5163_p9 }
  0xad   : > { %5173 = shalt.err (!%p5170_p12)
}
  0xae   : > { %4569 = dma.hbm_to_vmem [thread:$0]  (!%p5428_p6), %s7158_s6, 16, %s329_s22, [#allocation16]  }
  0xaf   : > { %s5325_s17 = smov [#allocation20]   ;;  %s5174_s9 = scalar_lea.hbm %s7160_s8, 16 }
  0xb0   : > { %s352_s20 = sshll.u32 %s5325_s17, 4  ;;  %p5175_p1 = scmp.ne.s32.totalorder %s7160_s8, %s5174_s9  ;;  %s353_s20 = int_to_ptr.vmem [resolvable:$true] %s352_s20 }
  0xb1   : > { %p5181_p0 = scmp.lt.u32.totalorder %s5174_s9, %s7160_s8 }
  0xb2   : > { %p5177_p3 = pnand %p5175_p1, %p5444_p8 }
  0xb4   : > { %p5178_p13 = pneg %p5177_p3 }
  0xb6   : > { %p5183_p2 = pnand %p5181_p0, %p5178_p13 }
  0xb8   : > { %5186 = shalt.err (!%p5183_p2)
}
  0xb9   : > { %s5187_s22 = scalar_lea.vmem %s353_s20, 16  ;;  %s5194_s13 = scalar_lea.vmem %s353_s20, 32 }
  0xba   : > { %p5188_p5 = scmp.ne.s32.totalorder %s353_s20, %s5187_s22  ;;  %p5195_p4 = scmp.lt.s32.totalorder %s353_s20, %s353_s20 }
  0xbb   : > { %p5196_p10 = scmp.lt.s32.totalorder %s5194_s13, %s5187_s22 }
  0xbc   : > { %p5190_p7 = pnand %p5188_p5, %p5444_p8 }
  0xbd   : > { %p5197_p11 = por %p5196_p10, %p5195_p4 }
  0xbe   : > { %p5191_p9 = pneg %p5190_p7 }
  0xc0   : > { %p5198_p12 = pnand %p5197_p11, %p5191_p9 }
  0xc2   : > { %5201 = shalt.err (!%p5198_p12)
}
  0xc3   : > { %4575 = dma.hbm_to_vmem [thread:$0]  (!%p5428_p6), %s7160_s8, 16, %s353_s20, [#allocation19]  }
  0xc4   : > { %s4002_s27 = sadd.s32 4294967294, %s5314_s12   ;;  %s5615_s19 = sadd.s32 1, %s5314_s12  }
  0xc5   : > { %s33_s14 = ssub.s32 %s5314_s12, %s5615_s19  ;;  %s36_s25 = sadd.s32 1, %s5310_s11 }
  0xc6   : > { %p34_p8 = scmp.eq.s32.totalorder %s33_s14, 0  ;;  %p43_p1 = scmp.ne.s32.totalorder %s5310_s11, %s5306_s10 }
  0xc7   : > { %p44_p3 = scmp.eq.s32.totalorder %s5314_s12, 0  ;;  %p49_p13 = scmp.ne.s32.totalorder %s5306_s10, %s5302_s30 }
  0xc8   : > { %s5626_s17 = scalar_select %p34_p8, %s5310_s11, %s36_s25  }
  0xc9   : > { %p5628_p0 = por %p44_p3, %p43_p1  ;;  %p7175_p2 = scmp.eq.s32.totalorder %s5412_s15, 0 }
  0xca   : > { %p241_p5 = scmp.eq.s32.totalorder %s5412_s15, 1  ;;  %p247_p7 = scmp.eq.s32.totalorder %s4002_s27, 1 }
  0xcb   : > { %p5634_p6 = por %p7175_p2, %p49_p13  ;;  %p4592_p9 = scmp.lt.s32.totalorder %s5314_s12, 2 }
  0xcc   : > { %s363_s21 = sand.u32 1, %s5310_s11   ;;  %p5641_p4 = por %p241_p5, %p43_p1 }
  0xcd   : > { %p5645_p10 = por %p247_p7, %p49_p13  ;;  %s4013_s26 = sshll.u32 %s363_s21, 6 }
  0xce   : > { %s7177_s9 = scalar_select %p5641_p4, 1, 0 }
  0xcf   : > { %s7178_s24 = scalar_select %p5645_p10, 1, 0 }
  0xd0   : > { %s4193_s28 = sshll.u32 %s5314_s12, 10  ;;  %s367_s18 = scalar_lea.vmem [#allocation6], %s4013_s26 }
  0xd1   : > { %s5653_s13 = scalar_lea.hbm %s7152_s0, %s4193_s28  ;;  %s374_s1 = sshll.u32 %s367_s18, 4  ;;  %s5655_s1 = int_to_ptr.vmem [resolvable:$true] %s374_s1 }
  0xd2   : > { %p5659_p11 = pnand %p4592_p9, %p5628_p0  ;;  %s5663_s14 = scalar_lea.sflag [#allocation7], %s363_s21 }
  0xd3   : > { %s5202_s25 = scalar_lea.hbm %s5653_s13, 1024  ;;  %s5207_s23 = scalar_lea.hbm %s7152_s0, 2048 }
  0xd4   : > { %p5203_p12 = scmp.ne.s32.totalorder %s5653_s13, %s5202_s25  ;;  %p5204_p8 = pneg %p5659_p11 }
  0xd5   : > { %p5208_p13 = scmp.lt.u32.totalorder %s5653_s13, %s7152_s0  ;;  %p5209_p0 = scmp.lt.u32.totalorder %s5207_s23, %s5202_s25 }
  0xd6   : > { %p5205_p1 = pnand %p5204_p8, %p5203_p12  ;;  %p5211_p5 = scmp.lt.u32.totalorder %s5202_s25, %s5653_s13 }
  0xd7   : > { %p5210_p2 = por %p5209_p0, %p5208_p13 }
  0xd8   : > { %p5206_p3 = pneg %p5205_p1 }
  0xd9   : > { %p5212_p7 = por %p5211_p5, %p5210_p2 }
  0xdb   : > { %p5213_p9 = pnand %p5212_p7, %p5206_p3 }
  0xdd   : > { %5216 = shalt.err (!%p5213_p9)
}
  0xde   : > { %s5217_s21 = scalar_lea.vmem %s5655_s1, 1024  ;;  %s5326_s18 = smov [#allocation6]  }
  0xdf   : > { %p5218_p12 = scmp.ne.s32.totalorder %s5655_s1, %s5217_s21  ;;  %s5222_s26 = sshll.u32 %s5326_s18, 4  ;;  %s5223_s26 = int_to_ptr.vmem [resolvable:$false] %s5222_s26 }
  0xe0   : > { %s5224_s28 = scalar_lea.vmem %s5223_s26, 2048  ;;  %p5225_p4 = scmp.lt.s32.totalorder %s5655_s1, %s5223_s26 }
  0xe1   : > { %p5220_p1 = pnand %p5218_p12, %p5204_p8  ;;  %p5226_p13 = scmp.lt.s32.totalorder %s5224_s28, %s5217_s21 }
  0xe3   : > { %p5221_p10 = pneg %p5220_p1  ;;  %p5227_p0 = por %p5226_p13, %p5225_p4 }
  0xe5   : > { %p5228_p2 = pnand %p5227_p0, %p5221_p10 }
  0xe7   : > { %5231 = shalt.err (!%p5228_p2)
}
  0xe8   : > { %s5327_s25 = smov 128   ;;  %s5328_s23 = smov 8  }
  0xe9   : > { %4579 = dma.hbm_to_vmem [thread:$0]  (!%p5659_p11), %s5653_s13, 1024, %s5655_s1, %s5663_s14, %s5327_s25, %s5327_s25, %s5328_s23  }
  0xea   : > { %p7180_p8 = scmp.ne.s32.totalorder %s7170_s16, 0 }
  0xec   : > { %386 = sbr.rel (%p7180_p8) target bundleno = 1887 (0x75f), region = 56 }
  0xf3   : > { %s5694_s29 = sand.u32 1, %s5306_s10  }
  0xf4   : > { %s4017_s22 = sshll.u32 %s5694_s29, 6  ;;  %s389_s21 = scalar_lea.sflag [#allocation7], %s5694_s29 }
  0xf5   : > { %s5700_s18 = scalar_lea.vmem [#allocation6], %s4017_s22 }
  0xf6   : > { %5277 = dma.done.wait (%p5634_p6), %s389_s21, 1024  }
  0xf7   : > { %5279 = vsyncadd (%p5634_p6), %s389_s21, 4294966272  ;;  %p7181_p4 = scmp.eq.s32.totalorder %s5412_s15, 0 }
  0xf9   : > { %5281 = dma.done.wait (%p7181_p4), [#allocation10], 592   ;;  %p7182_p10 = pmov %p7181_p4 }
  0xfa   : > { %p7183_p11 = pmov %p7181_p4 }
  0xfb   : > { %5283 = vsyncadd (%p7182_p10), [#allocation10], 4294966704 }
  0xfc   : > { %5285 = dma.done.wait (%p7183_p11), [#allocation13], 272   ;;  %p7184_p3 = pmov %p7181_p4 }
  0xfe   : > { %5287 = vsyncadd (%p7184_p3), [#allocation13], 4294967024  ;;  %p7185_p5 = pmov %p7184_p3 }
  0xff   : > { %p7186_p7 = pmov %p7184_p3 }
 0x100   : > { %5289 = dma.done.wait (%p7185_p5), [#allocation16], 2320  }
 0x101   : > { %5291 = vsyncadd (%p7186_p7), [#allocation16], 4294964976  ;;  %p7187_p6 = pmov %p7184_p3 }
 0x102   : > { %p7188_p9 = pmov %p7184_p3 }
 0x103   : > { %5293 = dma.done.wait (%p7187_p6), [#allocation19], 272  }
 0x104   : > { %5295 = vsyncadd (%p7188_p9), [#allocation19], 4294967024  ;;  %vm488_vm0 = vcmask 261120   ;;  %vm495_vm1 = vcmask 253952   ;;  %vm460_vm2 = vcmask 64512   ;;  %v5329_v0 = vmov 0.0  }
 0x105   : > { %493 = vst.msk [vmem:[#allocation4 + $0x90] sm:$0xff] %vm488_vm0, %v5329_v0  ;;  %520 = vst.msk [vmem:[#allocation4 + $0x130] sm:$0xff] %vm488_vm0, %v5329_v0  ;;  %vm462_vm3 = vcmask 58368   ;;  %vm467_vm4 = vcmask 57344   ;;  %v594_v1 = vld [vmem:[%s5700_s18] sm:$0xff]  ;;  %v595_v2 = vld [vmem:[%s5700_s18 + $0x8] sm:$0xff] }
 0x106   : > { %507 = vst.msk [vmem:[#allocation4 + $0x19] sm:$0x1] %vm495_vm1, %v5329_v0  ;;  %508 = vst.msk [vmem:[#allocation4 + $0x29] sm:$0x1] %vm495_vm1, %v5329_v0  ;;  %v596_v3 = vld [vmem:[%s5700_s18 + $0x10] sm:$0xff]  ;;  %v597_v4 = vld [vmem:[%s5700_s18 + $0x18] sm:$0xff] }
 0x107   : > { %509 = vst.msk [vmem:[#allocation4 + $0x39] sm:$0x1] %vm495_vm1, %v5329_v0  ;;  %510 = vst.msk [vmem:[#allocation4 + $0x49] sm:$0x1] %vm495_vm1, %v5329_v0  ;;  %v598_v5 = vld [vmem:[%s5700_s18 + $0x20] sm:$0xff]  ;;  %v599_v6 = vld [vmem:[%s5700_s18 + $0x28] sm:$0xff] }
 0x108   : > { %511 = vst.msk [vmem:[#allocation4 + $0x59] sm:$0x1] %vm495_vm1, %v5329_v0  ;;  %512 = vst.msk [vmem:[#allocation4 + $0x69] sm:$0x1] %vm495_vm1, %v5329_v0  ;;  %v600_v7 = vld [vmem:[%s5700_s18 + $0x30] sm:$0xff]  ;;  %v601_v8 = vld [vmem:[%s5700_s18 + $0x38] sm:$0xff] }
 0x109   : > { %513 = vst.msk [vmem:[#allocation4 + $0x79] sm:$0x1] %vm495_vm1, %v5329_v0  ;;  %514 = vst.msk [vmem:[#allocation4 + $0x89] sm:$0x1] %vm495_vm1, %v5329_v0  ;;  %s5330_s16 = smov 8   ;;  %s5331_s20 = smov 16  }
 0x10a   : > { %523 = vst.msk [vmem:[#allocation4 + $0xb0] sm:$0x1] %vm495_vm1, %v5329_v0  ;;  %524 = vst.msk [vmem:[#allocation4 + $0xc0] sm:$0x1] %vm495_vm1, %v5329_v0  ;;  %v4657_v36 = vld [vmem:[#allocation9] sm:$0xff]   ;;  %s5332_s13 = smov 24  }
 0x10b   : > { %525 = vst.msk [vmem:[#allocation4 + $0xd0] sm:$0x1] %vm495_vm1, %v5329_v0  ;;  %526 = vst.msk [vmem:[#allocation4 + $0xe0] sm:$0x1] %vm495_vm1, %v5329_v0  ;;  %4376 = vmatprep.subr.bf16.mxu0 %v4657_v36  ;;  %v4658_v40 = vld [vmem:[#allocation9 + $0x8] sm:$0xff]   ;;  %s5333_s1 = smov 32  }
 0x10c   : > { %527 = vst.msk [vmem:[#allocation4 + $0xf0] sm:$0x1] %vm495_vm1, %v5329_v0  ;;  %528 = vst.msk [vmem:[#allocation4 + $0x100] sm:$0x1] %vm495_vm1, %v5329_v0  ;;  %4377 = vmatpush3.bf16.msra.mxu0 %v4657_v36  ;;  %v4659_v43 = vld [vmem:[#allocation9 + $0x10] sm:$0xff]   ;;  %s5334_s27 = smov 40  }
 0x10d   : > { %529 = vst.msk [vmem:[#allocation4 + $0x110] sm:$0x1] %vm495_vm1, %v5329_v0  ;;  %530 = vst.msk [vmem:[#allocation4 + $0x120] sm:$0x1] %vm495_vm1, %v5329_v0  ;;  %4378 = vmatprep.subr.bf16.mxu0 %v4658_v40  ;;  %v4660_v45 = vld [vmem:[#allocation9 + $0x18] sm:$0xff]   ;;  %s5335_s14 = smov 48  }
 0x10e   : > { %543 = vst.msk [vmem:[#allocation4 + $0x140] sm:$0xff] %vm488_vm0, %v5329_v0  ;;  %569 = vst.msk [vmem:[#allocation4 + $0x1e0] sm:$0xff] %vm488_vm0, %v5329_v0  ;;  %v4661_v47 = vld [vmem:[#allocation9 + $0x20] ss:$0 sps:$4 sm:$0xff]   ;;  %vm952_vm5 = vcmask 1043456   ;;  %s5336_s26 = smov 56  }
 0x10f   : > { %559 = vst.msk [vmem:[#allocation4 + $0x159] sm:$0x1] %vm495_vm1, %v5329_v0  ;;  %560 = vst.msk [vmem:[#allocation4 + $0x169] sm:$0x1] %vm495_vm1, %v5329_v0  ;;  %v954_v51 = vsel %vm952_vm5, %v4661_v47, 0  ;;  %s5337_s28 = smov 64  }
 0x110   : > { %561 = vst.msk [vmem:[#allocation4 + $0x179] sm:$0x1] %vm495_vm1, %v5329_v0  ;;  %562 = vst.msk [vmem:[#allocation4 + $0x189] sm:$0x1] %vm495_vm1, %v5329_v0  ;;  %4379 = vmatpush3.bf16.msra.mxu0 %v4658_v40  ;;  %s5338_s25 = smov 96   ;;  %vm655_vm6 = vcmask 130112  }
 0x111   : > { %563 = vst.msk [vmem:[#allocation4 + $0x199] sm:$0x1] %vm495_vm1, %v5329_v0  ;;  %564 = vst.msk [vmem:[#allocation4 + $0x1a9] sm:$0x1] %vm495_vm1, %v5329_v0  ;;  %4380 = vmatprep.subr.bf16.mxu0 %v4659_v43  ;;  %vm688_vm7 = vcmask 195712   ;;  %vm721_vm8 = vcmask 261312  }
 0x112   : > { %565 = vst.msk [vmem:[#allocation4 + $0x1b9] sm:$0x1] %vm495_vm1, %v5329_v0  ;;  %566 = vst.msk [vmem:[#allocation4 + $0x1c9] sm:$0x1] %vm495_vm1, %v5329_v0  ;;  %vm754_vm9 = vcmask 326912   ;;  %vm787_vm10 = vcmask 392512  }
 0x113   : > { %575 = vst.msk [vmem:[#allocation4 + $0x1f0] sm:$0x1] %vm495_vm1, %v5329_v0  ;;  %576 = vst.msk [vmem:[#allocation4 + $0x200] sm:$0x1] %vm495_vm1, %v5329_v0  ;;  %vm821_vm11 = vcmask 458112   ;;  %vm854_vm12 = vcmask 523712  }
 0x114   : > { %577 = vst.msk [vmem:[#allocation4 + $0x210] sm:$0x1] %vm495_vm1, %v5329_v0  ;;  %578 = vst.msk [vmem:[#allocation4 + $0x220] sm:$0x1] %vm495_vm1, %v5329_v0  ;;  %4381 = vmatpush3.bf16.msra.mxu0 %v4659_v43  ;;  %vm887_vm13 = vcmask 589312   ;;  %vm939_vm14 = vcmask 588800  }
 0x115   : > { %579 = vst.msk [vmem:[#allocation4 + $0x230] sm:$0x1] %vm495_vm1, %v5329_v0  ;;  %580 = vst.msk [vmem:[#allocation4 + $0x240] sm:$0x1] %vm495_vm1, %v5329_v0  ;;  %4382 = vmatprep.subr.bf16.mxu0 %v4660_v45  ;;  %vm490_vm15 = vcmask 254976   ;;  %s6921_s23 = scalar_lea.vmem [#allocation21], %s4017_s22 }
 0x116   : > { %581 = vst.msk [vmem:[#allocation4 + $0x250] sm:$0x1] %vm495_vm1, %v5329_v0  ;;  %582 = vst.msk [vmem:[#allocation4 + $0x260] sm:$0x1] %vm495_vm1, %v5329_v0  ;;  %s4194_s22 = sshll.u32 %s5412_s15, 10  ;;  %s3853_s21 = sshll.u32 %s6921_s23, 4  ;;  %s7105_s21 = int_to_ptr.vmem [resolvable:$true] %s3853_s21 }
 0x117   : > { %461 = vst.msk [vmem:[#allocation2] sm:$0xff] %vm460_vm2, %v5329_v0  ;;  %465 = vst.msk [vmem:[#allocation2 + $0x90] sm:$0xff] %vm460_vm2, %v5329_v0  ;;  %s3840_s15 = scalar_lea.sflag [#allocation8], %s5694_s29  ;;  %p7198_p1 = scmp.ne.s32.totalorder %s7177_s9, 0 }
 0x118   : > { %463 = vst.msk [vmem:[#allocation2 + $0x8] sm:$0x3] %vm462_vm3, %v5329_v0  ;;  %466 = vst.msk [vmem:[#allocation2 + $0x98] sm:$0x3] %vm462_vm3, %v5329_v0  ;;  %4383 = vmatpush3.bf16.msra.mxu0 %v4660_v45  ;;  %vm1558_vm3 = vcmask 785920  }
 0x119   : > { %468 = vst.msk [vmem:[#allocation2] sm:$0x1] %vm467_vm4, %v5329_v0  ;;  %469 = vst.msk [vmem:[#allocation2 + $0x10] sm:$0x1] %vm467_vm4, %v5329_v0  ;;  %4514 = vmatprep.subr.msk.bf16.mxu0 %vm952_vm5, %v4661_v47 }
 0x11a   : > { %470 = vst.msk [vmem:[#allocation2 + $0x20] sm:$0x1] %vm467_vm4, %v5329_v0  ;;  %471 = vst.msk [vmem:[#allocation2 + $0x30] sm:$0x1] %vm467_vm4, %v5329_v0 }
 0x11b   : > { %472 = vst.msk [vmem:[#allocation2 + $0x40] sm:$0x1] %vm467_vm4, %v5329_v0  ;;  %473 = vst.msk [vmem:[#allocation2 + $0x50] sm:$0x1] %vm467_vm4, %v5329_v0 }
 0x11c   : > { %474 = vst.msk [vmem:[#allocation2 + $0x60] sm:$0x1] %vm467_vm4, %v5329_v0  ;;  %475 = vst.msk [vmem:[#allocation2 + $0x70] sm:$0x1] %vm467_vm4, %v5329_v0  ;;  %4385 = vmatpush3.bf16.msra.mxu0 %v954_v51 }
 0x11d   : > { %476 = vst.msk [vmem:[#allocation2 + $0x80] sm:$0x1] %vm467_vm4, %v5329_v0  ;;  %479 = vst.msk [vmem:[#allocation2 + $0x19] sm:$0x1] %vm467_vm4, %v5329_v0 }
 0x11e   : > { %480 = vst.msk [vmem:[#allocation2 + $0x29] sm:$0x1] %vm467_vm4, %v5329_v0  ;;  %481 = vst.msk [vmem:[#allocation2 + $0x39] sm:$0x1] %vm467_vm4, %v5329_v0 }
 0x11f   : > { %482 = vst.msk [vmem:[#allocation2 + $0x49] sm:$0x1] %vm467_vm4, %v5329_v0  ;;  %483 = vst.msk [vmem:[#allocation2 + $0x59] sm:$0x1] %vm467_vm4, %v5329_v0  ;;  %v627_v9 = vld [vmem:[#allocation2 + $0x1] sm:$0xff] }
 0x120   : > { %484 = vst.msk [vmem:[#allocation2 + $0x69] sm:$0x1] %vm467_vm4, %v5329_v0  ;;  %485 = vst.msk [vmem:[#allocation2 + $0x79] sm:$0x1] %vm467_vm4, %v5329_v0  ;;  %v611_v11 = vld [vmem:[#allocation2] sm:$0xff] }
 0x121   : > { %486 = vst.msk [vmem:[#allocation2 + $0x89] sm:$0x1] %vm467_vm4, %v5329_v0  ;;  %477 = vst.msk [vmem:[#allocation2 + $0x90] sm:$0x1] %vm467_vm4, %v5329_v0 }
 0x122   : > { %531 = vst.msk [vmem:[#allocation4 + $0x130] sm:$0x1] %vm495_vm1, %v5329_v0  ;;  %574 = vst.msk [vmem:[#allocation4 + $0x1e0] sm:$0x1] %vm495_vm1, %v5329_v0 }
 0x123   : > { %478 = vst.msk [vmem:[#allocation2 + $0x9] sm:$0x1] %vm467_vm4, %v5329_v0  ;;  %487 = vst.msk [vmem:[#allocation2 + $0x99] sm:$0x1] %vm467_vm4, %v5329_v0  ;;  %vm1591_vm4 = vcmask 1048320  }
 0x124   : > { %603 = vst.msk [vmem:[#allocation2 + $0x11] sm:$0xff] %vm460_vm2, %v594_v1  ;;  %604 = vst.msk [vmem:[#allocation2 + $0x21] sm:$0xff] %vm460_vm2, %v595_v2 }
 0x125   : > { %605 = vst.msk [vmem:[#allocation2 + $0x31] sm:$0xff] %vm460_vm2, %v596_v3  ;;  %606 = vst.msk [vmem:[#allocation2 + $0x41] sm:$0xff] %vm460_vm2, %v597_v4 }
 0x126   : > { %607 = vst.msk [vmem:[#allocation2 + $0x51] sm:$0xff] %vm460_vm2, %v598_v5  ;;  %608 = vst.msk [vmem:[#allocation2 + $0x61] sm:$0xff] %vm460_vm2, %v599_v6  ;;  %v833_v5 = vld [vmem:[#allocation2 + $0x91] sm:$0xff] }
 0x127   : > { %609 = vst.msk [vmem:[#allocation2 + $0x71] sm:$0xff] %vm460_vm2, %v600_v7  ;;  %610 = vst.msk [vmem:[#allocation2 + $0x81] sm:$0xff] %vm460_vm2, %v601_v8 }
 0x128   : > { %v800_v3 = vld [vmem:[#allocation2 + $0x90] sm:$0xff]  ;;  %494 = vst.msk [vmem:[#allocation4 + $0x98] sm:$0x3] %vm490_vm15, %v5329_v0  ;;  %521 = vst.msk [vmem:[#allocation4 + $0x138] sm:$0x3] %vm490_vm15, %v5329_v0 }
 0x129   : > { %544 = vst.msk [vmem:[#allocation4 + $0x148] sm:$0x3] %vm490_vm15, %v5329_v0  ;;  %570 = vst.msk [vmem:[#allocation4 + $0x1e8] sm:$0x3] %vm490_vm15, %v5329_v0 }
 0x12a   : > { %v660_v10 = vld [vmem:[#allocation2 + $0x2] sm:$0xff]  ;;  %v866_v7 = vld [vmem:[#allocation2 + $0x92] sm:$0xff]  ;;  %515 = vst.msk [vmem:[#allocation4 + $0x99] sm:$0x1] %vm495_vm1, %v5329_v0  ;;  %558 = vst.msk [vmem:[#allocation4 + $0x149] sm:$0x1] %vm495_vm1, %v5329_v0 }
 0x12b   : > { %v628_v12 = vld [vmem:[#allocation2 + $0x11] sm:$0xff]  ;;  %v629_v14 = vld [vmem:[#allocation2 + $0x21] sm:$0xff]  ;;  %vm1525_vm1 = vcmask 523520  }
 0x12c   : > { %v661_v13 = vld [vmem:[#allocation2 + $0x12] sm:$0xff]  ;;  %v635_v15 = vpack.c.bf16 %v628_v12, %v627_v9  ;;  %v662_v18 = vld [vmem:[#allocation2 + $0x22] sm:$0xff]  ;;  %v734_v38 = vpack.c.bf16 %v629_v14, %v628_v12 }
 0x12d   : > { %v668_v16 = vpack.c.bf16 %v661_v13, %v660_v10  ;;  %v630_v17 = vld [vmem:[#allocation2 + $0x31] sm:$0xff]  ;;  %v694_v22 = vld [vmem:[#allocation2 + $0x20] sm:$0xff]  ;;  %v767_v41 = vpack.c.bf16 %v662_v18, %v661_v13 }
 0x12e   : > { %v663_v19 = vld [vmem:[#allocation2 + $0x32] sm:$0xff]  ;;  %v5860_v20 = vpack.c.bf16 %v630_v17, %v629_v14  ;;  %643 = vrot.lane.b32.xlu0 %v635_v15, %s5330_s16  ;;  %v696_v27 = vld [vmem:[#allocation2 + $0x40] sm:$0xff] }
 0x12f   : > { %v693_v21 = vld [vmem:[#allocation2 + $0x10] sm:$0xff]  ;;  %676 = vrot.lane.b32.xlu1 %v668_v16, %s5331_s20  ;;  %v669_v24 = vpack.c.bf16 %v663_v19, %v662_v18  ;;  %v5869_v30 = vld [vmem:[#allocation2 + $0x60] sm:$0xff] }
 0x130   : > { %v695_v23 = vld [vmem:[#allocation2 + $0x30] sm:$0xff]  ;;  %v619_v26 = vpack.c.bf16 %v693_v21, %v611_v11  ;;  %v701_v32 = vpack.c.bf16 %v694_v22, %v693_v21  ;;  %v729_v34 = vld [vmem:[#allocation2 + $0x41] sm:$0xff] }
 0x131   : > { %v801_v25 = vpack.c.bf16 %v695_v23, %v694_v22  ;;  %v5864_v28 = vld [vmem:[#allocation2 + $0x50] sm:$0xff]  ;;  %v702_v33 = vpack.c.bf16 %v696_v27, %v695_v23  ;;  %v762_v37 = vld [vmem:[#allocation2 + $0x42] sm:$0xff]  ;;  %v735_v39 = vpack.c.bf16 %v729_v34, %v630_v17 }
 0x132   : > { %v802_v29 = vpack.c.bf16 %v5864_v28, %v696_v27  ;;  %623 = vst.msk [vmem:[#allocation3] sm:$0xff] %vm460_vm2, %v619_v26  ;;  %v5871_v31 = vld [vmem:[#allocation2 + $0x70] sm:$0xff]  ;;  %645 = vrot.lane.b32.xlu0 %v5860_v20, %s5330_s16  ;;  %v768_v42 = vpack.c.bf16 %v762_v37, %v663_v19  ;;  %v633_v49 = vld [vmem:[#allocation2 + $0x61] sm:$0xff]  ;;  %v703_v58 = vpack.c.bf16 %v5869_v30, %v5864_v28 }
 0x133   : > { %624 = vst.msk [vmem:[#allocation3 + $0x8] sm:$0xff] %vm460_vm2, %v801_v25  ;;  %678 = vrot.lane.b32.xlu1 %v669_v24, %s5331_s20  ;;  %v5878_v35 = vpack.c.bf16 %v5871_v31, %v5869_v30  ;;  %v829_v44 = vld [vmem:[#allocation2 + $0x51] sm:$0xff]  ;;  %v666_v54 = vld [vmem:[#allocation2 + $0x62] sm:$0xff] }
 0x134   : > { %625 = vst.msk [vmem:[#allocation3 + $0x10] sm:$0xff] %vm460_vm2, %v802_v29  ;;  %v835_v46 = vpack.c.bf16 %v829_v44, %v729_v34  ;;  %v862_v48 = vld [vmem:[#allocation2 + $0x52] sm:$0xff]  ;;  %v700_v57 = vld [vmem:[#allocation2 + $0x80] sm:$0xff]  ;;  %v736_v61 = vpack.c.bf16 %v633_v49, %v829_v44 }
 0x135   : > { %626 = vst.msk [vmem:[#allocation3 + $0x18] sm:$0xff] %vm460_vm2, %v5878_v35  ;;  %v634_v50 = vld [vmem:[#allocation2 + $0x71] sm:$0xff]  ;;  %v868_v52 = vpack.c.bf16 %v862_v48, %v762_v37  ;;  %v704_v59 = vpack.c.bf16 %v700_v57, %v5871_v31  ;;  %v733_v60 = vld [vmem:[#allocation2 + $0x81] sm:$0xff]  ;;  %v769_v1 = vpack.c.bf16 %v666_v54, %v862_v48  ;;  %v804_v4 = vpack.c.bf16 %v800_v3, %v700_v57 }
 0x136   : > { %709 = vrot.lane.b32.xlu0 %v701_v32, %s5332_s13  ;;  %v638_v53 = vpack.c.bf16 %v634_v50, %v633_v49  ;;  %v667_v55 = vld [vmem:[#allocation2 + $0x72] sm:$0xff]  ;;  %v737_v62 = vpack.c.bf16 %v733_v60, %v634_v50  ;;  %v766_v63 = vld [vmem:[#allocation2 + $0x82] sm:$0xff]  ;;  %v837_v6 = vpack.c.bf16 %v833_v5, %v733_v60 }
 0x137   : > { %711 = vrot.lane.b32.xlu1 %v702_v33, %s5332_s13  ;;  %v671_v56 = vpack.c.bf16 %v667_v55, %v666_v54  ;;  %v770_v2 = vpack.c.bf16 %v766_v63, %v667_v55  ;;  %v870_v8 = vpack.c.bf16 %v866_v7, %v766_v63  ;;  %v4662_v9 = vld [vmem:[#allocation12 + $0x8] sm:$0xff]   ;;  %v4665_v10 = vld [vmem:[#allocation12] sm:$0xff]   ;;  %v5963_v57 = vld [vmem:[#allocation14] ss:$0 sm:$0xff] }
 0x138   : > { %v4663_v11 = vld [vmem:[#allocation12] sm:$0xff]   ;;  %v4664_v13 = vld [vmem:[#allocation12 + $0x8] sm:$0xff]  }
 0x139   : > { %v4666_v12 = vld [vmem:[#allocation12] sm:$0xff]   ;;  %v4667_v14 = vld [vmem:[#allocation12 + $0x8] sm:$0xff]  }
 0x13a   : > { %742 = vrot.lane.b32.xlu0 %v734_v38, %s5333_s1  ;;  %v4669_v54 = vld [vmem:[#allocation12 + $0x8] sm:$0xff]  }
 0x13b   : > { %744 = vrot.lane.b32.xlu1 %v735_v39, %s5333_s1 }
 0x13e   : > { %775 = vrot.lane.b32.xlu0 %v767_v41, %s5334_s27 }
 0x13f   : > { %777 = vrot.lane.b32.xlu1 %v768_v42, %s5334_s27 }
 0x142   : > { %809 = vrot.lane.b32.xlu0 %v801_v25, %s5335_s14 }
 0x143   : > { %811 = vrot.lane.b32.xlu1 %v802_v29, %s5335_s14 }
 0x146   : > { %842 = vrot.lane.b32.xlu0 %v5860_v20, %s5336_s26 }
 0x147   : > { %844 = vrot.lane.b32.xlu1 %v835_v46, %s5336_s26 }
 0x14a   : > { %875 = vrot.lane.b32.xlu0 %v669_v24, %s5337_s28 }
 0x14b   : > { %647 = vrot.lane.b32.xlu1 %v835_v46, %s5330_s16 }
 0x14e   : > { %877 = vrot.lane.b32.xlu0 %v868_v52, %s5337_s28 }
 0x14f   : > { %649 = vrot.lane.b32.xlu1 %v638_v53, %s5330_s16 }
 0x152   : > { %680 = vrot.lane.b32.xlu0 %v868_v52, %s5331_s20  ;;  %v4668_v52 = vld [vmem:[#allocation12] sm:$0xff]  }
 0x153   : > { %682 = vrot.lane.b32.xlu1 %v671_v56, %s5331_s20  ;;  %4394 = vmatprep.subr.bf16.mxu1 %v4668_v52 }
 0x154   : > { %4395 = vmatpush3.bf16.msra.mxu1 %v4668_v52 }
 0x155   : > { %4396 = vmatprep.subr.bf16.mxu1 %v4669_v54 }
 0x156   : > { %713 = vrot.lane.b32.xlu0 %v703_v58, %s5332_s13  ;;  %v4027_v58 = vld [vmem:[#allocation11] ss:$0 sm:$0xff] }
 0x157   : > { %715 = vrot.lane.b32.xlu1 %v704_v59, %s5332_s13 }
 0x158   : > { %4397 = vmatpush3.bf16.msra.mxu1 %v4669_v54 }
 0x15a   : > { %746 = vrot.lane.b32.xlu0 %v736_v61, %s5333_s1 }
 0x15b   : > { %748 = vrot.lane.b32.xlu1 %v737_v62, %s5333_s1 }
 0x15e   : > { %779 = vrot.lane.b32.xlu0 %v769_v1, %s5334_s27 }
 0x15f   : > { %781 = vrot.lane.b32.xlu1 %v770_v2, %s5334_s27  ;;  %s5232_s27 = scalar_lea.vmem %s7105_s21, 1024 }
 0x160   : > { %p5233_p12 = scmp.ne.s32.totalorder %s7105_s21, %s5232_s27 }
 0x162   : > { %813 = vrot.lane.b32.xlu0 %v5878_v35, %s5335_s14  ;;  %p5234_p13 = pnand %p5233_p12, %p7198_p1 }
 0x163   : > { %815 = vrot.lane.b32.xlu1 %v804_v4, %s5335_s14  ;;  %s5339_s14 = smov [#allocation21]  }
 0x164   : > { %p5235_p0 = pneg %p5234_p13 }
 0x166   : > { %846 = vrot.lane.b32.xlu0 %v638_v53, %s5336_s26 }
 0x167   : > { %848 = vrot.lane.b32.xlu1 %v837_v6, %s5336_s26  ;;  %s5236_s26 = sshll.u32 %s5339_s14, 4  ;;  %s5237_s26 = int_to_ptr.vmem [resolvable:$false] %s5236_s26 }
 0x168   : > { %p5239_p2 = scmp.lt.s32.totalorder %s7105_s21, %s5237_s26 }
 0x16a   : > { %879 = vrot.lane.b32.xlu0 %v671_v56, %s5337_s28 }
 0x16b   : > { %881 = vrot.lane.b32.xlu1 %v870_v8, %s5337_s28 }
 0x16e   : > { %1204 = vrot.lane.b32.xlu0 %v4665_v10, %s5338_s25 }
 0x16f   : > { %1206 = vrot.lane.b32.xlu1 %v4662_v9, %s5338_s25 }
 0x172   : > { %1398 = vrot.lane.b32.xlu0 %v4666_v12, %s5333_s1 }
 0x173   : > { %1301 = vrot.lane.b32.xlu1 %v4663_v11, %s5337_s28 }
 0x176   : > { %1400 = vrot.lane.b32.xlu0 %v4667_v14, %s5333_s1 }
 0x177   : > { %1303 = vrot.lane.b32.xlu1 %v4664_v13, %s5337_s28 }
 0x17a   : > { %1210 = vrot.lane.b32.xlu0 %v5963_v57, %s5338_s25 }
 0x17b   : > { %1307 = vrot.lane.b32.xlu1 %v5963_v57, %s5337_s28 }
 0x17e   : > { %1404 = vrot.lane.b32.xlu0 %v5963_v57, %s5333_s1 }
 0x1a0   : > { %v644_v15 = vpop.permute.xlu0 %643 }
 0x1a1   : > { %v677_v16 = vpop.permute.xlu1 %676  ;;  %656 = vst.msk [vmem:[#allocation3] sm:$0xff] %vm655_vm6, %v644_v15 }
 0x1a2   : > { %689 = vst.msk [vmem:[#allocation3] sm:$0xff] %vm688_vm7, %v677_v16 }
 0x1a4   : > { %v646_v17 = vpop.permute.xlu0 %645 }
 0x1a5   : > { %v679_v18 = vpop.permute.xlu1 %678  ;;  %657 = vst.msk [vmem:[#allocation3 + $0x8] sm:$0xff] %vm655_vm6, %v646_v17 }
 0x1a6   : > { %690 = vst.msk [vmem:[#allocation3 + $0x8] sm:$0xff] %vm688_vm7, %v679_v18 }
 0x1a8   : > { %v710_v19 = vpop.permute.xlu0 %709 }
 0x1a9   : > { %v712_v20 = vpop.permute.xlu1 %711  ;;  %722 = vst.msk [vmem:[#allocation3] sm:$0xff] %vm721_vm8, %v710_v19 }
 0x1aa   : > { %723 = vst.msk [vmem:[#allocation3 + $0x8] sm:$0xff] %vm721_vm8, %v712_v20 }
 0x1ac   : > { %v743_v21 = vpop.permute.xlu0 %742 }
 0x1ad   : > { %v745_v22 = vpop.permute.xlu1 %744  ;;  %755 = vst.msk [vmem:[#allocation3] sm:$0xff] %vm754_vm9, %v743_v21 }
 0x1ae   : > { %756 = vst.msk [vmem:[#allocation3 + $0x8] sm:$0xff] %vm754_vm9, %v745_v22 }
 0x1b0   : > { %v776_v23 = vpop.permute.xlu0 %775 }
 0x1b1   : > { %v778_v24 = vpop.permute.xlu1 %777  ;;  %788 = vst.msk [vmem:[#allocation3] sm:$0xff] %vm787_vm10, %v776_v23 }
 0x1b2   : > { %789 = vst.msk [vmem:[#allocation3 + $0x8] sm:$0xff] %vm787_vm10, %v778_v24 }
 0x1b4   : > { %v810_v25 = vpop.permute.xlu0 %809 }
 0x1b5   : > { %v812_v26 = vpop.permute.xlu1 %811  ;;  %822 = vst.msk [vmem:[#allocation3] sm:$0xff] %vm821_vm11, %v810_v25 }
 0x1b6   : > { %823 = vst.msk [vmem:[#allocation3 + $0x8] sm:$0xff] %vm821_vm11, %v812_v26 }
 0x1b8   : > { %v843_v27 = vpop.permute.xlu0 %842 }
 0x1b9   : > { %v845_v28 = vpop.permute.xlu1 %844  ;;  %855 = vst.msk [vmem:[#allocation3] sm:$0xff] %vm854_vm12, %v843_v27 }
 0x1ba   : > { %856 = vst.msk [vmem:[#allocation3 + $0x8] sm:$0xff] %vm854_vm12, %v845_v28 }
 0x1bc   : > { %v876_v29 = vpop.permute.xlu0 %875 }
 0x1bd   : > { %v648_v30 = vpop.permute.xlu1 %647  ;;  %888 = vst.msk [vmem:[#allocation3] sm:$0xff] %vm887_vm13, %v876_v29 }
 0x1be   : > { %658 = vst.msk [vmem:[#allocation3 + $0x10] sm:$0xff] %vm655_vm6, %v648_v30 }
 0x1c0   : > { %v878_v31 = vpop.permute.xlu0 %877 }
 0x1c1   : > { %v650_v32 = vpop.permute.xlu1 %649  ;;  %889 = vst.msk [vmem:[#allocation3 + $0x8] sm:$0xff] %vm887_vm13, %v878_v31 }
 0x1c2   : > { %659 = vst.msk [vmem:[#allocation3 + $0x18] sm:$0xff] %vm655_vm6, %v650_v32 }
 0x1c4   : > { %v681_v33 = vpop.permute.xlu0 %680  ;;  %v892_v35 = vld [vmem:[#allocation3] sm:$0xff] }
 0x1c5   : > { %v683_v34 = vpop.permute.xlu1 %682  ;;  %691 = vst.msk [vmem:[#allocation3 + $0x10] sm:$0xff] %vm688_vm7, %v681_v33  ;;  %4386 = vmatprep.mubr.msk.bf16.mxu0 %vm939_vm14, %v892_v35 }
 0x1c6   : > { %692 = vst.msk [vmem:[#allocation3 + $0x18] sm:$0xff] %vm688_vm7, %v683_v34 }
 0x1c8   : > { %v714_v36 = vpop.permute.xlu0 %713  ;;  %v893_v38 = vld [vmem:[#allocation3 + $0x8] sm:$0xff] }
 0x1c9   : > { %v716_v37 = vpop.permute.xlu1 %715  ;;  %724 = vst.msk [vmem:[#allocation3 + $0x10] sm:$0xff] %vm721_vm8, %v714_v36  ;;  %4387 = vmatmul.mubr.msk.bf16.vlgmr.msra.gmra.mrb[0].mxu0 %vm939_vm14, %v893_v38 }
 0x1ca   : > { %725 = vst.msk [vmem:[#allocation3 + $0x18] sm:$0xff] %vm721_vm8, %v716_v37 }
 0x1cc   : > { %v747_v39 = vpop.permute.xlu0 %746 }
 0x1cd   : > { %v749_v40 = vpop.permute.xlu1 %748  ;;  %757 = vst.msk [vmem:[#allocation3 + $0x10] sm:$0xff] %vm754_vm9, %v747_v39 }
 0x1ce   : > { %758 = vst.msk [vmem:[#allocation3 + $0x18] sm:$0xff] %vm754_vm9, %v749_v40 }
 0x1d0   : > { %v780_v41 = vpop.permute.xlu0 %779 }
 0x1d1   : > { %v782_v42 = vpop.permute.xlu1 %781  ;;  %790 = vst.msk [vmem:[#allocation3 + $0x10] sm:$0xff] %vm787_vm10, %v780_v41 }
 0x1d2   : > { %791 = vst.msk [vmem:[#allocation3 + $0x18] sm:$0xff] %vm787_vm10, %v782_v42 }
 0x1d4   : > { %v814_v43 = vpop.permute.xlu0 %813 }
 0x1d5   : > { %v816_v44 = vpop.permute.xlu1 %815  ;;  %824 = vst.msk [vmem:[#allocation3 + $0x10] sm:$0xff] %vm821_vm11, %v814_v43 }
 0x1d6   : > { %825 = vst.msk [vmem:[#allocation3 + $0x18] sm:$0xff] %vm821_vm11, %v816_v44 }
 0x1d8   : > { %v847_v45 = vpop.permute.xlu0 %846 }
 0x1d9   : > { %v849_v46 = vpop.permute.xlu1 %848  ;;  %857 = vst.msk [vmem:[#allocation3 + $0x10] sm:$0xff] %vm854_vm12, %v847_v45 }
 0x1da   : > { %858 = vst.msk [vmem:[#allocation3 + $0x18] sm:$0xff] %vm854_vm12, %v849_v46 }
 0x1dc   : > { %v880_v47 = vpop.permute.xlu0 %879 }
 0x1dd   : > { %v882_v48 = vpop.permute.xlu1 %881  ;;  %890 = vst.msk [vmem:[#allocation3 + $0x10] sm:$0xff] %vm887_vm13, %v880_v47 }
 0x1de   : > { %891 = vst.msk [vmem:[#allocation3 + $0x18] sm:$0xff] %vm887_vm13, %v882_v48 }
 0x1e0   : > { %v5960_v56 = vpop.permute.xlu0 %1204 }
 0x1e1   : > { %v5958_v51 = vpop.permute.xlu1 %1206  ;;  %4406 = vmatprep.subr.bf16.mxu1 %v5960_v56 }
 0x1e4   : > { %v894_v49 = vld [vmem:[#allocation3 + $0x10] sm:$0xff]  ;;  %v1399_v38 = vpop.permute.xlu0 %1398 }
 0x1e5   : > { %v895_v50 = vld [vmem:[#allocation3 + $0x18] sm:$0xff]  ;;  %4390 = vmatprep.mubr.msk.bf16.mxu0 %vm939_vm14, %v894_v49  ;;  %v1302_v53 = vpop.permute.xlu1 %1301 }
 0x1e6   : > { %4391 = vmatmul.mubr.msk.bf16.gmra.mrb[4].mxu0 %vm939_vm14, %v895_v50  ;;  %4418 = vmatprep.subr.bf16.mxu0 %v1302_v53 }
 0x1e7   : > { %4419 = vmatpush3.bf16.msra.mxu0 %v1302_v53 }
 0x1e9   : > { %v1304_v55 = vpop.permute.xlu1 %1303 }
 0x1ea   : > { %4420 = vmatprep.subr.bf16.mxu0 %v1304_v55 }
 0x1eb   : > { %4421 = vmatpush3.bf16.msra.mxu0 %v1304_v55 }
 0x29c   : > { %v4388_v59 = vpop.f32.mrb[0].mxu0 }
 0x29d   : > { %v999_v60 = vadd.f32 %v4388_v59, %v4027_v58  ;;  %v990_v61 = vpop.f32.mrb[1].mxu0  ;;  %v4670_v59 = vld [vmem:[#allocation15 + $0x80] sm:$0xff]  }
 0x29e   : > { %v991_v62 = vadd.f32 %v4027_v58, %v990_v61  ;;  %v4389_v63 = vpop.f32.mrb[2].mxu0  ;;  %v5998_v61 = vpop.permute.xlu1 %1307 }
 0x29f   : > { %v4039_v1 = vmul.f32 -1.442695, %v999_v60  ;;  %v1002_v2 = vadd.f32 %v4389_v63, %v4027_v58  ;;  %v993_v3 = vpop.f32.mrb[3].mxu0 }
 0x2a0   : > { %v4037_v4 = vmul.f32 -1.442695, %v991_v62  ;;  %v994_v5 = vadd.f32 %v4027_v58, %v993_v3 }
 0x2a1   : > { %4690 = vpow2.f32 %v4039_v1  ;;  %v4040_v6 = vmul.f32 -1.442695, %v1002_v2 }
 0x2a2   : > { %4692 = vpow2.f32 %v4037_v4  ;;  %v4038_v7 = vmul.f32 -1.442695, %v994_v5 }
 0x2a3   : > { %4694 = vpow2.f32 %v4040_v6 }
 0x2a4   : > { %4696 = vpow2.f32 %v4038_v7 }
 0x2ab   : > { %v4691_v8 = vpop.eup %4690 }
 0x2ac   : > { %v4693_v9 = vpop.eup %4692  ;;  %v1047_v10 = vadd.f32 1.0, %v4691_v8 }
 0x2ad   : > { %v4695_v11 = vpop.eup %4694  ;;  %v1045_v12 = vadd.f32 1.0, %v4693_v9 }
 0x2ae   : > { %v4697_v13 = vpop.eup %4696  ;;  %4698 = vrcp.f32 %v1047_v10  ;;  %v1048_v14 = vadd.f32 1.0, %v4695_v11 }
 0x2af   : > { %4700 = vrcp.f32 %v1045_v12  ;;  %v1046_v15 = vadd.f32 1.0, %v4697_v13 }
 0x2b0   : > { %4702 = vrcp.f32 %v1048_v14  ;;  %v1497_v14 = vld [vmem:[#allocation4 + $0x141] sm:$0xff] }
 0x2b1   : > { %4704 = vrcp.f32 %v1046_v15 }
 0x2b8   : > { %v4699_v16 = vpop.eup %4698 }
 0x2b9   : > { %v4701_v17 = vpop.eup %4700  ;;  %v4392_v18 = vpop.f32.mrb[4].mxu0  ;;  %v1071_v23 = vmul.f32 %v4699_v16, %v999_v60  ;;  %v4671_v60 = vld [vmem:[#allocation15 + $0x88] sm:$0xff]  }
 0x2ba   : > { %v4703_v19 = vpop.eup %4702  ;;  %v1015_v20 = vadd.f32 %v4392_v18, %v4027_v58  ;;  %v1006_v21 = vpop.f32.mrb[5].mxu0  ;;  %v1069_v27 = vmul.f32 %v4701_v17, %v991_v62 }
 0x2bb   : > { %v4705_v22 = vpop.eup %4704  ;;  %v1072_v24 = vmul.f32 %v4703_v19, %v1002_v2  ;;  %v1007_v25 = vadd.f32 %v4027_v58, %v1006_v21  ;;  %v4393_v26 = vpop.f32.mrb[6].mxu0  ;;  %v1772_v19 = vld [vmem:[#allocation4 + $0x142] sm:$0xff] }
 0x2bc   : > { %v1070_v28 = vmul.f32 %v4705_v22, %v994_v5  ;;  %v4043_v29 = vmul.f32 -1.442695, %v1015_v20  ;;  %v1018_v30 = vadd.f32 %v4393_v26, %v4027_v58  ;;  %v1009_v31 = vpop.f32.mrb[7].mxu0 }
 0x2bd   : > { %v1078_v32 = vpack.c.bf16 %v1072_v24, %v1071_v23  ;;  %v4041_v33 = vmul.f32 -1.442695, %v1007_v25  ;;  %v1010_v34 = vadd.f32 %v4027_v58, %v1009_v31  ;;  %v1401_v58 = vpop.permute.xlu0 %1400  ;;  %v1724_v24 = vld [vmem:[#allocation4 + $0x141] sm:$0xff] }
 0x2be   : > { %v1077_v35 = vpack.c.bf16 %v1070_v28, %v1069_v27  ;;  %4706 = vpow2.f32 %v4043_v29  ;;  %v4044_v36 = vmul.f32 -1.442695, %v1018_v30 }
 0x2bf   : > { %4708 = vpow2.f32 %v4041_v33  ;;  %v4042_v37 = vmul.f32 -1.442695, %v1010_v34 }
 0x2c0   : > { %4710 = vpow2.f32 %v4044_v36  ;;  %4398 = vmatprep.mubr.msk.bf16.mxu1 %vm488_vm0, %v1077_v35  ;;  %4422 = vmatprep.mubr.msk.bf16.mxu0 %vm488_vm0, %v1077_v35 }
 0x2c1   : > { %4712 = vpow2.f32 %v4042_v37  ;;  %4399 = vmatmul.mubr.msk.bf16.vlgmr.msra.gmra.mrb[0].mxu1 %vm488_vm0, %v1078_v32  ;;  %4423 = vmatmul.mubr.msk.bf16.vlgmr.msra.gmra.mrb[8].mxu0 %vm488_vm0, %v1078_v32 }
 0x2c2   : > { %4407 = vmatpush3.bf16.msra.mxu1 %v5960_v56 }
 0x2c3   : > { %4408 = vmatprep.subr.bf16.mxu1 %v5958_v51 }
 0x2c6   : > { %4409 = vmatpush3.bf16.msra.mxu1 %v5958_v51 }
 0x2c7   : > { %4430 = vmatprep.subr.bf16.mxu1 %v1399_v38 }
 0x2c8   : > { %v4707_v39 = vpop.eup %4706 }
 0x2c9   : > { %v4709_v40 = vpop.eup %4708  ;;  %v1051_v41 = vadd.f32 1.0, %v4707_v39 }
 0x2ca   : > { %v4711_v42 = vpop.eup %4710  ;;  %v1049_v43 = vadd.f32 1.0, %v4709_v40 }
 0x2cb   : > { %v4713_v44 = vpop.eup %4712  ;;  %4714 = vrcp.f32 %v1051_v41  ;;  %v1052_v45 = vadd.f32 1.0, %v4711_v42 }
 0x2cc   : > { %4716 = vrcp.f32 %v1049_v43  ;;  %v1050_v46 = vadd.f32 1.0, %v4713_v44 }
 0x2cd   : > { %4718 = vrcp.f32 %v1052_v45 }
 0x2ce   : > { %4720 = vrcp.f32 %v1050_v46 }
 0x2d5   : > { %v4715_v47 = vpop.eup %4714 }
 0x2d6   : > { %v4717_v48 = vpop.eup %4716  ;;  %v1075_v52 = vmul.f32 %v4715_v47, %v1015_v20 }
 0x2d7   : > { %v4719_v49 = vpop.eup %4718  ;;  %v1073_v51 = vmul.f32 %v4717_v48, %v1007_v25 }
 0x2d8   : > { %v4721_v50 = vpop.eup %4720  ;;  %v1076_v53 = vmul.f32 %v4719_v49, %v1018_v30 }
 0x2d9   : > { %v1074_v54 = vmul.f32 %v4721_v50, %v1010_v34 }
 0x2da   : > { %v1080_v55 = vpack.c.bf16 %v1076_v53, %v1075_v52 }
 0x2db   : > { %v1079_v56 = vpack.c.bf16 %v1074_v54, %v1073_v51 }
 0x2dd   : > { %4402 = vmatprep.mubr.msk.bf16.mxu1 %vm488_vm0, %v1079_v56  ;;  %4426 = vmatprep.mubr.msk.bf16.mxu0 %vm488_vm0, %v1079_v56 }
 0x2de   : > { %4403 = vmatmul.mubr.msk.bf16.gmra.mrb[4].mxu1 %vm488_vm0, %v1080_v55  ;;  %4427 = vmatmul.mubr.msk.bf16.gmra.mrb[12].mxu0 %vm488_vm0, %v1080_v55 }
 0x2df   : > { %4410 = vmatprep.mubr.msk.bf16.mxu1 %vm488_vm0, %v1077_v35 }
 0x2e6   : > { %4411 = vmatmul.mubr.msk.bf16.vlgmr.msra.gmra.mrb[8].mxu1 %vm488_vm0, %v1078_v32 }
 0x2e7   : > { %4414 = vmatprep.mubr.msk.bf16.mxu1 %vm488_vm0, %v1079_v56  ;;  %4431 = vmatpush3.bf16.msra.mxu1 %v1399_v38 }
 0x2e8   : > { %4432 = vmatprep.subr.bf16.mxu1 %v1401_v58 }
 0x2eb   : > { %4433 = vmatpush3.bf16.msra.mxu1 %v1401_v58 }
 0x2ec   : > { %4442 = vmatprep.subr.bf16.mxu1 %v4670_v59 }
 0x2ee   : > { %4415 = vmatmul.mubr.msk.bf16.gmra.mrb[12].mxu1 %vm488_vm0, %v1080_v55 }
 0x2ef   : > { %4434 = vmatprep.mubr.msk.bf16.mxu1 %vm488_vm0, %v1077_v35 }
 0x2f6   : > { %4435 = vmatmul.mubr.msk.bf16.vlgmr.msra.gmra.mrb[16].mxu1 %vm488_vm0, %v1078_v32 }
 0x2f7   : > { %4438 = vmatprep.mubr.msk.bf16.mxu1 %vm488_vm0, %v1079_v56  ;;  %4443 = vmatpush3.bf16.msra.mxu1 %v4670_v59 }
 0x2f8   : > { %4444 = vmatprep.subr.bf16.mxu1 %v4671_v60 }
 0x2fb   : > { %4445 = vmatpush3.bf16.msra.mxu1 %v4671_v60 }
 0x2fe   : > { %4439 = vmatmul.mubr.msk.bf16.gmra.mrb[20].mxu1 %vm488_vm0, %v1080_v55 }
 0x394   : > { %v4400_v62 = vpop.f32.mrb[0].mxu1  ;;  %v4424_v63 = vpop.f32.mrb[8].mxu0 }
 0x395   : > { %v1159_v1 = vadd.f32 %v4400_v62, %v5963_v57  ;;  %v1353_v2 = vadd.f32 %v4424_v63, %v5998_v61  ;;  %v1150_v3 = vpop.f32.mrb[1].mxu1  ;;  %v1344_v4 = vpop.f32.mrb[9].mxu0 }
 0x396   : > { %v1151_v5 = vadd.f32 %v5963_v57, %v1150_v3  ;;  %v1345_v0 = vadd.f32 %v1344_v4, %v5998_v61  ;;  %v4401_v6 = vpop.f32.mrb[2].mxu1  ;;  %v4425_v7 = vpop.f32.mrb[10].mxu0 }
 0x397   : > { %1184 = vst.msk [vmem:[#allocation4 + $0x31] sm:$0xff] %vm488_vm0, %v1159_v1  ;;  %1378 = vst.msk [vmem:[#allocation4 + $0x171] sm:$0xff] %vm488_vm0, %v1353_v2  ;;  %v1162_v8 = vadd.f32 %v4401_v6, %v5963_v57  ;;  %v1356_v9 = vadd.f32 %v4425_v7, %v5998_v61  ;;  %v1153_v10 = vpop.f32.mrb[3].mxu1  ;;  %v1347_v11 = vpop.f32.mrb[11].mxu0 }
 0x398   : > { %1182 = vst.msk [vmem:[#allocation4 + $0x11] sm:$0xff] %vm488_vm0, %v1151_v5  ;;  %1376 = vst.msk [vmem:[#allocation4 + $0x151] sm:$0xff] %vm488_vm0, %v1345_v0  ;;  %v1154_v12 = vadd.f32 %v5963_v57, %v1153_v10  ;;  %v1348_v13 = vadd.f32 %v1347_v11, %v5998_v61 }
 0x399   : > { %1185 = vst.msk [vmem:[#allocation4 + $0x41] sm:$0xff] %vm488_vm0, %v1162_v8  ;;  %1379 = vst.msk [vmem:[#allocation4 + $0x181] sm:$0xff] %vm488_vm0, %v1356_v9 }
 0x39a   : > { %1183 = vst.msk [vmem:[#allocation4 + $0x21] sm:$0xff] %vm488_vm0, %v1154_v12  ;;  %1377 = vst.msk [vmem:[#allocation4 + $0x161] sm:$0xff] %vm488_vm0, %v1348_v13 }
 0x39e   : > { %v2431_v15 = vld [vmem:[#allocation4 + $0x32] sm:$0xff] }
 0x39f   : > { %v6016_v16 = vld [vmem:[#allocation4 + $0x172] sm:$0xff] }
 0x3a0   : > { %v1498_v17 = vld [vmem:[#allocation4 + $0x151] sm:$0xff]  ;;  %v6018_v21 = vld [vmem:[#allocation4 + $0x182] sm:$0xff] }
 0x3a1   : > { %v1678_v18 = vld [vmem:[#allocation4 + $0x171] sm:$0xff]  ;;  %v1505_v22 = vpack.c.bf16 %v1498_v17, %v1497_v14  ;;  %v6020_v23 = vld [vmem:[#allocation4 + $0x181] sm:$0xff]  ;;  %v1957_v25 = vpack.c.bf16 %v6018_v21, %v6016_v16 }
 0x3a2   : > { %v1948_v20 = vld [vmem:[#allocation4 + $0x152] sm:$0xff]  ;;  %v6024_v26 = vld [vmem:[#allocation4 + $0x22] sm:$0xff]  ;;  %v1685_v28 = vpack.c.bf16 %v6020_v23, %v1678_v18 }
 0x3a3   : > { %v6026_v27 = vld [vmem:[#allocation4 + $0x162] sm:$0xff]  ;;  %v1806_v29 = vld [vmem:[#allocation4 + $0x31] sm:$0xff]  ;;  %v2438_v31 = vpack.c.bf16 %v2431_v15, %v6024_v26  ;;  %1513 = vrot.lane.b32.xlu0 %v1505_v22, %s5333_s1  ;;  %1961 = vst.msk [vmem:[#allocation5 + $0x88] sm:$0xff] %vm488_vm0, %v1957_v25  ;;  %v1780_v36 = vpack.c.bf16 %v1948_v20, %v1772_v19 }
 0x3a4   : > { %v6029_v30 = vld [vmem:[#allocation4 + $0x42] sm:$0xff]  ;;  %v1956_v32 = vpack.c.bf16 %v6026_v27, %v1948_v20  ;;  %1694 = vrot.lane.b32.xlu1 %v1685_v28, %s5338_s25  ;;  %v6042_v37 = vld [vmem:[#allocation4 + $0x151] sm:$0xff]  ;;  %v1781_v14 = vpack.c.bf16 %v6016_v16, %v6026_v27  ;;  %v6109_v16 = vpop.permute.xlu0 %1210 }
 0x3a5   : > { %v6034_v33 = vld [vmem:[#allocation4 + $0x161] sm:$0xff]  ;;  %2442 = vst.msk [vmem:[#allocation5 + $0x130] sm:$0xff] %vm488_vm0, %v2438_v31  ;;  %v1861_v38 = vpack.c.bf16 %v6029_v30, %v2431_v15  ;;  %v1598_v41 = vld [vmem:[#allocation4 + $0x31] sm:$0xff]  ;;  %v1732_v43 = vpack.c.bf16 %v6042_v37, %v1724_v24 }
 0x3a6   : > { %v1805_v34 = vld [vmem:[#allocation4 + $0x21] sm:$0xff]  ;;  %1960 = vst.msk [vmem:[#allocation5 + $0x70] sm:$0xff] %vm488_vm0, %v1956_v32  ;;  %v1596_v45 = vld [vmem:[#allocation4 + $0x11] sm:$0xff]  ;;  %v1506_v56 = vpack.c.bf16 %v1678_v18, %v6034_v33  ;;  %v1684_v58 = vpack.c.bf16 %v6034_v33, %v1498_v17 }
 0x3a7   : > { %v6038_v35 = vpack.c.bf16 %v1806_v29, %v1805_v34  ;;  %v6045_v39 = vld [vmem:[#allocation4 + $0x41] sm:$0xff]  ;;  %1788 = vrot.lane.b32.xlu0 %v1780_v36, %s5337_s28  ;;  %v1604_v46 = vpack.c.bf16 %v1805_v34, %v1596_v45  ;;  %v2288_v47 = vld [vmem:[#allocation4 + $0x171] sm:$0xff]  ;;  %1736 = vst.msk [vmem:[#allocation5 + $0x60] sm:$0xff] %vm488_vm0, %v1732_v43 }
 0x3a8   : > { %v6049_v42 = vld [vmem:[#allocation4 + $0x41] sm:$0xff]  ;;  %1870 = vrot.lane.b32.xlu1 %v1861_v38, %s5333_s1  ;;  %v6059_v50 = vpack.c.bf16 %v6045_v39, %v1806_v29  ;;  %v1804_v59 = vld [vmem:[#allocation4 + $0x11] sm:$0xff] }
 0x3a9   : > { %v1605_v44 = vpack.c.bf16 %v6049_v42, %v1598_v41  ;;  %v6055_v48 = vld [vmem:[#allocation4 + $0x181] sm:$0xff]  ;;  %1608 = vst.msk [vmem:[#allocation5 + $0x8] sm:$0xff] %vm488_vm0, %v1604_v46  ;;  %v6080_v60 = vpack.c.bf16 %v1805_v34, %v1804_v59  ;;  %v6082_v62 = vld [vmem:[#allocation4 + $0x12] sm:$0xff] }
 0x3aa   : > { %v1726_v49 = vld [vmem:[#allocation4 + $0x161] sm:$0xff]  ;;  %v6063_v52 = vpack.c.bf16 %v6055_v48, %v2288_v47  ;;  %v1860_v2 = vpack.c.bf16 %v6024_v26, %v6082_v62 }
 0x3ab   : > { %1609 = vst.msk [vmem:[#allocation5 + $0x20] sm:$0xff] %vm488_vm0, %v1605_v44  ;;  %v1733_v53 = vpack.c.bf16 %v2288_v47, %v1726_v49  ;;  %v2084_v51 = vpack.c.bf16 %v1726_v49, %v6042_v37  ;;  %v2207_v54 = vld [vmem:[#allocation4 + $0x21] sm:$0xff]  ;;  %2219 = vst.msk [vmem:[#allocation5 + $0x138] sm:$0xff] %vm488_vm0, %v1605_v44  ;;  %1822 = vrot.lane.b32.xlu0 %v6059_v50, %s5338_s25 }
 0x3ac   : > { %v2214_v55 = vpack.c.bf16 %v2207_v54, %v1596_v45  ;;  %2089 = vst.msk [vmem:[#allocation5 + $0xe0] sm:$0xff] %vm488_vm0, %v6063_v52  ;;  %1902 = vrot.lane.b32.xlu1 %v1685_v28, %s5337_s28 }
 0x3ad   : > { %1737 = vst.msk [vmem:[#allocation5 + $0x78] sm:$0xff] %vm488_vm0, %v1733_v53  ;;  %2088 = vst.msk [vmem:[#allocation5 + $0xc8] sm:$0xff] %vm488_vm0, %v2084_v51 }
 0x3ae   : > { %2218 = vst.msk [vmem:[#allocation5 + $0x120] sm:$0xff] %vm488_vm0, %v2214_v55 }
 0x3af   : > { %1515 = vrot.lane.b32.xlu0 %v1506_v56, %s5333_s1 }
 0x3b0   : > { %1692 = vrot.lane.b32.xlu1 %v1684_v58, %s5338_s25 }
 0x3b1   : > { %v4404_v63 = vpop.f32.mrb[4].mxu1  ;;  %v4428_v1 = vpop.f32.mrb[12].mxu0 }
 0x3b2   : > { %v1175_v3 = vadd.f32 %v4404_v63, %v5963_v57  ;;  %v1369_v4 = vadd.f32 %v4428_v1, %v5998_v61  ;;  %v1166_v5 = vpop.f32.mrb[5].mxu1  ;;  %v1360_v0 = vpop.f32.mrb[13].mxu0 }
 0x3b3   : > { %1820 = vrot.lane.b32.xlu0 %v6080_v60, %s5338_s25  ;;  %v1167_v6 = vadd.f32 %v5963_v57, %v1166_v5  ;;  %v1361_v7 = vadd.f32 %v1360_v0, %v5998_v61  ;;  %v4405_v8 = vpop.f32.mrb[6].mxu1  ;;  %v4429_v9 = vpop.f32.mrb[14].mxu0 }
 0x3b4   : > { %1868 = vrot.lane.b32.xlu1 %v1860_v2, %s5333_s1  ;;  %1188 = vst.msk [vmem:[#allocation4 + $0x71] sm:$0xff] %vm488_vm0, %v1175_v3  ;;  %1382 = vst.msk [vmem:[#allocation4 + $0x1b1] sm:$0xff] %vm488_vm0, %v1369_v4  ;;  %v1178_v10 = vadd.f32 %v4405_v8, %v5963_v57  ;;  %v1372_v11 = vadd.f32 %v4429_v9, %v5998_v61  ;;  %v1169_v12 = vpop.f32.mrb[7].mxu1  ;;  %v1363_v13 = vpop.f32.mrb[15].mxu0 }
 0x3b5   : > { %1186 = vst.msk [vmem:[#allocation4 + $0x51] sm:$0xff] %vm488_vm0, %v1167_v6  ;;  %1380 = vst.msk [vmem:[#allocation4 + $0x191] sm:$0xff] %vm488_vm0, %v1361_v7  ;;  %v1170_v15 = vadd.f32 %v5963_v57, %v1169_v12  ;;  %v1364_v17 = vadd.f32 %v1363_v13, %v5998_v61  ;;  %v2437_v61 = vld [vmem:[#allocation4 + $0x92] sm:$0xff] }
 0x3b6   : > { %1189 = vst.msk [vmem:[#allocation4 + $0x81] sm:$0xff] %vm488_vm0, %v1178_v10  ;;  %1383 = vst.msk [vmem:[#allocation4 + $0x1c1] sm:$0xff] %vm488_vm0, %v1372_v11 }
 0x3b7   : > { %1790 = vrot.lane.b32.xlu0 %v1781_v14, %s5337_s28  ;;  %1187 = vst.msk [vmem:[#allocation4 + $0x61] sm:$0xff] %vm488_vm0, %v1170_v15  ;;  %1381 = vst.msk [vmem:[#allocation4 + $0x1a1] sm:$0xff] %vm488_vm0, %v1364_v17  ;;  %v4672_v15 = vld [vmem:[#allocation15 + $0x40] sm:$0xff]  }
 0x3b8   : > { %1900 = vrot.lane.b32.xlu1 %v1684_v58, %s5337_s28  ;;  %4228 = vmatprep.subr.bf16.mxu0 %v4672_v15 }
 0x3b9   : > { %v4412_v18 = vpop.f32.mrb[8].mxu1 }
 0x3ba   : > { %v1256_v19 = vadd.f32 %v4412_v18, %v6109_v16  ;;  %v1247_v57 = vpop.f32.mrb[9].mxu1 }
 0x3bb   : > { %v6112_v20 = vld [vmem:[#allocation4 + $0x1b2] sm:$0xff]  ;;  %v1248_v22 = vadd.f32 %v1247_v57, %v6109_v16  ;;  %v4413_v24 = vpop.f32.mrb[10].mxu1 }
 0x3bc   : > { %v6115_v25 = vld [vmem:[#allocation4 + $0x72] sm:$0xff]  ;;  %1281 = vst.msk [vmem:[#allocation4 + $0xd1] sm:$0xff] %vm488_vm0, %v1256_v19  ;;  %v1259_v27 = vadd.f32 %v4413_v24, %v6109_v16  ;;  %v1250_v28 = vpop.f32.mrb[11].mxu1 }
 0x3bd   : > { %v6117_v26 = vld [vmem:[#allocation4 + $0x52] sm:$0xff]  ;;  %v6125_v34 = vld [vmem:[#allocation4 + $0x82] sm:$0xff]  ;;  %1279 = vst.msk [vmem:[#allocation4 + $0xb1] sm:$0xff] %vm488_vm0, %v1248_v22  ;;  %v1251_v38 = vadd.f32 %v1250_v28, %v6109_v16 }
 0x3be   : > { %v1502_v29 = vld [vmem:[#allocation4 + $0x191] sm:$0xff]  ;;  %v2439_v32 = vpack.c.bf16 %v6117_v26, %v6029_v30  ;;  %v1955_v36 = vld [vmem:[#allocation4 + $0x1c2] sm:$0xff]  ;;  %v2441_v45 = vpack.c.bf16 %v2437_v61, %v6125_v34  ;;  %1282 = vst.msk [vmem:[#allocation4 + $0xe1] sm:$0xff] %vm488_vm0, %v1259_v27 }
 0x3bf   : > { %v6121_v31 = vld [vmem:[#allocation4 + $0x1b1] sm:$0xff]  ;;  %v1507_v41 = vpack.c.bf16 %v1502_v29, %v6020_v23  ;;  %v1683_v43 = vld [vmem:[#allocation4 + $0x1c1] sm:$0xff]  ;;  %v1959_v46 = vpack.c.bf16 %v1955_v36, %v6112_v20  ;;  %1280 = vst.msk [vmem:[#allocation4 + $0xc1] sm:$0xff] %vm488_vm0, %v1251_v38 }
 0x3c0   : > { %v1952_v44 = vld [vmem:[#allocation4 + $0x192] sm:$0xff]  ;;  %v2434_v47 = vld [vmem:[#allocation4 + $0x62] sm:$0xff]  ;;  %v6136_v30 = vpack.c.bf16 %v1683_v43, %v6121_v31  ;;  %2443 = vst.msk [vmem:[#allocation5 + $0x148] sm:$0xff] %vm488_vm0, %v2439_v32  ;;  %2445 = vst.msk [vmem:[#allocation5 + $0x178] sm:$0xff] %vm488_vm0, %v2441_v45 }
 0x3c1   : > { %v6132_v49 = vld [vmem:[#allocation4 + $0x1a2] sm:$0xff]  ;;  %v2440_v53 = vpack.c.bf16 %v6115_v25, %v2434_v47  ;;  %1517 = vrot.lane.b32.xlu0 %v1507_v41, %s5333_s1  ;;  %v6143_v54 = vld [vmem:[#allocation4 + $0x51] sm:$0xff]  ;;  %1963 = vst.msk [vmem:[#allocation5 + $0xb8] sm:$0xff] %vm488_vm0, %v1959_v46  ;;  %v4416_v1 = vpop.f32.mrb[12].mxu1  ;;  %v1782_v2 = vpack.c.bf16 %v1952_v44, %v6018_v21  ;;  %v1862_v22 = vpack.c.bf16 %v2434_v47, %v6117_v26 }
 0x3c2   : > { %v1958_v23 = vpack.c.bf16 %v6132_v49, %v1952_v44  ;;  %v1681_v51 = vld [vmem:[#allocation4 + $0x1a1] sm:$0xff]  ;;  %1698 = vrot.lane.b32.xlu1 %v6136_v30, %s5338_s25  ;;  %v1810_v58 = vld [vmem:[#allocation4 + $0x71] sm:$0xff]  ;;  %v1272_v6 = vadd.f32 %v4416_v1, %v6109_v16  ;;  %v1263_v7 = vpop.f32.mrb[13].mxu1 }
 0x3c3   : > { %v1809_v55 = vld [vmem:[#allocation4 + $0x61] sm:$0xff]  ;;  %2444 = vst.msk [vmem:[#allocation5 + $0x160] sm:$0xff] %vm488_vm0, %v2440_v53  ;;  %v2290_v0 = vld [vmem:[#allocation4 + $0x191] sm:$0xff]  ;;  %v1686_v8 = vpack.c.bf16 %v1681_v51, %v1502_v29  ;;  %v1264_v10 = vadd.f32 %v1263_v7, %v6109_v16  ;;  %v4417_v11 = vpop.f32.mrb[14].mxu1  ;;  %v1508_v19 = vpack.c.bf16 %v6121_v31, %v1681_v51 }
 0x3c4   : > { %v6150_v56 = vpack.c.bf16 %v1809_v55, %v6143_v54  ;;  %v6152_v59 = vld [vmem:[#allocation4 + $0x81] sm:$0xff]  ;;  %1962 = vst.msk [vmem:[#allocation5 + $0xa0] sm:$0xff] %vm488_vm0, %v1958_v23  ;;  %v6162_v4 = vpack.c.bf16 %v1810_v58, %v1809_v55  ;;  %v1734_v21 = vpack.c.bf16 %v2290_v0, %v6055_v48  ;;  %1285 = vst.msk [vmem:[#allocation4 + $0x111] sm:$0xff] %vm488_vm0, %v1272_v6  ;;  %v1266_v14 = vpop.f32.mrb[15].mxu1  ;;  %v2191_v48 = vld [vmem:[#allocation4 + $0xd1] sm:$0xff] }
 0x3c5   : > { %v6160_v3 = vpack.c.bf16 %v6152_v59, %v1810_v58  ;;  %v6169_v9 = vld [vmem:[#allocation4 + $0x1a1] sm:$0xff]  ;;  %1792 = vrot.lane.b32.xlu0 %v1782_v2, %s5337_s28  ;;  %v1275_v13 = vadd.f32 %v4417_v11, %v6109_v16  ;;  %1283 = vst.msk [vmem:[#allocation4 + $0xf1] sm:$0xff] %vm488_vm0, %v1264_v10  ;;  %v1267_v18 = vadd.f32 %v1266_v14, %v6109_v16  ;;  %v4673_v57 = vld [vmem:[#allocation15] sm:$0xff]   ;;  %v6196_v16 = vpop.permute.xlu0 %1404  ;;  %v1964_v46 = vld [vmem:[#allocation4 + $0xb0] sm:$0xff] }
 0x3c6   : > { %1610 = vst.msk [vmem:[#allocation5 + $0x38] sm:$0xff] %vm488_vm0, %v6150_v56  ;;  %v6177_v12 = vpack.c.bf16 %v6169_v9, %v2290_v0  ;;  %1696 = vrot.lane.b32.xlu1 %v1686_v8, %s5338_s25  ;;  %1738 = vst.msk [vmem:[#allocation5 + $0x90] sm:$0xff] %vm488_vm0, %v1734_v21  ;;  %v2192_v17 = vld [vmem:[#allocation4 + $0xe1] sm:$0xff]  ;;  %v1612_v27 = vld [vmem:[#allocation4 + $0xb1] sm:$0xff]  ;;  %4229 = vmatpush3.bf16.msra.mxu0 %v4673_v57 }
 0x3c7   : > { %1611 = vst.msk [vmem:[#allocation5 + $0x50] sm:$0xff] %vm488_vm0, %v6160_v3  ;;  %v2190_v61 = vld [vmem:[#allocation4 + $0xc1] sm:$0xff]  ;;  %1286 = vst.msk [vmem:[#allocation4 + $0x121] sm:$0xff] %vm488_vm0, %v1275_v13  ;;  %v6190_v24 = vpack.c.bf16 %v2192_v17, %v2191_v48  ;;  %v2292_v36 = vld [vmem:[#allocation4 + $0x1b1] sm:$0xff] }
 0x3c8   : > { %2090 = vst.msk [vmem:[#allocation5 + $0xf8] sm:$0xff] %vm488_vm0, %v6177_v12  ;;  %v6192_v28 = vpack.c.bf16 %v2191_v48, %v2190_v61  ;;  %1284 = vst.msk [vmem:[#allocation4 + $0x101] sm:$0xff] %vm488_vm0, %v1267_v18  ;;  %v6198_v29 = vpack.c.bf16 %v2190_v61, %v1612_v27  ;;  %v4674_v26 = vld [vmem:[#allocation15 + $0x48] sm:$0xff]   ;;  %v1735_v53 = vpack.c.bf16 %v2292_v36, %v6169_v9  ;;  %v2197_v23 = vld [vmem:[#allocation4 + $0x131] sm:$0xff] }
 0x3c9   : > { %1519 = vrot.lane.b32.xlu0 %v1508_v19, %s5333_s1  ;;  %1849 = vst.msk [vmem:[#allocation5 + $0x80] sm:$0xff] %vm488_vm0, %v6190_v24  ;;  %v4436_v31 = vpop.f32.mrb[16].mxu1  ;;  %v4675_v32 = vld [vmem:[#allocation15 + $0x8] sm:$0xff]   ;;  %4230 = vmatprep.subr.bf16.mxu0 %v4674_v26  ;;  %v6216_v58 = vld [vmem:[#allocation4 + $0xd0] sm:$0xff]  ;;  %v4676_v9 = vld [vmem:[#allocation15 + $0x50] sm:$0xff]  }
 0x3ca   : > { %1872 = vrot.lane.b32.xlu1 %v1862_v22, %s5333_s1  ;;  %2202 = vst.msk [vmem:[#allocation5 + $0xd0] sm:$0xff] %vm488_vm0, %v6192_v28  ;;  %1848 = vst.msk [vmem:[#allocation5 + $0x68] sm:$0xff] %vm488_vm0, %v6198_v29  ;;  %v2293_v38 = vld [vmem:[#allocation4 + $0x1c1] sm:$0xff]  ;;  %v1450_v41 = vadd.f32 %v4436_v31, %v6196_v16  ;;  %v1441_v43 = vpop.f32.mrb[17].mxu1  ;;  %4231 = vmatpush3.bf16.msra.mxu0 %v4675_v32  ;;  %v1563_v18 = vld [vmem:[#allocation4 + $0xb0] sm:$0xff] }
 0x3cb   : > { %v6208_v44 = vld [vmem:[#allocation4 + $0xe0] sm:$0xff]  ;;  %v6210_v45 = vpack.c.bf16 %v2293_v38, %v2292_v36  ;;  %v1442_v51 = vadd.f32 %v1441_v43, %v6196_v16  ;;  %v4437_v55 = vpop.f32.mrb[18].mxu1  ;;  %1739 = vst.msk [vmem:[#allocation5 + $0xa8] sm:$0xff] %vm488_vm0, %v1735_v53  ;;  %v6226_v21 = vld [vmem:[#allocation4 + $0x111] sm:$0xff]  ;;  %v4677_v14 = vld [vmem:[#allocation15 + $0x10] sm:$0xff]   ;;  %4232 = vmatprep.subr.bf16.mxu0 %v4676_v9 }
 0x3cc   : > { %v1965_v47 = vld [vmem:[#allocation4 + $0xc0] sm:$0xff]  ;;  %v2193_v2 = vld [vmem:[#allocation4 + $0xf1] sm:$0xff]  ;;  %1475 = vst.msk [vmem:[#allocation4 + $0x211] sm:$0xff] %vm488_vm0, %v1450_v41  ;;  %v1453_v0 = vadd.f32 %v4437_v55, %v6196_v16  ;;  %v1444_v6 = vpop.f32.mrb[19].mxu1 }
 0x3cd   : > { %7189 = vst [vmem:[#allocation28_spill] sm:$0xff] %v6210_v45  ;;  %1824 = vrot.lane.b32.xlu0 %v6150_v56, %s5338_s25  ;;  %v1972_v1 = vpack.c.bf16 %v1965_v47, %v1964_v46  ;;  %v6221_v7 = vld [vmem:[#allocation4 + $0xc0] sm:$0xff]  ;;  %2091 = vst.msk [vmem:[#allocation5 + $0x110] sm:$0xff] %vm488_vm0, %v6210_v45  ;;  %v6228_v10 = vpack.c.bf16 %v2193_v2, %v2192_v17  ;;  %v1445_v13 = vadd.f32 %v1444_v6, %v6196_v16  ;;  %v6239_v17 = vld [vmem:[#allocation4 + $0x110] sm:$0xff] }
 0x3ce   : > { %1904 = vrot.lane.b32.xlu1 %v1686_v8, %s5337_s28  ;;  %v6230_v11 = vld [vmem:[#allocation4 + $0x121] sm:$0xff]  ;;  %1473 = vst.msk [vmem:[#allocation4 + $0x1f1] sm:$0xff] %vm488_vm0, %v1442_v51  ;;  %v1572_v8 = vpack.c.bf16 %v6208_v44, %v6216_v58  ;;  %1476 = vst.msk [vmem:[#allocation4 + $0x221] sm:$0xff] %vm488_vm0, %v1453_v0  ;;  %v1966_v57 = vld [vmem:[#allocation4 + $0xd0] sm:$0xff]  ;;  %4233 = vmatpush3.bf16.msra.mxu0 %v4677_v14 }
 0x3cf   : > { %1976 = vst.msk [vmem:[#allocation5 + $0xc0] sm:$0xff] %vm488_vm0, %v1972_v1  ;;  %v2201_v15 = vpack.c.bf16 %v2197_v23, %v6230_v11  ;;  %v2194_v48 = vld [vmem:[#allocation4 + $0x101] sm:$0xff]  ;;  %2203 = vst.msk [vmem:[#allocation5 + $0xe8] sm:$0xff] %vm488_vm0, %v6228_v10  ;;  %v6252_v26 = vld [vmem:[#allocation4 + $0x111] sm:$0xff]  ;;  %v1571_v23 = vpack.c.bf16 %v6221_v7, %v1563_v18 }
 0x3d0   : > { %v6241_v19 = vld [vmem:[#allocation4 + $0x100] sm:$0xff]  ;;  %v2200_v61 = vpack.c.bf16 %v6226_v21, %v2194_v48  ;;  %1474 = vst.msk [vmem:[#allocation4 + $0x201] sm:$0xff] %vm488_vm0, %v1445_v13  ;;  %v6248_v22 = vpack.c.bf16 %v2194_v48, %v2193_v2  ;;  %v4678_v41 = vld [vmem:[#allocation15 + $0x58] sm:$0xff]  }
 0x3d1   : > { %1581 = vrot.lane.b32.xlu0 %v1572_v8, %s5338_s25  ;;  %v6254_v31 = vld [vmem:[#allocation4 + $0x121] sm:$0xff]  ;;  %2205 = vst.msk [vmem:[#allocation5 + $0x118] sm:$0xff] %vm488_vm0, %v2201_v15  ;;  %v1968_v46 = vld [vmem:[#allocation4 + $0xf0] sm:$0xff]  ;;  %v4440_v53 = vpop.f32.mrb[20].mxu1  ;;  %4234 = vmatprep.subr.bf16.mxu0 %v4678_v41 }
 0x3d2   : > { %7190 = vst [vmem:[#allocation29_spill] sm:$0xff] %v6254_v31  ;;  %v1967_v32 = vld [vmem:[#allocation4 + $0xe0] sm:$0xff]  ;;  %1630 = vrot.lane.b32.xlu1 %v6190_v24, %s5333_s1  ;;  %v6263_v43 = vpack.c.bf16 %v6254_v31, %v6252_v26  ;;  %2204 = vst.msk [vmem:[#allocation5 + $0x100] sm:$0xff] %vm488_vm0, %v2200_v61  ;;  %v1970_v1 = vld [vmem:[#allocation4 + $0x110] sm:$0xff]  ;;  %v1466_v6 = vadd.f32 %v4440_v53, %v6196_v16  ;;  %v1457_v9 = vpop.f32.mrb[21].mxu1 }
 0x3d3   : > { %v6259_v36 = vld [vmem:[#allocation4 + $0x120] sm:$0xff]  ;;  %1850 = vst.msk [vmem:[#allocation5 + $0x98] sm:$0xff] %vm488_vm0, %v6248_v22  ;;  %v1973_v51 = vpack.c.bf16 %v1967_v32, %v1966_v57  ;;  %v2210_v0 = vld [vmem:[#allocation4 + $0x51] sm:$0xff]  ;;  %v1458_v48 = vadd.f32 %v1457_v9, %v6196_v16  ;;  %v4441_v18 = vpop.f32.mrb[22].mxu1 }
 0x3d4   : > { %v1481_v38 = vld [vmem:[#allocation4 + $0x1e0] sm:$0xff]  ;;  %1851 = vst.msk [vmem:[#allocation5 + $0xb0] sm:$0xff] %vm488_vm0, %v6263_v43  ;;  %v2212_v14 = vld [vmem:[#allocation4 + $0x71] sm:$0xff]  ;;  %1479 = vst.msk [vmem:[#allocation4 + $0x251] sm:$0xff] %vm488_vm0, %v1466_v6  ;;  %v1469_v41 = vadd.f32 %v4441_v18, %v6196_v16 }
 0x3d5   : > { %v1969_v47 = vld [vmem:[#allocation4 + $0x100] sm:$0xff]  ;;  %1579 = vrot.lane.b32.xlu0 %v1571_v23, %s5338_s25  ;;  %v4679_v57 = vld [vmem:[#allocation15 + $0x18] sm:$0xff]   ;;  %1977 = vst.msk [vmem:[#allocation5 + $0xd8] sm:$0xff] %vm488_vm0, %v1973_v51  ;;  %v4680_v53 = vld [vmem:[#allocation15 + $0x60] sm:$0xff]  }
 0x3d6   : > { %v1974_v55 = vpack.c.bf16 %v1969_v47, %v1968_v46  ;;  %v1971_v2 = vld [vmem:[#allocation4 + $0x120] sm:$0xff]  ;;  %v1460_v46 = vpop.f32.mrb[23].mxu1  ;;  %1628 = vrot.lane.b32.xlu1 %v6198_v29, %s5333_s1  ;;  %v6280_v47 = vld [vmem:[#allocation4 + $0x1f0] sm:$0xff]  ;;  %1477 = vst.msk [vmem:[#allocation4 + $0x231] sm:$0xff] %vm488_vm0, %v1458_v48  ;;  %4235 = vmatpush3.bf16.msra.mxu0 %v4679_v57  ;;  %1480 = vst.msk [vmem:[#allocation4 + $0x261] sm:$0xff] %vm488_vm0, %v1469_v41 }
 0x3d7   : > { %v1975_v13 = vpack.c.bf16 %v1971_v2, %v1970_v1  ;;  %v2211_v8 = vld [vmem:[#allocation4 + $0x61] sm:$0xff]  ;;  %v6283_v23 = vld [vmem:[#allocation4 + $0x211] sm:$0xff]  ;;  %v1574_v1 = vpack.c.bf16 %v6259_v36, %v6239_v17  ;;  %4236 = vmatprep.subr.bf16.mxu0 %v4680_v53 }
 0x3d8   : > { %v2213_v15 = vld [vmem:[#allocation4 + $0x81] sm:$0xff]  ;;  %1978 = vst.msk [vmem:[#allocation5 + $0xf0] sm:$0xff] %vm488_vm0, %v1974_v55  ;;  %v2216_v61 = vpack.c.bf16 %v2211_v8, %v2210_v0  ;;  %v1461_v55 = vadd.f32 %v1460_v46, %v6196_v16  ;;  %v1646_v2 = vld [vmem:[#allocation4 + $0x210] sm:$0xff]  ;;  %v1489_v0 = vpack.c.bf16 %v6280_v47, %v1481_v38  ;;  %v6303_v16 = vpack.c.bf16 %v6230_v11, %v6226_v21  ;;  %v4681_v11 = vld [vmem:[#allocation15 + $0x20] sm:$0xff]  }
 0x3d9   : > { %v2217_v32 = vpack.c.bf16 %v2213_v15, %v2212_v14  ;;  %1979 = vst.msk [vmem:[#allocation5 + $0x108] sm:$0xff] %vm488_vm0, %v1975_v13  ;;  %v6285_v51 = vld [vmem:[#allocation4 + $0x221] sm:$0xff]  ;;  %v1708_v6 = vld [vmem:[#allocation4 + $0x1f1] sm:$0xff]  ;;  %1585 = vrot.lane.b32.xlu0 %v1574_v1, %s5338_s25 }
 0x3da   : > { %2220 = vst.msk [vmem:[#allocation5 + $0x150] sm:$0xff] %vm488_vm0, %v2216_v61  ;;  %v6296_v9 = vpack.c.bf16 %v6285_v51, %v6283_v23  ;;  %v6298_v13 = vld [vmem:[#allocation4 + $0x201] sm:$0xff]  ;;  %1478 = vst.msk [vmem:[#allocation4 + $0x241] sm:$0xff] %vm488_vm0, %v1461_v55  ;;  %v2318_v15 = vld [vmem:[#allocation4 + $0x1f1] sm:$0xff]  ;;  %1634 = vrot.lane.b32.xlu1 %v6303_v16, %s5333_s1  ;;  %4237 = vmatpush3.bf16.msra.mxu0 %v4681_v11 }
 0x3db   : > { %2221 = vst.msk [vmem:[#allocation5 + $0x168] sm:$0xff] %vm488_vm0, %v2217_v32  ;;  %v6305_v8 = vld [vmem:[#allocation4 + $0x200] sm:$0xff]  ;;  %v6308_v38 = vpack.c.bf16 %v6298_v13, %v1708_v6  ;;  %1493 = vst.msk [vmem:[#allocation5] sm:$0xff] %vm488_vm0, %v1489_v0  ;;  %v6318_v21 = vld [vmem:[#allocation4 + $0xf0] sm:$0xff] }
 0x3dc   : > { %v1490_v14 = vpack.c.bf16 %v1646_v2, %v6305_v8  ;;  %v2319_v48 = vld [vmem:[#allocation4 + $0x201] sm:$0xff]  ;;  %1721 = vst.msk [vmem:[#allocation5 + $0x28] sm:$0xff] %vm488_vm0, %v6296_v9  ;;  %v1573_v61 = vpack.c.bf16 %v6241_v19, %v6318_v21  ;;  %v2320_v32 = vld [vmem:[#allocation4 + $0x211] sm:$0xff] }
 0x3dd   : > { %v4682_v18 = vld [vmem:[#allocation15 + $0x68] sm:$0xff]   ;;  %v2326_v57 = vpack.c.bf16 %v2319_v48, %v2318_v15  ;;  %1720 = vst.msk [vmem:[#allocation5 + $0x10] sm:$0xff] %vm488_vm0, %v6308_v38  ;;  %v6327_v0 = vld [vmem:[#allocation4 + $0x251] sm:$0xff] }
 0x3de   : > { %1494 = vst.msk [vmem:[#allocation5 + $0x18] sm:$0xff] %vm488_vm0, %v1490_v14  ;;  %v2321_v41 = vld [vmem:[#allocation4 + $0x221] sm:$0xff]  ;;  %1583 = vrot.lane.b32.xlu0 %v1573_v61, %s5338_s25  ;;  %4238 = vmatprep.subr.bf16.mxu0 %v4682_v18  ;;  %v6331_v15 = vld [vmem:[#allocation4 + $0x230] sm:$0xff] }
 0x3df   : > { %v1530_v46 = vld [vmem:[#allocation4 + $0x1e1] sm:$0xff]  ;;  %2330 = vst.msk [vmem:[#allocation5 + $0x128] sm:$0xff] %vm488_vm0, %v2326_v57  ;;  %v2327_v53 = vpack.c.bf16 %v2321_v41, %v2320_v32  ;;  %1632 = vrot.lane.b32.xlu1 %v6248_v22, %s5333_s1  ;;  %v1712_v48 = vld [vmem:[#allocation4 + $0x231] sm:$0xff] }
 0x3e0   : > { %v1647_v55 = vld [vmem:[#allocation4 + $0x220] sm:$0xff]  ;;  %v4684_v14 = vld [vmem:[#allocation15 + $0x70] sm:$0xff]   ;;  %v1538_v5 = vpack.c.bf16 %v1708_v6, %v1530_v46  ;;  %v1650_v57 = vld [vmem:[#allocation4 + $0x250] sm:$0xff] }
 0x3e1   : > { %v4683_v1 = vld [vmem:[#allocation15 + $0x28] sm:$0xff]   ;;  %2331 = vst.msk [vmem:[#allocation5 + $0x140] sm:$0xff] %vm488_vm0, %v2327_v53  ;;  %v1491_v32 = vpack.c.bf16 %v6331_v15, %v1647_v55  ;;  %v6340_v41 = vpack.c.bf16 %v1647_v55, %v1646_v2  ;;  %v2322_v46 = vld [vmem:[#allocation4 + $0x231] sm:$0xff]  ;;  %v4685_v55 = vld [vmem:[#allocation15 + $0x30] sm:$0xff]  }
 0x3e2   : > { %v1715_v11 = vld [vmem:[#allocation4 + $0x261] sm:$0xff]  ;;  %4239 = vmatpush3.bf16.msra.mxu0 %v4683_v1  ;;  %1546 = vrot.lane.b32.xlu0 %v1538_v5, %s5337_s28  ;;  %v2324_v53 = vld [vmem:[#allocation4 + $0x251] sm:$0xff] }
 0x3e3   : > { %v6336_v61 = vpack.c.bf16 %v1715_v11, %v6327_v0  ;;  %v6338_v18 = vld [vmem:[#allocation4 + $0x241] sm:$0xff]  ;;  %1495 = vst.msk [vmem:[#allocation5 + $0x30] sm:$0xff] %vm488_vm0, %v1491_v32  ;;  %1662 = vrot.lane.b32.xlu1 %v6340_v41, %s5337_s28  ;;  %4240 = vmatprep.subr.bf16.mxu0 %v4684_v14  ;;  %v4686_v1 = vld [vmem:[#allocation15 + $0x78] sm:$0xff]   ;;  %v1652_v14 = vpack.c.bf16 %v6305_v8, %v6280_v47 }
 0x3e4   : > { %v1649_v40 = vld [vmem:[#allocation4 + $0x240] sm:$0xff]  ;;  %v6343_v63 = vpack.c.bf16 %v6338_v18, %v1712_v48  ;;  %v2448_v2 = vld [vmem:[#allocation5 + $0x10] sm:$0xff]  ;;  %v2451_v32 = vld [vmem:[#allocation5 + $0x28] sm:$0xff]  ;;  %v1540_v47 = vpack.c.bf16 %v1712_v48, %v6285_v51 }
 0x3e5   : > { %v2323_v27 = vld [vmem:[#allocation4 + $0x241] sm:$0xff]  ;;  %v1492_v6 = vpack.c.bf16 %v1650_v57, %v1649_v40  ;;  %1723 = vst.msk [vmem:[#allocation5 + $0x58] sm:$0xff] %vm488_vm0, %v6336_v61  ;;  %4446 = vmatprep.mubr.msk.bf16.mxu1 %vm488_vm0, %v2448_v2  ;;  %v2469_v51 = vld [vmem:[#allocation5 + $0xb8] sm:$0xff]  ;;  %v2472_v48 = vld [vmem:[#allocation5 + $0xd0] sm:$0xff]  ;;  %v7192_v2 = vpack.c.bf16 %v6239_v17, %v6241_v19 }
 0x3e6   : > { %v2325_v45 = vld [vmem:[#allocation4 + $0x261] sm:$0xff]  ;;  %v2328_v11 = vpack.c.bf16 %v2323_v27, %v2322_v46  ;;  %1722 = vst.msk [vmem:[#allocation5 + $0x40] sm:$0xff] %vm488_vm0, %v6343_v63  ;;  %4447 = vmatmul.mubr.msk.bf16.vlgmr.msra.gmra.mrb[24].mxu1 %vm488_vm0, %v2451_v32  ;;  %4241 = vmatpush3.bf16.msra.mxu0 %v4685_v55  ;;  %v4687_v27 = vld [vmem:[#allocation15 + $0x38] sm:$0xff]   ;;  %v1863_v46 = vpack.c.bf16 %v6125_v34, %v6115_v25 }
 0x3e7   : > { %v2329_v31 = vpack.c.bf16 %v2325_v45, %v2324_v53  ;;  %1496 = vst.msk [vmem:[#allocation5 + $0x48] sm:$0xff] %vm488_vm0, %v1492_v6  ;;  %1756 = vrot.lane.b32.xlu0 %v1538_v5, %s5333_s1  ;;  %4242 = vmatprep.subr.bf16.mxu0 %v4686_v1  ;;  %v1539_v45 = vpack.c.bf16 %v6283_v23, %v6298_v13  ;;  %v1651_v23 = vld [vmem:[#allocation4 + $0x260] sm:$0xff]  ;;  %v2463_v13 = vld [vmem:[#allocation5 + $0x88] sm:$0xff]  ;;  %v2132_v17 = vld [vmem:[#allocation4 + $0x130] sm:$0xff] }
 0x3e8   : > { %2332 = vst.msk [vmem:[#allocation5 + $0x158] sm:$0xff] %vm488_vm0, %v2328_v11  ;;  %1934 = vrot.lane.b32.xlu1 %v6296_v9, %s5338_s25  ;;  %v2466_v8 = vld [vmem:[#allocation5 + $0xa0] sm:$0xff]  ;;  %v6379_v53 = vpack.c.bf16 %v1651_v23, %v1650_v57  ;;  %v1783_v25 = vpack.c.bf16 %v6112_v20, %v6132_v49  ;;  %v6388_v34 = vpack.c.bf16 %v1649_v40, %v6331_v15  ;;  %v2475_v20 = vld [vmem:[#allocation5 + $0xe8] sm:$0xff]  ;;  %v2484_v15 = vld [vmem:[#allocation5 + $0x130] sm:$0xff] }
 0x3e9   : > { %2333 = vst.msk [vmem:[#allocation5 + $0x170] sm:$0xff] %vm488_vm0, %v2329_v31  ;;  %v2460_v31 = vld [vmem:[#allocation5 + $0x70] sm:$0xff]  ;;  %v1541_v40 = vpack.c.bf16 %v6327_v0, %v6338_v18  ;;  %v2478_v49 = vld [vmem:[#allocation5 + $0x100] sm:$0xff]  ;;  %v2481_v0 = vld [vmem:[#allocation5 + $0x118] sm:$0xff]  ;;  %v2136_v11 = vpack.c.bf16 %v2132_v17, %v6259_v36 }
 0x3ea   : > { %4243 = vmatpush3.bf16.msra.mxu0 %v4687_v27  ;;  %v2493_v57 = vld [vmem:[#allocation5 + $0x178] sm:$0xff]  ;;  %v2337_v23 = vld [vmem:[#allocation4 + $0x182] sm:$0xff] }
 0x3eb   : > { %1548 = vrot.lane.b32.xlu0 %v1539_v45, %s5337_s28  ;;  %v2165_v32 = vld [vmem:[#allocation4 + $0x91] sm:$0xff] }
 0x3ec   : > { %1660 = vrot.lane.b32.xlu1 %v1652_v14, %s5337_s28  ;;  %v2457_v5 = vld [vmem:[#allocation5 + $0x58] sm:$0xff] }
 0x3ed   : > { %v2454_v6 = vld [vmem:[#allocation5 + $0x40] sm:$0xff]  ;;  %v2334_v36 = vld [vmem:[#allocation4 + $0x152] sm:$0xff] }
 0x3ee   : > { %4450 = vmatprep.mubr.msk.bf16.mxu1 %vm488_vm0, %v2454_v6  ;;  %v2255_v6 = vld [vmem:[#allocation4 + $0x22] sm:$0xff] }
 0x3ef   : > { %4451 = vmatmul.mubr.msk.bf16.gmra.mrb[28].mxu1 %vm488_vm0, %v2457_v5  ;;  %1758 = vrot.lane.b32.xlu0 %v1539_v45, %s5333_s1  ;;  %v6478_v45 = vpack.c.bf16 %v2165_v32, %v6152_v59  ;;  %v2262_v5 = vpack.c.bf16 %v2255_v6, %v6082_v62 }
 0x3f0   : > { %4454 = vmatprep.mubr.msk.bf16.mxu1 %vm488_vm0, %v2460_v31  ;;  %1874 = vrot.lane.b32.xlu1 %v1863_v46, %s5333_s1 }
 0x3f3   : > { %1550 = vrot.lane.b32.xlu0 %v1540_v47, %s5337_s28 }
 0x3f4   : > { %1932 = vrot.lane.b32.xlu1 %v6308_v38, %s5338_s25 }
 0x3f7   : > { %4455 = vmatmul.mubr.msk.bf16.gmra.mrb[32].mxu1 %vm488_vm0, %v2463_v13  ;;  %1760 = vrot.lane.b32.xlu0 %v1540_v47, %s5333_s1 }
 0x3f8   : > { %4458 = vmatprep.mubr.msk.bf16.mxu1 %vm488_vm0, %v2466_v8  ;;  %1666 = vrot.lane.b32.xlu1 %v6379_v53, %s5337_s28  ;;  %v2336_v8 = vld [vmem:[#allocation4 + $0x172] sm:$0xff] }
 0x3fb   : > { %1794 = vrot.lane.b32.xlu0 %v1783_v25, %s5337_s28  ;;  %v2343_v25 = vpack.c.bf16 %v2337_v23, %v2336_v8 }
 0x3fc   : > { %1664 = vrot.lane.b32.xlu1 %v6388_v34, %s5337_s28 }
 0x3ff   : > { %4459 = vmatmul.mubr.msk.bf16.gmra.mrb[36].mxu1 %vm488_vm0, %v2469_v51  ;;  %1826 = vrot.lane.b32.xlu0 %v6160_v3, %s5338_s25 }
 0x400   : > { %4462 = vmatprep.mubr.msk.bf16.mxu1 %vm488_vm0, %v2472_v48  ;;  %1906 = vrot.lane.b32.xlu1 %v6136_v30, %s5337_s28  ;;  %v2133_v30 = vpack.c.bf16 %v6216_v58, %v6221_v7  ;;  %v2490_v58 = vld [vmem:[#allocation5 + $0x160] sm:$0xff]  ;;  %v2134_v7 = vpack.c.bf16 %v6318_v21, %v6208_v44  ;;  %v7191_v44 = vpack.c.bf16 %v6143_v54, %v6045_v39 }
 0x403   : > { %1552 = vrot.lane.b32.xlu0 %v1541_v40, %s5337_s28 }
 0x404   : > { %1938 = vrot.lane.b32.xlu1 %v6336_v61, %s5338_s25 }
 0x407   : > { %4463 = vmatmul.mubr.msk.bf16.gmra.mrb[40].mxu1 %vm488_vm0, %v2475_v20  ;;  %1996 = vrot.lane.b32.xlu0 %v6080_v60, %s5333_s1  ;;  %v2487_v60 = vld [vmem:[#allocation5 + $0x148] sm:$0xff] }
 0x408   : > { %4466 = vmatprep.mubr.msk.bf16.mxu1 %vm488_vm0, %v2478_v49  ;;  %2108 = vrot.lane.b32.xlu1 %v6308_v38, %s5333_s1  ;;  %v2338_v49 = vld [vmem:[#allocation4 + $0x192] sm:$0xff] }
 0x40b   : > { %2028 = vrot.lane.b32.xlu0 %v6198_v29, %s5337_s28 }
 0x40c   : > { %2141 = vrot.lane.b32.xlu1 %v2133_v30, %s5337_s28 }
 0x40f   : > { %4467 = vmatmul.mubr.msk.bf16.gmra.mrb[44].mxu1 %vm488_vm0, %v2481_v0  ;;  %2060 = vrot.lane.b32.xlu0 %v1652_v14, %s5338_s25 }
 0x410   : > { %4470 = vmatprep.mubr.msk.bf16.mxu1 %vm488_vm0, %v2484_v15  ;;  %2174 = vrot.lane.b32.xlu1 %v6038_v35, %s5338_s25  ;;  %v2259_v15 = vld [vmem:[#allocation4 + $0x62] sm:$0xff] }
 0x413   : > { %1998 = vrot.lane.b32.xlu0 %v6059_v50, %s5333_s1 }
 0x414   : > { %2110 = vrot.lane.b32.xlu1 %v6296_v9, %s5333_s1 }
 0x415   : > { %v1514_v38 = vpop.permute.xlu0 %1513 }
 0x416   : > { %1526 = vst.msk [vmem:[#allocation5] sm:$0xff] %vm1525_vm1, %v1514_v38  ;;  %v6432_v50 = vpop.permute.xlu1 %1694  ;;  %v2341_v38 = vld [vmem:[#allocation4 + $0x1c2] sm:$0xff] }
 0x417   : > { %4471 = vmatmul.mubr.msk.bf16.gmra.mrb[48].mxu1 %vm488_vm0, %v2487_v60  ;;  %2030 = vrot.lane.b32.xlu0 %v6190_v24, %s5337_s28 }
 0x418   : > { %4474 = vmatprep.mubr.msk.bf16.mxu1 %vm488_vm0, %v2490_v58  ;;  %2143 = vrot.lane.b32.xlu1 %v2134_v7, %s5337_s28 }
 0x419   : > { %v6436_v9 = vpop.permute.xlu0 %1788 }
 0x41a   : > { %v1871_v21 = vpop.permute.xlu1 %1870 }
 0x41b   : > { %2062 = vrot.lane.b32.xlu0 %v6340_v41, %s5338_s25  ;;  %1881 = vst.msk [vmem:[#allocation5 + $0x80] sm:$0xff] %vm1525_vm1, %v1871_v21  ;;  %v2261_v21 = vld [vmem:[#allocation4 + $0x82] sm:$0xff] }
 0x41c   : > { %2176 = vrot.lane.b32.xlu1 %v7191_v44, %s5338_s25 }
 0x41d   : > { %v6446_v18 = vpop.permute.xlu0 %1822 }
 0x41e   : > { %v1903_v41 = vpop.permute.xlu1 %1902 }
 0x41f   : > { %4475 = vmatmul.mubr.msk.bf16.gmra.mrb[52].mxu1 %vm488_vm0, %v2493_v57  ;;  %2000 = vrot.lane.b32.xlu0 %v6150_v56, %s5333_s1  ;;  %1913 = vst.msk [vmem:[#allocation5 + $0x80] sm:$0xff] %vm1558_vm3, %v1903_v41 }
 0x420   : > { %1936 = vrot.lane.b32.xlu1 %v6343_v63, %s5338_s25 }
 0x421   : > { %v1516_v39 = vpop.permute.xlu0 %1515 }
 0x422   : > { %1527 = vst.msk [vmem:[#allocation5 + $0x18] sm:$0xff] %vm1525_vm1, %v1516_v39  ;;  %v6457_v56 = vpop.permute.xlu1 %1692  ;;  %v2405_v39 = vld [vmem:[#allocation4 + $0x131] sm:$0xff] }
 0x423   : > { %1762 = vrot.lane.b32.xlu0 %v1541_v40, %s5333_s1 }
 0x424   : > { %2145 = vrot.lane.b32.xlu1 %v7192_v2, %s5337_s28 }
 0x425   : > { %v6464_v1 = vpop.permute.xlu0 %1820 }
 0x426   : > { %v1869_v55 = vpop.permute.xlu1 %1868 }
 0x427   : > { %2032 = vrot.lane.b32.xlu0 %v6248_v22, %s5337_s28  ;;  %1880 = vst.msk [vmem:[#allocation5 + $0x68] sm:$0xff] %vm1525_vm1, %v1869_v55 }
 0x428   : > { %2178 = vrot.lane.b32.xlu1 %v6162_v4, %s5338_s25 }
 0x429   : > { %v6475_v27 = vpop.permute.xlu0 %1790 }
 0x42a   : > { %v1901_v19 = vpop.permute.xlu1 %1900 }
 0x42b   : > { %2002 = vrot.lane.b32.xlu0 %v6160_v3, %s5333_s1  ;;  %1912 = vst.msk [vmem:[#allocation5 + $0x68] sm:$0xff] %vm1558_vm3, %v1901_v19  ;;  %v2335_v3 = vld [vmem:[#allocation4 + $0x162] sm:$0xff] }
 0x42c   : > { %2114 = vrot.lane.b32.xlu1 %v6336_v61, %s5333_s1  ;;  %v2342_v14 = vpack.c.bf16 %v2335_v3, %v2334_v36 }
 0x42f   : > { %2034 = vrot.lane.b32.xlu0 %v6303_v16, %s5337_s28 }
 0x430   : > { %2147 = vrot.lane.b32.xlu1 %v2136_v11, %s5337_s28 }
 0x433   : > { %2066 = vrot.lane.b32.xlu0 %v6379_v53, %s5338_s25  ;;  %v1518_v61 = vpop.permute.xlu0 %1517 }
 0x434   : > { %2180 = vrot.lane.b32.xlu1 %v6478_v45, %s5338_s25  ;;  %1528 = vst.msk [vmem:[#allocation5 + $0x30] sm:$0xff] %vm1525_vm1, %v1518_v61  ;;  %v6485_v16 = vpop.permute.xlu1 %1698 }
 0x437   : > { %2238 = vrot.lane.b32.xlu0 %v6198_v29, %s5333_s1  ;;  %v6490_v59 = vpop.permute.xlu0 %1792 }
 0x438   : > { %2350 = vrot.lane.b32.xlu1 %v2342_v14, %s5333_s1  ;;  %v6493_v31 = vpop.permute.xlu1 %1696 }
 0x43b   : > { %2270 = vrot.lane.b32.xlu0 %v2262_v5, %s5337_s28  ;;  %v1520_v46 = vpop.permute.xlu0 %1519 }
 0x43c   : > { %2112 = vrot.lane.b32.xlu1 %v6343_v63, %s5333_s1  ;;  %1529 = vst.msk [vmem:[#allocation5 + $0x48] sm:$0xff] %vm1525_vm1, %v1520_v46  ;;  %v1873_v47 = vpop.permute.xlu1 %1872  ;;  %v7193_v63 = vpack.c.bf16 %v6034_v33, %v6042_v37 }
 0x43d   : > { %1882 = vst.msk [vmem:[#allocation5 + $0x98] sm:$0xff] %vm1525_vm1, %v1873_v47 }
 0x43f   : > { %2064 = vrot.lane.b32.xlu0 %v6388_v34, %s5338_s25  ;;  %v6504_v62 = vpop.permute.xlu0 %1824  ;;  %v2257_v34 = vld [vmem:[#allocation4 + $0x42] sm:$0xff] }
 0x440   : > { %2382 = vrot.lane.b32.xlu1 %v6038_v35, %s5337_s28  ;;  %v1905_v29 = vpop.permute.xlu1 %1904  ;;  %v2256_v35 = vld [vmem:[#allocation4 + $0x32] sm:$0xff] }
 0x441   : > { %1914 = vst.msk [vmem:[#allocation5 + $0x98] sm:$0xff] %vm1558_vm3, %v1905_v29  ;;  %v2263_v33 = vpack.c.bf16 %v2257_v34, %v2256_v35 }
 0x443   : > { %2302 = vrot.lane.b32.xlu0 %v7193_v63, %s5338_s25  ;;  %v1582_v13 = vpop.permute.xlu0 %1581 }
 0x444   : > { %2414 = vrot.lane.b32.xlu1 %v6192_v28, %s5338_s25  ;;  %v1631_v53 = vpop.permute.xlu1 %1630  ;;  %v7194_v28 = vpack.c.bf16 %v6143_v54, %v6049_v42  ;;  %v2258_v42 = vld [vmem:[#allocation4 + $0x52] sm:$0xff] }
 0x445   : > { %1641 = vst.msk [vmem:[#allocation5 + $0x20] sm:$0xff] %vm1525_vm1, %v1631_v53 }
 0x447   : > { %2240 = vrot.lane.b32.xlu0 %v6190_v24, %s5333_s1  ;;  %v1580_v51 = vpop.permute.xlu0 %1579  ;;  %v2339_v24 = vld [vmem:[#allocation4 + $0x1a2] sm:$0xff] }
 0x448   : > { %2352 = vrot.lane.b32.xlu1 %v2343_v25, %s5333_s1  ;;  %v1629_v37 = vpop.permute.xlu1 %1628  ;;  %v2344_v0 = vpack.c.bf16 %v2339_v24, %v2338_v49 }
 0x449   : > { %1640 = vst.msk [vmem:[#allocation5 + $0x8] sm:$0xff] %vm1525_vm1, %v1629_v37 }
 0x44b   : > { %2272 = vrot.lane.b32.xlu0 %v2263_v33, %s5337_s28  ;;  %v6523_v48 = vpop.permute.xlu0 %1585 }
 0x44c   : > { %2384 = vrot.lane.b32.xlu1 %v7194_v28, %s5337_s28  ;;  %v1635_v40 = vpop.permute.xlu1 %1634 }
 0x44d   : > { %1643 = vst.msk [vmem:[#allocation5 + $0x50] sm:$0xff] %vm1525_vm1, %v1635_v40 }
 0x44f   : > { %2304 = vrot.lane.b32.xlu0 %v6063_v52, %s5338_s25  ;;  %v2264_v52 = vpack.c.bf16 %v2259_v15, %v2258_v42 }
 0x450   : > { %2416 = vrot.lane.b32.xlu1 %v6228_v10, %s5338_s25  ;;  %v1584_v20 = vpop.permute.xlu0 %1583  ;;  %v2402_v10 = vld [vmem:[#allocation4 + $0x101] sm:$0xff] }
 0x451   : > { %v1633_v30 = vpop.permute.xlu1 %1632  ;;  %v2408_v7 = vpack.c.bf16 %v6252_v26, %v2402_v10 }
 0x452   : > { %1642 = vst.msk [vmem:[#allocation5 + $0x38] sm:$0xff] %vm1525_vm1, %v1633_v30 }
 0x453   : > { %2242 = vrot.lane.b32.xlu0 %v6248_v22, %s5333_s1 }
 0x454   : > { %2354 = vrot.lane.b32.xlu1 %v2344_v0, %s5333_s1  ;;  %v1547_v54 = vpop.permute.xlu0 %1546 }
 0x455   : > { %1559 = vst.msk [vmem:[#allocation5] sm:$0xff] %vm1558_vm3, %v1547_v54  ;;  %v1663_v60 = vpop.permute.xlu1 %1662 }
 0x456   : > { %1592 = vst.msk [vmem:[#allocation5] sm:$0xff] %vm1591_vm4, %v1580_v51 }
 0x457   : > { %1673 = vst.msk [vmem:[#allocation5 + $0x20] sm:$0xff] %vm1558_vm3, %v1663_v60  ;;  %2274 = vrot.lane.b32.xlu0 %v2264_v52, %s5337_s28 }
 0x458   : > { %1705 = vst.msk [vmem:[#allocation5 + $0x20] sm:$0xff] %vm1591_vm4, %v6432_v50  ;;  %2386 = vrot.lane.b32.xlu1 %v6162_v4, %s5337_s28  ;;  %v2340_v50 = vld [vmem:[#allocation4 + $0x1b2] sm:$0xff] }
 0x459   : > { %v1757_v22 = vpop.permute.xlu0 %1756  ;;  %v2345_v26 = vpack.c.bf16 %v2341_v38, %v2340_v50 }
 0x45a   : > { %1768 = vst.msk [vmem:[#allocation5 + $0x60] sm:$0xff] %vm1525_vm1, %v1757_v22  ;;  %v1935_v58 = vpop.permute.xlu1 %1934 }
 0x45b   : > { %1800 = vst.msk [vmem:[#allocation5 + $0x60] sm:$0xff] %vm1558_vm3, %v6436_v9  ;;  %2306 = vrot.lane.b32.xlu0 %v6177_v12, %s5338_s25  ;;  %v2260_v12 = vld [vmem:[#allocation4 + $0x72] sm:$0xff] }
 0x45c   : > { %1945 = vst.msk [vmem:[#allocation5 + $0x80] sm:$0xff] %vm1591_vm4, %v1935_v58  ;;  %1832 = vst.msk [vmem:[#allocation5 + $0x60] sm:$0xff] %vm1591_vm4, %v6464_v1  ;;  %2418 = vrot.lane.b32.xlu1 %v2408_v7, %s5338_s25  ;;  %v2265_v57 = vpack.c.bf16 %v2261_v21, %v2260_v12  ;;  %v7196_v1 = vld [vmem:[#allocation28_spill] sm:$0xff] }
 0x45d   : > { %v1549_v4 = vpop.permute.xlu0 %1548 }
 0x45e   : > { %1560 = vst.msk [vmem:[#allocation5 + $0x18] sm:$0xff] %vm1558_vm3, %v1549_v4  ;;  %v1661_v44 = vpop.permute.xlu1 %1660 }
 0x45f   : > { %1593 = vst.msk [vmem:[#allocation5 + $0x18] sm:$0xff] %vm1591_vm4, %v1582_v13  ;;  %2244 = vrot.lane.b32.xlu0 %v6263_v43, %s5333_s1  ;;  %v2450_v11 = vld [vmem:[#allocation5 + $0x20] sm:$0xff] }
 0x460   : > { %1672 = vst.msk [vmem:[#allocation5 + $0x8] sm:$0xff] %vm1558_vm3, %v1661_v44  ;;  %2356 = vrot.lane.b32.xlu1 %v2345_v26, %s5333_s1 }
 0x461   : > { %1704 = vst.msk [vmem:[#allocation5 + $0x8] sm:$0xff] %vm1591_vm4, %v6457_v56  ;;  %v1759_v9 = vpop.permute.xlu0 %1758  ;;  %v7195_v56 = vld [vmem:[#allocation29_spill] sm:$0xff] }
 0x462   : > { %1769 = vst.msk [vmem:[#allocation5 + $0x78] sm:$0xff] %vm1525_vm1, %v1759_v9  ;;  %v1875_v41 = vpop.permute.xlu1 %1874  ;;  %v2409_v55 = vpack.c.bf16 %v2405_v39, %v7195_v56 }
 0x463   : > { %1801 = vst.msk [vmem:[#allocation5 + $0x78] sm:$0xff] %vm1558_vm3, %v6475_v27  ;;  %2276 = vrot.lane.b32.xlu0 %v2265_v57, %s5337_s28  ;;  %v2458_v25 = vld [vmem:[#allocation5 + $0x60] sm:$0xff] }
 0x464   : > { %1883 = vst.msk [vmem:[#allocation5 + $0xb0] sm:$0xff] %vm1525_vm1, %v1875_v41  ;;  %2388 = vrot.lane.b32.xlu1 %v6478_v45, %s5337_s28  ;;  %v2462_v35 = vld [vmem:[#allocation5 + $0x80] sm:$0xff]  ;;  %s5238_s28 = scalar_lea.vmem %s5237_s26, 2048 }
 0x465   : > { %1833 = vst.msk [vmem:[#allocation5 + $0x78] sm:$0xff] %vm1591_vm4, %v6446_v18  ;;  %v1551_v43 = vpop.permute.xlu0 %1550  ;;  %v2446_v18 = vld [vmem:[#allocation5] sm:$0xff]  ;;  %p5240_p8 = scmp.lt.s32.totalorder %s5238_s28, %s5232_s27 }
 0x466   : > { %1561 = vst.msk [vmem:[#allocation5 + $0x30] sm:$0xff] %vm1558_vm3, %v1551_v43  ;;  %v1933_v2 = vpop.permute.xlu1 %1932  ;;  %v2449_v3 = vld [vmem:[#allocation5 + $0x18] sm:$0xff] }
 0x467   : > { %1594 = vst.msk [vmem:[#allocation5 + $0x30] sm:$0xff] %vm1591_vm4, %v1584_v20  ;;  %1944 = vst.msk [vmem:[#allocation5 + $0x68] sm:$0xff] %vm1591_vm4, %v1933_v2  ;;  %2308 = vrot.lane.b32.xlu0 %v7196_v1, %s5338_s25  ;;  %p5241_p4 = por %p5240_p8, %p5239_p2 }
 0x468   : > { %v2447_v17 = vld [vmem:[#allocation5 + $0x8] sm:$0xff]  ;;  %2420 = vrot.lane.b32.xlu1 %v2409_v55, %s5338_s25 }
 0x469   : > { %2725 = vmatprep.mubr.bf16.mxu0 %v2447_v17  ;;  %v1761_v19 = vpop.permute.xlu0 %1760  ;;  %p5242_p10 = pnand %p5241_p4, %p5235_p0 }
 0x46a   : > { %2726 = vmatmul.mubr.bf16.vlgmr.msra.gmra.mrb[16].mxu0 %v2446_v18  ;;  %1770 = vst.msk [vmem:[#allocation5 + $0x90] sm:$0xff] %vm1525_vm1, %v1761_v19  ;;  %v1667_v32 = vpop.permute.xlu1 %1666 }
 0x46b   : > { %2733 = vmatprep.mubr.bf16.mxu0 %v2450_v11  ;;  %1802 = vst.msk [vmem:[#allocation5 + $0x90] sm:$0xff] %vm1558_vm3, %v6490_v59  ;;  %1675 = vst.msk [vmem:[#allocation5 + $0x50] sm:$0xff] %vm1558_vm3, %v1667_v32 }
 0x46c   : > { %1834 = vst.msk [vmem:[#allocation5 + $0x90] sm:$0xff] %vm1591_vm4, %v6504_v62  ;;  %1707 = vst.msk [vmem:[#allocation5 + $0x50] sm:$0xff] %vm1591_vm4, %v6485_v16  ;;  %v2461_v28 = vld [vmem:[#allocation5 + $0x78] sm:$0xff] }
 0x46d   : > { %v1795_v27 = vpop.permute.xlu0 %1794 }
 0x46e   : > { %v1665_v45 = vpop.permute.xlu1 %1664  ;;  %v2452_v59 = vld [vmem:[#allocation5 + $0x30] sm:$0xff]  ;;  %v2459_v23 = vld [vmem:[#allocation5 + $0x68] sm:$0xff] }
 0x46f   : > { %1674 = vst.msk [vmem:[#allocation5 + $0x38] sm:$0xff] %vm1558_vm3, %v1665_v45 }
 0x470   : > { %1706 = vst.msk [vmem:[#allocation5 + $0x38] sm:$0xff] %vm1591_vm4, %v6493_v31 }
 0x471   : > { %v1827_v61 = vpop.permute.xlu0 %1826 }
 0x472   : > { %2734 = vmatmul.mubr.bf16.gmra.mrb[20].mxu0 %v2449_v3  ;;  %v1907_v36 = vpop.permute.xlu1 %1906 }
 0x473   : > { %1915 = vst.msk [vmem:[#allocation5 + $0xb0] sm:$0xff] %vm1558_vm3, %v1907_v36  ;;  %v2456_v31 = vld [vmem:[#allocation5 + $0x50] sm:$0xff] }
 0x474   : > { %v2464_v15 = vld [vmem:[#allocation5 + $0x90] sm:$0xff] }
 0x475   : > { %v1553_v14 = vpop.permute.xlu0 %1552 }
 0x476   : > { %1562 = vst.msk [vmem:[#allocation5 + $0x48] sm:$0xff] %vm1558_vm3, %v1553_v14  ;;  %v1939_v6 = vpop.permute.xlu1 %1938 }
 0x477   : > { %1595 = vst.msk [vmem:[#allocation5 + $0x48] sm:$0xff] %vm1591_vm4, %v6523_v48  ;;  %1947 = vst.msk [vmem:[#allocation5 + $0xb0] sm:$0xff] %vm1591_vm4, %v1939_v6  ;;  %v2453_v16 = vld [vmem:[#allocation5 + $0x38] sm:$0xff] }
 0x478   : > { %2741 = vmatprep.mubr.bf16.mxu0 %v2453_v16 }
 0x479   : > { %v1997_v5 = vpop.permute.xlu0 %1996 }
 0x47a   : > { %2742 = vmatmul.mubr.bf16.gmra.mrb[24].mxu0 %v2452_v59  ;;  %2008 = vst.msk [vmem:[#allocation5 + $0xc0] sm:$0xff] %vm1525_vm1, %v1997_v5  ;;  %v2109_v46 = vpop.permute.xlu1 %2108 }
 0x47b   : > { %2749 = vmatprep.mubr.bf16.mxu0 %v2456_v31  ;;  %2120 = vst.msk [vmem:[#allocation5 + $0xc8] sm:$0xff] %vm1525_vm1, %v2109_v46 }
 0x47d   : > { %v2029_v47 = vpop.permute.xlu0 %2028 }
 0x47e   : > { %2040 = vst.msk [vmem:[#allocation5 + $0xc0] sm:$0xff] %vm1558_vm3, %v2029_v47  ;;  %v2142_v62 = vpop.permute.xlu1 %2141  ;;  %v2455_v29 = vld [vmem:[#allocation5 + $0x48] sm:$0xff]  ;;  %v2468_v42 = vld [vmem:[#allocation5 + $0xb0] sm:$0xff] }
 0x47f   : > { %2153 = vst.msk [vmem:[#allocation5 + $0xc8] sm:$0xff] %vm1558_vm3, %v2142_v62 }
 0x481   : > { %v2061_v63 = vpop.permute.xlu0 %2060 }
 0x482   : > { %2750 = vmatmul.mubr.bf16.gmra.mrb[28].mxu0 %v2455_v29  ;;  %2072 = vst.msk [vmem:[#allocation5 + $0xc0] sm:$0xff] %vm1591_vm4, %v2061_v63  ;;  %v2175_v13 = vpop.permute.xlu1 %2174 }
 0x483   : > { %2757 = vmatprep.mubr.bf16.mxu0 %v2459_v23  ;;  %2186 = vst.msk [vmem:[#allocation5 + $0xc8] sm:$0xff] %vm1591_vm4, %v2175_v13 }
 0x485   : > { %v1999_v8 = vpop.permute.xlu0 %1998 }
 0x486   : > { %2009 = vst.msk [vmem:[#allocation5 + $0xd8] sm:$0xff] %vm1525_vm1, %v1999_v8  ;;  %v2111_v53 = vpop.permute.xlu1 %2110 }
 0x487   : > { %2121 = vst.msk [vmem:[#allocation5 + $0xe0] sm:$0xff] %vm1525_vm1, %v2111_v53 }
 0x489   : > { %v2031_v34 = vpop.permute.xlu0 %2030  ;;  %v2470_v44 = vld [vmem:[#allocation5 + $0xc0] sm:$0xff] }
 0x48a   : > { %2758 = vmatmul.mubr.bf16.gmra.mrb[32].mxu0 %v2458_v25  ;;  %2041 = vst.msk [vmem:[#allocation5 + $0xd8] sm:$0xff] %vm1558_vm3, %v2031_v34  ;;  %v2144_v51 = vpop.permute.xlu1 %2143  ;;  %v2471_v58 = vld [vmem:[#allocation5 + $0xc8] sm:$0xff] }
 0x48b   : > { %2765 = vmatprep.mubr.bf16.mxu0 %v2462_v35  ;;  %2154 = vst.msk [vmem:[#allocation5 + $0xe0] sm:$0xff] %vm1558_vm3, %v2144_v51 }
 0x48d   : > { %v2063_v33 = vpop.permute.xlu0 %2062 }
 0x48e   : > { %2073 = vst.msk [vmem:[#allocation5 + $0xd8] sm:$0xff] %vm1591_vm4, %v2063_v33  ;;  %v2177_v37 = vpop.permute.xlu1 %2176 }
 0x48f   : > { %2187 = vst.msk [vmem:[#allocation5 + $0xe0] sm:$0xff] %vm1591_vm4, %v2177_v37 }
 0x491   : > { %v2001_v48 = vpop.permute.xlu0 %2000 }
 0x492   : > { %2766 = vmatmul.mubr.bf16.gmra.mrb[36].mxu0 %v2461_v28  ;;  %2010 = vst.msk [vmem:[#allocation5 + $0xf0] sm:$0xff] %vm1525_vm1, %v2001_v48  ;;  %v1937_v40 = vpop.permute.xlu1 %1936 }
 0x493   : > { %1946 = vst.msk [vmem:[#allocation5 + $0x98] sm:$0xff] %vm1591_vm4, %v1937_v40 }
 0x495   : > { %v1763_v24 = vpop.permute.xlu0 %1762  ;;  %v2473_v41 = vld [vmem:[#allocation5 + $0xd8] sm:$0xff] }
 0x496   : > { %1771 = vst.msk [vmem:[#allocation5 + $0xa8] sm:$0xff] %vm1525_vm1, %v1763_v24  ;;  %v2146_v20 = vpop.permute.xlu1 %2145  ;;  %v2474_v26 = vld [vmem:[#allocation5 + $0xe0] sm:$0xff] }
 0x497   : > { %1803 = vst.msk [vmem:[#allocation5 + $0xa8] sm:$0xff] %vm1558_vm3, %v1795_v27 }
 0x498   : > { %1835 = vst.msk [vmem:[#allocation5 + $0xa8] sm:$0xff] %vm1591_vm4, %v1827_v61 }
 0x499   : > { %v2033_v49 = vpop.permute.xlu0 %2032 }
 0x49a   : > { %2042 = vst.msk [vmem:[#allocation5 + $0xf0] sm:$0xff] %vm1558_vm3, %v2033_v49  ;;  %v2179_v30 = vpop.permute.xlu1 %2178  ;;  %v2465_v0 = vld [vmem:[#allocation5 + $0x98] sm:$0xff] }
 0x49b   : > { %2773 = vmatprep.mubr.bf16.mxu0 %v2465_v0 }
 0x49c   : > { %2774 = vmatmul.mubr.bf16.gmra.mrb[40].mxu0 %v2464_v15 }
 0x49d   : > { %v2003_v54 = vpop.permute.xlu0 %2002  ;;  %2781 = vmatprep.mubr.bf16.mxu0 %v2468_v42 }
 0x49e   : > { %2011 = vst.msk [vmem:[#allocation5 + $0x108] sm:$0xff] %vm1525_vm1, %v2003_v54  ;;  %v2115_v52 = vpop.permute.xlu1 %2114 }
 0x49f   : > { %2123 = vst.msk [vmem:[#allocation5 + $0x110] sm:$0xff] %vm1525_vm1, %v2115_v52  ;;  %v2467_v22 = vld [vmem:[#allocation5 + $0xa8] sm:$0xff] }
 0x4a1   : > { %v2035_v60 = vpop.permute.xlu0 %2034 }
 0x4a2   : > { %2043 = vst.msk [vmem:[#allocation5 + $0x108] sm:$0xff] %vm1558_vm3, %v2035_v60  ;;  %v2148_v10 = vpop.permute.xlu1 %2147 }
 0x4a3   : > { %2156 = vst.msk [vmem:[#allocation5 + $0x110] sm:$0xff] %vm1558_vm3, %v2148_v10 }
 0x4a4   : > { %2782 = vmatmul.mubr.bf16.gmra.mrb[44].mxu0 %v2467_v22 }
 0x4a5   : > { %v2067_v7 = vpop.permute.xlu0 %2066  ;;  %2789 = vmatprep.mubr.bf16.mxu0 %v2471_v58 }
 0x4a6   : > { %2075 = vst.msk [vmem:[#allocation5 + $0x108] sm:$0xff] %vm1591_vm4, %v2067_v7  ;;  %v2181_v38 = vpop.permute.xlu1 %2180 }
 0x4a7   : > { %2189 = vst.msk [vmem:[#allocation5 + $0x110] sm:$0xff] %vm1591_vm4, %v2181_v38 }
 0x4a9   : > { %v2239_v4 = vpop.permute.xlu0 %2238 }
 0x4aa   : > { %2250 = vst.msk [vmem:[#allocation5 + $0x120] sm:$0xff] %vm1525_vm1, %v2239_v4  ;;  %v2351_v50 = vpop.permute.xlu1 %2350 }
 0x4ab   : > { %2362 = vst.msk [vmem:[#allocation5 + $0x128] sm:$0xff] %vm1525_vm1, %v2351_v50 }
 0x4ac   : > { %2790 = vmatmul.mubr.bf16.gmra.mrb[48].mxu0 %v2470_v44 }
 0x4ad   : > { %v2271_v21 = vpop.permute.xlu0 %2270  ;;  %2797 = vmatprep.mubr.bf16.mxu0 %v2474_v26  ;;  %v2479_v16 = vld [vmem:[#allocation5 + $0x108] sm:$0xff] }
 0x4ae   : > { %2282 = vst.msk [vmem:[#allocation5 + $0x120] sm:$0xff] %vm1558_vm3, %v2271_v21  ;;  %v2113_v12 = vpop.permute.xlu1 %2112  ;;  %v2480_v32 = vld [vmem:[#allocation5 + $0x110] sm:$0xff] }
 0x4af   : > { %2122 = vst.msk [vmem:[#allocation5 + $0xf8] sm:$0xff] %vm1525_vm1, %v2113_v12 }
 0x4b0   : > { %2155 = vst.msk [vmem:[#allocation5 + $0xf8] sm:$0xff] %vm1558_vm3, %v2146_v20 }
 0x4b1   : > { %2188 = vst.msk [vmem:[#allocation5 + $0xf8] sm:$0xff] %vm1591_vm4, %v2179_v30  ;;  %v2065_v9 = vpop.permute.xlu0 %2064 }
 0x4b2   : > { %2074 = vst.msk [vmem:[#allocation5 + $0xf0] sm:$0xff] %vm1591_vm4, %v2065_v9  ;;  %v2383_v57 = vpop.permute.xlu1 %2382 }
 0x4b3   : > { %2394 = vst.msk [vmem:[#allocation5 + $0x128] sm:$0xff] %vm1558_vm3, %v2383_v57 }
 0x4b4   : > { %2798 = vmatmul.mubr.bf16.gmra.mrb[52].mxu0 %v2473_v41 }
 0x4b5   : > { %v2303_v39 = vpop.permute.xlu0 %2302 }
 0x4b6   : > { %2314 = vst.msk [vmem:[#allocation5 + $0x120] sm:$0xff] %vm1591_vm4, %v2303_v39  ;;  %v2415_v43 = vpop.permute.xlu1 %2414  ;;  %v4688_v39 = vld [vmem:[#allocation18] sm:$0xff]  }
 0x4b7   : > { %2426 = vst.msk [vmem:[#allocation5 + $0x128] sm:$0xff] %vm1591_vm4, %v2415_v43  ;;  %4478 = vmatprep.subr.bf16.mxu1 %v4688_v39  ;;  %v4689_v43 = vld [vmem:[#allocation18 + $0x8] sm:$0xff]  }
 0x4b8   : > { %v2477_v2 = vld [vmem:[#allocation5 + $0xf8] sm:$0xff]  ;;  %4479 = vmatpush3.bf16.msra.mxu1 %v4688_v39 }
 0x4b9   : > { %v6626_v56 = vpop.f32.mrb[24].mxu1  ;;  %v2241_v55 = vpop.permute.xlu0 %2240  ;;  %2805 = vmatprep.mubr.bf16.mxu0 %v2477_v2  ;;  %v2476_v19 = vld [vmem:[#allocation5 + $0xf0] sm:$0xff]  ;;  %4480 = vmatprep.subr.bf16.mxu1 %v4689_v43 }
 0x4ba   : > { %2251 = vst.msk [vmem:[#allocation5 + $0x138] sm:$0xff] %vm1525_vm1, %v2241_v55  ;;  %v6629_v1 = vpop.f32.mrb[25].mxu1  ;;  %v2353_v17 = vpop.permute.xlu1 %2352  ;;  %v6708_v55 = vld [vmem:[#allocation17] ss:$0 sm:$0xff] }
 0x4bb   : > { %2363 = vst.msk [vmem:[#allocation5 + $0x140] sm:$0xff] %vm1525_vm1, %v2353_v17  ;;  %v6632_v18 = vpop.f32.mrb[26].mxu1 }
 0x4bc   : > { %2806 = vmatmul.mubr.bf16.gmra.mrb[56].mxu0 %v2476_v19  ;;  %v6634_v11 = vpop.f32.mrb[27].mxu1  ;;  %4481 = vmatpush3.bf16.msra.mxu1 %v4689_v43 }
 0x4bd   : > { %v2273_v27 = vpop.permute.xlu0 %2272  ;;  %2813 = vmatprep.mubr.bf16.mxu0 %v2480_v32  ;;  %v2482_v13 = vld [vmem:[#allocation5 + $0x120] sm:$0xff] }
 0x4be   : > { %2283 = vst.msk [vmem:[#allocation5 + $0x138] sm:$0xff] %vm1558_vm3, %v2273_v27  ;;  %v2385_v45 = vpop.permute.xlu1 %2384  ;;  %v2483_v5 = vld [vmem:[#allocation5 + $0x128] sm:$0xff] }
 0x4bf   : > { %2395 = vst.msk [vmem:[#allocation5 + $0x140] sm:$0xff] %vm1558_vm3, %v2385_v45 }
 0x4c1   : > { %v2305_v61 = vpop.permute.xlu0 %2304 }
 0x4c2   : > { %v6638_v3 = vpop.f32.mrb[28].mxu1  ;;  %2315 = vst.msk [vmem:[#allocation5 + $0x138] sm:$0xff] %vm1591_vm4, %v2305_v61  ;;  %v2417_v14 = vpop.permute.xlu1 %2416 }
 0x4c3   : > { %v6641_v36 = vpop.f32.mrb[29].mxu1  ;;  %2427 = vst.msk [vmem:[#allocation5 + $0x140] sm:$0xff] %vm1591_vm4, %v2417_v14 }
 0x4c4   : > { %v6644_v6 = vpop.f32.mrb[30].mxu1  ;;  %2814 = vmatmul.mubr.bf16.gmra.mrb[60].mxu0 %v2479_v16 }
 0x4c5   : > { %v6646_v59 = vpop.f32.mrb[31].mxu1  ;;  %v2243_v31 = vpop.permute.xlu0 %2242  ;;  %2821 = vmatprep.mubr.bf16.mxu0 %v2483_v5 }
 0x4c6   : > { %2252 = vst.msk [vmem:[#allocation5 + $0x150] sm:$0xff] %vm1525_vm1, %v2243_v31  ;;  %v2355_v46 = vpop.permute.xlu1 %2354 }
 0x4c7   : > { %2364 = vst.msk [vmem:[#allocation5 + $0x158] sm:$0xff] %vm1525_vm1, %v2355_v46 }
 0x4c9   : > { %v2275_v62 = vpop.permute.xlu0 %2274  ;;  %v2485_v48 = vld [vmem:[#allocation5 + $0x138] sm:$0xff] }
 0x4ca   : > { %v6650_v47 = vpop.f32.mrb[32].mxu1  ;;  %2284 = vst.msk [vmem:[#allocation5 + $0x150] sm:$0xff] %vm1558_vm3, %v2275_v62  ;;  %v2387_v63 = vpop.permute.xlu1 %2386  ;;  %v2486_v53 = vld [vmem:[#allocation5 + $0x140] sm:$0xff] }
 0x4cb   : > { %v6653_v29 = vpop.f32.mrb[33].mxu1  ;;  %2396 = vst.msk [vmem:[#allocation5 + $0x158] sm:$0xff] %vm1558_vm3, %v2387_v63 }
 0x4cc   : > { %v6656_v23 = vpop.f32.mrb[34].mxu1  ;;  %2822 = vmatmul.mubr.bf16.gmra.mrb[64].mxu0 %v2482_v13 }
 0x4cd   : > { %v6658_v8 = vpop.f32.mrb[35].mxu1  ;;  %v2307_v25 = vpop.permute.xlu0 %2306  ;;  %2829 = vmatprep.mubr.bf16.mxu0 %v2486_v53 }
 0x4ce   : > { %2316 = vst.msk [vmem:[#allocation5 + $0x150] sm:$0xff] %vm1591_vm4, %v2307_v25  ;;  %v2419_v34 = vpop.permute.xlu1 %2418 }
 0x4cf   : > { %2428 = vst.msk [vmem:[#allocation5 + $0x158] sm:$0xff] %vm1591_vm4, %v2419_v34 }
 0x4d1   : > { %v2245_v51 = vpop.permute.xlu0 %2244 }
 0x4d2   : > { %v6662_v35 = vpop.f32.mrb[36].mxu1  ;;  %2253 = vst.msk [vmem:[#allocation5 + $0x168] sm:$0xff] %vm1525_vm1, %v2245_v51  ;;  %v2357_v37 = vpop.permute.xlu1 %2356 }
 0x4d3   : > { %v6665_v33 = vpop.f32.mrb[37].mxu1  ;;  %2365 = vst.msk [vmem:[#allocation5 + $0x170] sm:$0xff] %vm1525_vm1, %v2357_v37 }
 0x4d4   : > { %v6668_v28 = vpop.f32.mrb[38].mxu1  ;;  %2830 = vmatmul.mubr.bf16.gmra.mrb[68].mxu0 %v2485_v48 }
 0x4d5   : > { %v6670_v40 = vpop.f32.mrb[39].mxu1  ;;  %v2277_v24 = vpop.permute.xlu0 %2276  ;;  %v2488_v52 = vld [vmem:[#allocation5 + $0x150] sm:$0xff] }
 0x4d6   : > { %2285 = vst.msk [vmem:[#allocation5 + $0x168] sm:$0xff] %vm1558_vm3, %v2277_v24  ;;  %v2389_v20 = vpop.permute.xlu1 %2388  ;;  %v2489_v49 = vld [vmem:[#allocation5 + $0x158] sm:$0xff] }
 0x4d7   : > { %2397 = vst.msk [vmem:[#allocation5 + $0x170] sm:$0xff] %vm1558_vm3, %v2389_v20  ;;  %2837 = vmatprep.mubr.bf16.mxu0 %v2489_v49 }
 0x4d9   : > { %v2309_v0 = vpop.permute.xlu0 %2308 }
 0x4da   : > { %v6674_v30 = vpop.f32.mrb[40].mxu1  ;;  %2317 = vst.msk [vmem:[#allocation5 + $0x168] sm:$0xff] %vm1591_vm4, %v2309_v0  ;;  %v2421_v42 = vpop.permute.xlu1 %2420 }
 0x4db   : > { %v6677_v15 = vpop.f32.mrb[41].mxu1  ;;  %2429 = vst.msk [vmem:[#allocation5 + $0x170] sm:$0xff] %vm1591_vm4, %v2421_v42 }
 0x4dc   : > { %v6680_v54 = vpop.f32.mrb[42].mxu1  ;;  %2838 = vmatmul.mubr.bf16.gmra.mrb[72].mxu0 %v2488_v52 }
 0x4dd   : > { %v6682_v60 = vpop.f32.mrb[43].mxu1 }
 0x4e1   : > { %v2491_v38 = vld [vmem:[#allocation5 + $0x168] sm:$0xff] }
 0x4e2   : > { %v6684_v10 = vpop.f32.mrb[44].mxu1  ;;  %v2492_v58 = vld [vmem:[#allocation5 + $0x170] sm:$0xff] }
 0x4e3   : > { %v6686_v22 = vpop.f32.mrb[45].mxu1  ;;  %2845 = vmatprep.mubr.bf16.mxu0 %v2492_v58 }
 0x4e4   : > { %v6688_v7 = vpop.f32.mrb[46].mxu1  ;;  %2846 = vmatmul.mubr.bf16.gmra.mrb[76].mxu0 %v2491_v38 }
 0x4e5   : > { %v6690_v4 = vpop.f32.mrb[47].mxu1 }
 0x4ea   : > { %v6692_v50 = vpop.f32.mrb[48].mxu1 }
 0x4eb   : > { %v6694_v44 = vpop.f32.mrb[49].mxu1 }
 0x4ec   : > { %v6696_v26 = vpop.f32.mrb[50].mxu1 }
 0x4ed   : > { %v6698_v21 = vpop.f32.mrb[51].mxu1 }
 0x4f2   : > { %v6700_v12 = vpop.f32.mrb[52].mxu1 }
 0x4f3   : > { %v6702_v9 = vpop.f32.mrb[53].mxu1 }
 0x4f4   : > { %v6704_v57 = vpop.f32.mrb[54].mxu1 }
 0x4f5   : > { %v6706_v41 = vpop.f32.mrb[55].mxu1 }
 0x53d   : > { %v4244_v2 = vpop.f32.mrb[16].mxu0 }
 0x53e   : > { %v4245_v17 = vpop.f32.mrb[17].mxu0 }
 0x53f   : > { %v4246_v19 = vadd.f32 %v4245_v17, %v4244_v2  ;;  %v4247_v32 = vpop.f32.mrb[18].mxu0 }
 0x540   : > { %v4248_v27 = vpop.f32.mrb[19].mxu0 }
 0x541   : > { %v2728_v45 = vadd.f32 %v4246_v19, %v6708_v55  ;;  %v4249_v61 = vadd.f32 %v4248_v27, %v4247_v32 }
 0x543   : > { %v6712_v14 = vadd.f32 %v6629_v1, %v2728_v45  ;;  %v2731_v16 = vadd.f32 %v4249_v61, %v6708_v55 }
 0x545   : > { %v4105_v5 = vmul.f32 -1.442695, %v6712_v14  ;;  %v6717_v31 = vadd.f32 %v6634_v11, %v2731_v16  ;;  %v4250_v46 = vpop.f32.mrb[20].mxu0 }
 0x546   : > { %v4251_v62 = vpop.f32.mrb[21].mxu0 }
 0x547   : > { %4722 = vpow2.f32 %v4105_v5  ;;  %v4106_v63 = vmul.f32 -1.442695, %v6717_v31  ;;  %v4252_v13 = vadd.f32 %v4251_v62, %v4250_v46  ;;  %v4253_v53 = vpop.f32.mrb[22].mxu0 }
 0x548   : > { %v4254_v25 = vpop.f32.mrb[23].mxu0 }
 0x549   : > { %4724 = vpow2.f32 %v4106_v63  ;;  %v2736_v34 = vadd.f32 %v4252_v13, %v6708_v55  ;;  %v4255_v1 = vadd.f32 %v4254_v25, %v4253_v53 }
 0x54b   : > { %v6722_v51 = vadd.f32 %v6626_v56, %v2736_v34  ;;  %v2739_v37 = vadd.f32 %v4255_v1, %v6708_v55 }
 0x54d   : > { %v4107_v11 = vmul.f32 -1.442695, %v6722_v51  ;;  %v6727_v48 = vadd.f32 %v6632_v18, %v2739_v37  ;;  %v4256_v24 = vpop.f32.mrb[24].mxu0 }
 0x54e   : > { %v4257_v20 = vpop.f32.mrb[25].mxu0 }
 0x54f   : > { %4726 = vpow2.f32 %v4107_v11  ;;  %v4108_v49 = vmul.f32 -1.442695, %v6727_v48  ;;  %v4258_v0 = vadd.f32 %v4257_v20, %v4256_v24  ;;  %v4259_v42 = vpop.f32.mrb[26].mxu0 }
 0x550   : > { %v4260_v52 = vpop.f32.mrb[27].mxu0 }
 0x551   : > { %v4723_v58 = vpop.eup %4722  ;;  %4728 = vpow2.f32 %v4108_v49  ;;  %v2744_v56 = vadd.f32 %v4258_v0, %v6708_v55  ;;  %v4261_v38 = vadd.f32 %v4260_v52, %v4259_v42 }
 0x552   : > { %v3111_v39 = vadd.f32 1.0, %v4723_v58 }
 0x553   : > { %v4725_v43 = vpop.eup %4724  ;;  %v6732_v2 = vadd.f32 %v6641_v36, %v2744_v56  ;;  %v2747_v18 = vadd.f32 %v4261_v38, %v6708_v55 }
 0x554   : > { %4730 = vrcp.f32 %v3111_v39  ;;  %v3112_v17 = vadd.f32 1.0, %v4725_v43 }
 0x555   : > { %v4109_v19 = vmul.f32 -1.442695, %v6732_v2  ;;  %v6737_v32 = vadd.f32 %v6646_v59, %v2747_v18  ;;  %v4262_v27 = vpop.f32.mrb[28].mxu0 }
 0x556   : > { %4732 = vrcp.f32 %v3112_v17  ;;  %v4263_v45 = vpop.f32.mrb[29].mxu0 }
 0x557   : > { %4734 = vpow2.f32 %v4109_v19  ;;  %v4110_v61 = vmul.f32 -1.442695, %v6737_v32  ;;  %v4264_v16 = vadd.f32 %v4263_v45, %v4262_v27  ;;  %v4265_v5 = vpop.f32.mrb[30].mxu0 }
 0x558   : > { %v4266_v46 = vpop.f32.mrb[31].mxu0 }
 0x559   : > { %v4727_v36 = vpop.eup %4726  ;;  %4736 = vpow2.f32 %v4110_v61  ;;  %v2752_v62 = vadd.f32 %v4264_v16, %v6708_v55  ;;  %v4267_v63 = vadd.f32 %v4266_v46, %v4265_v5 }
 0x55a   : > { %v3113_v13 = vadd.f32 1.0, %v4727_v36 }
 0x55b   : > { %v4729_v53 = vpop.eup %4728  ;;  %v6742_v25 = vadd.f32 %v6638_v3, %v2752_v62  ;;  %v2755_v59 = vadd.f32 %v4267_v63, %v6708_v55 }
 0x55c   : > { %4738 = vrcp.f32 %v3113_v13  ;;  %v3114_v34 = vadd.f32 1.0, %v4729_v53 }
 0x55d   : > { %v4111_v1 = vmul.f32 -1.442695, %v6742_v25  ;;  %v6747_v37 = vadd.f32 %v6644_v6, %v2755_v59  ;;  %v4268_v11 = vpop.f32.mrb[32].mxu0 }
 0x55e   : > { %v4731_v24 = vpop.eup %4730  ;;  %4740 = vrcp.f32 %v3114_v34  ;;  %v4269_v20 = vpop.f32.mrb[33].mxu0 }
 0x55f   : > { %4742 = vpow2.f32 %v4111_v1  ;;  %v4112_v49 = vmul.f32 -1.442695, %v6747_v37  ;;  %v4270_v0 = vadd.f32 %v4269_v20, %v4268_v11  ;;  %v4271_v42 = vpop.f32.mrb[34].mxu0  ;;  %v3207_v52 = vmul.f32 %v4731_v24, %v6712_v14 }
 0x560   : > { %v4733_v3 = vpop.eup %4732  ;;  %v4272_v58 = vpop.f32.mrb[35].mxu0 }
 0x561   : > { %v4735_v56 = vpop.eup %4734  ;;  %v3208_v38 = vmul.f32 %v4733_v3, %v6717_v31  ;;  %4744 = vpow2.f32 %v4112_v49  ;;  %v2760_v6 = vadd.f32 %v4270_v0, %v6708_v55  ;;  %v4273_v39 = vadd.f32 %v4272_v58, %v4271_v42 }
 0x562   : > { %v3115_v43 = vadd.f32 1.0, %v4735_v56 }
 0x563   : > { %v4737_v18 = vpop.eup %4736  ;;  %v6754_v17 = vadd.f32 %v6653_v29, %v2760_v6  ;;  %v2763_v19 = vadd.f32 %v4273_v39, %v6708_v55  ;;  %v3239_v27 = vpack.c.bf16 %v3208_v38, %v3207_v52 }
 0x564   : > { %4746 = vrcp.f32 %v3115_v43  ;;  %v3116_v45 = vadd.f32 1.0, %v4737_v18 }
 0x565   : > { %v4113_v14 = vmul.f32 -1.442695, %v6754_v17  ;;  %v6759_v61 = vadd.f32 %v6658_v8, %v2763_v19  ;;  %v4274_v31 = vpop.f32.mrb[36].mxu0  ;;  %4482 = vmatprep.mubr.msk.bf16.mxu1 %vm488_vm0, %v3239_v27 }
 0x566   : > { %v4739_v16 = vpop.eup %4738  ;;  %4748 = vrcp.f32 %v3116_v45  ;;  %v4275_v5 = vpop.f32.mrb[37].mxu0 }
 0x567   : > { %4750 = vpow2.f32 %v4113_v14  ;;  %v4114_v29 = vmul.f32 -1.442695, %v6759_v61  ;;  %v4276_v46 = vadd.f32 %v4275_v5, %v4274_v31  ;;  %v4277_v36 = vpop.f32.mrb[38].mxu0  ;;  %v3209_v63 = vmul.f32 %v4739_v16, %v6722_v51 }
 0x568   : > { %v4741_v62 = vpop.eup %4740  ;;  %v4278_v13 = vpop.f32.mrb[39].mxu0 }
 0x569   : > { %v4743_v53 = vpop.eup %4742  ;;  %v3210_v59 = vmul.f32 %v4741_v62, %v6727_v48  ;;  %4752 = vpow2.f32 %v4114_v29  ;;  %v2768_v8 = vadd.f32 %v4276_v46, %v6708_v55  ;;  %v4279_v34 = vadd.f32 %v4278_v13, %v4277_v36 }
 0x56a   : > { %v3117_v1 = vadd.f32 1.0, %v4743_v53 }
 0x56b   : > { %v4745_v11 = vpop.eup %4744  ;;  %v3240_v24 = vpack.c.bf16 %v3210_v59, %v3209_v63  ;;  %v6767_v20 = vadd.f32 %v6650_v47, %v2768_v8  ;;  %v2771_v49 = vadd.f32 %v4279_v34, %v6708_v55 }
 0x56c   : > { %4754 = vrcp.f32 %v3117_v1  ;;  %v3118_v0 = vadd.f32 1.0, %v4745_v11 }
 0x56d   : > { %v4115_v51 = vmul.f32 -1.442695, %v6767_v20  ;;  %v6772_v42 = vadd.f32 %v6656_v23, %v2771_v49  ;;  %4483 = vmatmul.mubr.msk.bf16.vlgmr.msra.gmra.mrb[56].mxu1 %vm488_vm0, %v3240_v24 }
 0x56e   : > { %v4747_v48 = vpop.eup %4746  ;;  %4756 = vrcp.f32 %v3118_v0 }
 0x56f   : > { %4758 = vpow2.f32 %v4115_v51  ;;  %v4116_v3 = vmul.f32 -1.442695, %v6772_v42  ;;  %v4280_v58 = vpop.f32.mrb[40].mxu0  ;;  %v3211_v56 = vmul.f32 %v4747_v48, %v6732_v2 }
 0x570   : > { %v4749_v52 = vpop.eup %4748  ;;  %v4281_v6 = vpop.f32.mrb[41].mxu0 }
 0x571   : > { %v4751_v47 = vpop.eup %4750  ;;  %v3212_v38 = vmul.f32 %v4749_v52, %v6737_v32  ;;  %4760 = vpow2.f32 %v4116_v3  ;;  %v4282_v43 = vadd.f32 %v4281_v6, %v4280_v58  ;;  %v4283_v23 = vpop.f32.mrb[42].mxu0 }
 0x572   : > { %v3119_v39 = vadd.f32 1.0, %v4751_v47  ;;  %v4284_v19 = vpop.f32.mrb[43].mxu0 }
 0x573   : > { %v4753_v18 = vpop.eup %4752  ;;  %v3241_v27 = vpack.c.bf16 %v3212_v38, %v3211_v56  ;;  %v2776_v14 = vadd.f32 %v4282_v43, %v6708_v55  ;;  %v4285_v31 = vadd.f32 %v4284_v19, %v4283_v23 }
 0x574   : > { %4762 = vrcp.f32 %v3119_v39  ;;  %v3120_v45 = vadd.f32 1.0, %v4753_v18 }
 0x575   : > { %4486 = vmatprep.mubr.msk.bf16.mxu1 %vm488_vm0, %v3241_v27  ;;  %v6781_v2 = vadd.f32 %v6665_v33, %v2776_v14  ;;  %v2779_v32 = vadd.f32 %v4285_v31, %v6708_v55 }
 0x576   : > { %v4755_v16 = vpop.eup %4754  ;;  %4764 = vrcp.f32 %v3120_v45 }
 0x577   : > { %v4117_v29 = vmul.f32 -1.442695, %v6781_v2  ;;  %v6786_v46 = vadd.f32 %v6670_v40, %v2779_v32  ;;  %v4286_v36 = vpop.f32.mrb[44].mxu0  ;;  %v3213_v63 = vmul.f32 %v4755_v16, %v6742_v25 }
 0x578   : > { %v4757_v5 = vpop.eup %4756  ;;  %v4287_v53 = vpop.f32.mrb[45].mxu0 }
 0x579   : > { %v4759_v62 = vpop.eup %4758  ;;  %v3214_v13 = vmul.f32 %v4757_v5, %v6747_v37  ;;  %4766 = vpow2.f32 %v4117_v29  ;;  %v4118_v33 = vmul.f32 -1.442695, %v6786_v46  ;;  %v4288_v8 = vadd.f32 %v4287_v53, %v4286_v36  ;;  %v4289_v34 = vpop.f32.mrb[46].mxu0 }
 0x57a   : > { %v3121_v59 = vadd.f32 1.0, %v4759_v62  ;;  %v4290_v11 = vpop.f32.mrb[47].mxu0 }
 0x57b   : > { %v4761_v1 = vpop.eup %4760  ;;  %v3242_v24 = vpack.c.bf16 %v3214_v13, %v3213_v63  ;;  %v2784_v40 = vadd.f32 %v4288_v8, %v6708_v55  ;;  %v4291_v0 = vadd.f32 %v4290_v11, %v4289_v34 }
 0x57c   : > { %4768 = vrcp.f32 %v3121_v59  ;;  %v3122_v49 = vadd.f32 1.0, %v4761_v1 }
 0x57d   : > { %4770 = vpow2.f32 %v4118_v33  ;;  %4487 = vmatmul.mubr.msk.bf16.gmra.mrb[60].mxu1 %vm488_vm0, %v3242_v24  ;;  %v6794_v37 = vadd.f32 %v6662_v35, %v2784_v40  ;;  %v2787_v51 = vadd.f32 %v4291_v0, %v6708_v55 }
 0x57e   : > { %v4763_v25 = vpop.eup %4762  ;;  %4772 = vrcp.f32 %v3122_v49 }
 0x57f   : > { %v4119_v3 = vmul.f32 -1.442695, %v6794_v37  ;;  %v6799_v52 = vadd.f32 %v6668_v28, %v2787_v51  ;;  %v4292_v58 = vpop.f32.mrb[48].mxu0  ;;  %v3215_v47 = vmul.f32 %v4763_v25, %v6754_v17 }
 0x580   : > { %v4765_v48 = vpop.eup %4764  ;;  %v4293_v38 = vpop.f32.mrb[49].mxu0 }
 0x581   : > { %v3216_v56 = vmul.f32 %v4765_v48, %v6759_v61  ;;  %4774 = vpow2.f32 %v4119_v3  ;;  %v4120_v6 = vmul.f32 -1.442695, %v6799_v52  ;;  %v4294_v39 = vadd.f32 %v4293_v38, %v4292_v58  ;;  %v4295_v35 = vpop.f32.mrb[50].mxu0 }
 0x582   : > { %v4296_v43 = vpop.f32.mrb[51].mxu0 }
 0x583   : > { %v3243_v23 = vpack.c.bf16 %v3216_v56, %v3215_v47  ;;  %v4767_v18 = vpop.eup %4766  ;;  %4776 = vpow2.f32 %v4120_v6  ;;  %v2792_v19 = vadd.f32 %v4294_v39, %v6708_v55  ;;  %v4297_v27 = vadd.f32 %v4296_v43, %v4295_v35 }
 0x584   : > { %v3123_v28 = vadd.f32 1.0, %v4767_v18 }
 0x585   : > { %4490 = vmatprep.mubr.msk.bf16.mxu1 %vm488_vm0, %v3243_v23  ;;  %v6807_v17 = vadd.f32 %v6677_v15, %v2792_v19  ;;  %v2795_v61 = vadd.f32 %v4297_v27, %v6708_v55 }
 0x586   : > { %v4769_v45 = vpop.eup %4768  ;;  %4778 = vrcp.f32 %v3123_v28 }
 0x587   : > { %v4771_v14 = vpop.eup %4770  ;;  %v4121_v32 = vmul.f32 -1.442695, %v6807_v17  ;;  %v6812_v5 = vadd.f32 %v6682_v60, %v2795_v61  ;;  %v4298_v29 = vpop.f32.mrb[52].mxu0  ;;  %v3217_v36 = vmul.f32 %v4769_v45, %v6767_v20 }
 0x588   : > { %v4773_v31 = vpop.eup %4772  ;;  %v3124_v16 = vadd.f32 1.0, %v4771_v14  ;;  %v4299_v63 = vpop.f32.mrb[53].mxu0 }
 0x589   : > { %v3218_v62 = vmul.f32 %v4773_v31, %v6772_v42  ;;  %v4122_v15 = vmul.f32 -1.442695, %v6812_v5  ;;  %v4300_v13 = vadd.f32 %v4299_v63, %v4298_v29  ;;  %v4301_v53 = vpop.f32.mrb[54].mxu0 }
 0x58a   : > { %4780 = vrcp.f32 %v3124_v16  ;;  %v4302_v59 = vpop.f32.mrb[55].mxu0 }
 0x58b   : > { %4782 = vpow2.f32 %v4121_v32  ;;  %v3244_v33 = vpack.c.bf16 %v3218_v62, %v3217_v36  ;;  %v4775_v8 = vpop.eup %4774  ;;  %v2800_v34 = vadd.f32 %v4300_v13, %v6708_v55  ;;  %v4303_v60 = vadd.f32 %v4302_v59, %v4301_v53 }
 0x58c   : > { %4784 = vpow2.f32 %v4122_v15  ;;  %v3125_v1 = vadd.f32 1.0, %v4775_v8 }
 0x58d   : > { %4491 = vmatmul.mubr.msk.bf16.gmra.mrb[64].mxu1 %vm488_vm0, %v3244_v33  ;;  %v4777_v20 = vpop.eup %4776  ;;  %v6820_v42 = vadd.f32 %v6674_v30, %v2800_v34  ;;  %v2803_v11 = vadd.f32 %v4303_v60, %v6708_v55 }
 0x58e   : > { %4786 = vrcp.f32 %v3125_v1  ;;  %v3126_v24 = vadd.f32 1.0, %v4777_v20 }
 0x58f   : > { %v4123_v49 = vmul.f32 -1.442695, %v6820_v42  ;;  %v6825_v40 = vadd.f32 %v6680_v54, %v2803_v11  ;;  %v4304_v0 = vpop.f32.mrb[56].mxu0 }
 0x590   : > { %4788 = vrcp.f32 %v3126_v24  ;;  %v4305_v25 = vpop.f32.mrb[57].mxu0  ;;  %v4779_v51 = vpop.eup %4778 }
 0x591   : > { %4790 = vpow2.f32 %v4123_v49  ;;  %v4124_v48 = vmul.f32 -1.442695, %v6825_v40  ;;  %v4306_v3 = vadd.f32 %v4305_v25, %v4304_v0  ;;  %v4307_v58 = vpop.f32.mrb[58].mxu0  ;;  %v3219_v39 = vmul.f32 %v4779_v51, %v6781_v2 }
 0x592   : > { %v4308_v30 = vpop.f32.mrb[59].mxu0 }
 0x593   : > { %4792 = vpow2.f32 %v4124_v48  ;;  %v2808_v56 = vadd.f32 %v4306_v3, %v6708_v55  ;;  %v4309_v38 = vadd.f32 %v4308_v30, %v4307_v58 }
 0x594   : > { %v4781_v47 = vpop.eup %4780 }
 0x595   : > { %v4783_v6 = vpop.eup %4782  ;;  %v3220_v54 = vmul.f32 %v4781_v47, %v6786_v46  ;;  %v6832_v23 = vadd.f32 %v6686_v22, %v2808_v56  ;;  %v2811_v18 = vadd.f32 %v4309_v38, %v6708_v55 }
 0x596   : > { %v4785_v35 = vpop.eup %4784  ;;  %v3127_v43 = vadd.f32 1.0, %v4783_v6 }
 0x597   : > { %v3128_v19 = vadd.f32 1.0, %v4785_v35  ;;  %v3245_v27 = vpack.c.bf16 %v3220_v54, %v3219_v39  ;;  %v4125_v28 = vmul.f32 -1.442695, %v6832_v23  ;;  %v6837_v45 = vadd.f32 %v6690_v4, %v2811_v18  ;;  %v4310_v61 = vpop.f32.mrb[60].mxu0 }
 0x598   : > { %4794 = vrcp.f32 %v3127_v43  ;;  %v4787_v14 = vpop.eup %4786  ;;  %v4311_v2 = vpop.f32.mrb[61].mxu0 }
 0x599   : > { %4796 = vrcp.f32 %v3128_v19  ;;  %4494 = vmatprep.mubr.msk.bf16.mxu1 %vm488_vm0, %v3245_v27  ;;  %v4126_v22 = vmul.f32 -1.442695, %v6837_v45  ;;  %v4312_v46 = vadd.f32 %v4311_v2, %v4310_v61  ;;  %v4313_v31 = vpop.f32.mrb[62].mxu0  ;;  %v3221_v32 = vmul.f32 %v4787_v14, %v6794_v37 }
 0x59a   : > { %4798 = vpow2.f32 %v4125_v28  ;;  %v4789_v16 = vpop.eup %4788  ;;  %v4314_v29 = vpop.f32.mrb[63].mxu0 }
 0x59b   : > { %v4791_v36 = vpop.eup %4790  ;;  %v3222_v62 = vmul.f32 %v4789_v16, %v6799_v52  ;;  %4800 = vpow2.f32 %v4126_v22  ;;  %v2816_v4 = vadd.f32 %v4312_v46, %v6708_v55  ;;  %v4315_v63 = vadd.f32 %v4314_v29, %v4313_v31 }
 0x59c   : > { %v3129_v15 = vadd.f32 1.0, %v4791_v36 }
 0x59d   : > { %v4793_v13 = vpop.eup %4792  ;;  %v6845_v53 = vadd.f32 %v6684_v10, %v2816_v4  ;;  %v2819_v59 = vadd.f32 %v4315_v63, %v6708_v55  ;;  %v3246_v33 = vpack.c.bf16 %v3222_v62, %v3221_v32 }
 0x59e   : > { %4802 = vrcp.f32 %v3129_v15  ;;  %v3130_v8 = vadd.f32 1.0, %v4793_v13 }
 0x59f   : > { %v4127_v37 = vmul.f32 -1.442695, %v6845_v53  ;;  %v6850_v34 = vadd.f32 %v6688_v7, %v2819_v59  ;;  %v4316_v52 = vpop.f32.mrb[64].mxu0  ;;  %4495 = vmatmul.mubr.msk.bf16.gmra.mrb[68].mxu1 %vm488_vm0, %v3246_v33 }
 0x5a0   : > { %4804 = vrcp.f32 %v3130_v8  ;;  %v4317_v60 = vpop.f32.mrb[65].mxu0 }
 0x5a1   : > { %4806 = vpow2.f32 %v4127_v37  ;;  %v4128_v10 = vmul.f32 -1.442695, %v6850_v34  ;;  %v4318_v20 = vadd.f32 %v4317_v60, %v4316_v52  ;;  %v4319_v11 = vpop.f32.mrb[66].mxu0 }
 0x5a2   : > { %v4795_v1 = vpop.eup %4794  ;;  %v4320_v0 = vpop.f32.mrb[67].mxu0 }
 0x5a3   : > { %v4797_v24 = vpop.eup %4796  ;;  %v3223_v49 = vmul.f32 %v4795_v1, %v6807_v17  ;;  %4808 = vpow2.f32 %v4128_v10  ;;  %v2824_v7 = vadd.f32 %v4318_v20, %v6708_v55  ;;  %v4321_v48 = vadd.f32 %v4320_v0, %v4319_v11 }
 0x5a4   : > { %v4799_v25 = vpop.eup %4798  ;;  %v3224_v51 = vmul.f32 %v4797_v24, %v6812_v5 }
 0x5a5   : > { %v3131_v3 = vadd.f32 1.0, %v4799_v25  ;;  %v4801_v58 = vpop.eup %4800  ;;  %v6858_v30 = vadd.f32 %v6694_v44, %v2824_v7  ;;  %v2827_v47 = vadd.f32 %v4321_v48, %v6708_v55 }
 0x5a6   : > { %v3247_v56 = vpack.c.bf16 %v3224_v51, %v3223_v49  ;;  %v3132_v38 = vadd.f32 1.0, %v4801_v58 }
 0x5a7   : > { %4810 = vrcp.f32 %v3131_v3  ;;  %v4129_v17 = vmul.f32 -1.442695, %v6858_v30  ;;  %v6863_v6 = vadd.f32 %v6698_v21, %v2827_v47  ;;  %v4322_v5 = vpop.f32.mrb[68].mxu0 }
 0x5a8   : > { %4498 = vmatprep.mubr.msk.bf16.mxu1 %vm488_vm0, %v3247_v56  ;;  %v4803_v39 = vpop.eup %4802  ;;  %4812 = vrcp.f32 %v3132_v38  ;;  %v4323_v54 = vpop.f32.mrb[69].mxu0 }
 0x5a9   : > { %4814 = vpow2.f32 %v4129_v17  ;;  %v4130_v44 = vmul.f32 -1.442695, %v6863_v6  ;;  %v4324_v35 = vadd.f32 %v4323_v54, %v4322_v5  ;;  %v4325_v43 = vpop.f32.mrb[70].mxu0  ;;  %v3225_v19 = vmul.f32 %v4803_v39, %v6820_v42 }
 0x5aa   : > { %v4805_v18 = vpop.eup %4804  ;;  %v4326_v27 = vpop.f32.mrb[71].mxu0 }
 0x5ab   : > { %v4807_v28 = vpop.eup %4806  ;;  %v3226_v61 = vmul.f32 %v4805_v18, %v6825_v40  ;;  %4816 = vpow2.f32 %v4130_v44  ;;  %v2832_v21 = vadd.f32 %v4324_v35, %v6708_v55  ;;  %v4327_v14 = vadd.f32 %v4326_v27, %v4325_v43 }
 0x5ac   : > { %v3133_v2 = vadd.f32 1.0, %v4807_v28 }
 0x5ad   : > { %v4809_v22 = vpop.eup %4808  ;;  %v6871_v46 = vadd.f32 %v6692_v50, %v2832_v21  ;;  %v2835_v31 = vadd.f32 %v4327_v14, %v6708_v55  ;;  %v3248_v16 = vpack.c.bf16 %v3226_v61, %v3225_v19 }
 0x5ae   : > { %4818 = vrcp.f32 %v3133_v2  ;;  %v3134_v32 = vadd.f32 1.0, %v4809_v22 }
 0x5af   : > { %v4131_v42 = vmul.f32 -1.442695, %v6871_v46  ;;  %v6876_v29 = vadd.f32 %v6696_v26, %v2835_v31  ;;  %v4328_v40 = vpop.f32.mrb[72].mxu0  ;;  %4499 = vmatmul.mubr.msk.bf16.gmra.mrb[72].mxu1 %vm488_vm0, %v3248_v16 }
 0x5b0   : > { %4820 = vrcp.f32 %v3134_v32  ;;  %v4329_v62 = vpop.f32.mrb[73].mxu0 }
 0x5b1   : > { %v4811_v36 = vpop.eup %4810  ;;  %4822 = vpow2.f32 %v4131_v42  ;;  %v4132_v50 = vmul.f32 -1.442695, %v6876_v29  ;;  %v4330_v4 = vadd.f32 %v4329_v62, %v4328_v40  ;;  %v4331_v63 = vpop.f32.mrb[74].mxu0 }
 0x5b2   : > { %v4813_v15 = vpop.eup %4812  ;;  %v3227_v13 = vmul.f32 %v4811_v36, %v6832_v23  ;;  %v4332_v59 = vpop.f32.mrb[75].mxu0 }
 0x5b3   : > { %v4815_v33 = vpop.eup %4814  ;;  %v3228_v8 = vmul.f32 %v4813_v15, %v6837_v45  ;;  %4824 = vpow2.f32 %v4132_v50  ;;  %v2840_v26 = vadd.f32 %v4330_v4, %v6708_v55  ;;  %v4333_v37 = vadd.f32 %v4332_v59, %v4331_v63 }
 0x5b4   : > { %v3135_v52 = vadd.f32 1.0, %v4815_v33 }
 0x5b5   : > { %v4817_v60 = vpop.eup %4816  ;;  %v6884_v1 = vadd.f32 %v6702_v9, %v2840_v26  ;;  %v2843_v10 = vadd.f32 %v4333_v37, %v6708_v55  ;;  %v3249_v20 = vpack.c.bf16 %v3228_v8, %v3227_v13  ;;  %v6906_v13 = vld [vmem:[#allocation20] ss:$0 sm:$0xff] }
 0x5b6   : > { %4826 = vrcp.f32 %v3135_v52  ;;  %v3136_v11 = vadd.f32 1.0, %v4817_v60 }
 0x5b7   : > { %v4133_v23 = vmul.f32 -1.442695, %v6884_v1  ;;  %v3004_v24 = vadd.f32 %v6706_v41, %v2843_v10  ;;  %v4334_v49 = vpop.f32.mrb[76].mxu0  ;;  %4502 = vmatprep.mubr.msk.bf16.mxu1 %vm488_vm0, %v3249_v20 }
 0x5b8   : > { %v4819_v45 = vpop.eup %4818  ;;  %4828 = vrcp.f32 %v3136_v11  ;;  %v4335_v0 = vpop.f32.mrb[77].mxu0 }
 0x5b9   : > { %4830 = vpow2.f32 %v4133_v23  ;;  %v4134_v25 = vmul.f32 -1.442695, %v3004_v24  ;;  %v4336_v51 = vadd.f32 %v4335_v0, %v4334_v49  ;;  %v4337_v9 = vpop.f32.mrb[78].mxu0  ;;  %v3229_v48 = vmul.f32 %v4819_v45, %v6845_v53 }
 0x5ba   : > { %v4821_v7 = vpop.eup %4820  ;;  %v4338_v3 = vpop.f32.mrb[79].mxu0 }
 0x5bb   : > { %v4823_v58 = vpop.eup %4822  ;;  %v3230_v47 = vmul.f32 %v4821_v7, %v6850_v34  ;;  %4832 = vpow2.f32 %v4134_v25  ;;  %v2848_v41 = vadd.f32 %v4336_v51, %v6708_v55  ;;  %v4339_v56 = vadd.f32 %v4338_v3, %v4337_v9 }
 0x5bc   : > { %v3137_v38 = vadd.f32 1.0, %v4823_v58 }
 0x5bd   : > { %v4825_v17 = vpop.eup %4824  ;;  %v3009_v5 = vadd.f32 %v6700_v12, %v2848_v41  ;;  %v2851_v39 = vadd.f32 %v4339_v56, %v6708_v55  ;;  %v3250_v54 = vpack.c.bf16 %v3230_v47, %v3229_v48 }
 0x5be   : > { %4834 = vrcp.f32 %v3137_v38  ;;  %v3138_v44 = vadd.f32 1.0, %v4825_v17 }
 0x5bf   : > { %v4135_v35 = vmul.f32 -1.442695, %v3009_v5  ;;  %v3012_v53 = vadd.f32 %v6704_v57, %v2851_v39  ;;  %4503 = vmatmul.mubr.msk.bf16.gmra.mrb[76].mxu1 %vm488_vm0, %v3250_v54 }
 0x5c0   : > { %v4827_v43 = vpop.eup %4826  ;;  %4836 = vrcp.f32 %v3138_v44 }
 0x5c1   : > { %4838 = vpow2.f32 %v4135_v35  ;;  %v4136_v34 = vmul.f32 -1.442695, %v3012_v53  ;;  %v3231_v27 = vmul.f32 %v4827_v43, %v6858_v30 }
 0x5c2   : > { %v4829_v18 = vpop.eup %4828 }
 0x5c3   : > { %v4831_v19 = vpop.eup %4830  ;;  %v3232_v12 = vmul.f32 %v4829_v18, %v6863_v6  ;;  %4840 = vpow2.f32 %v4136_v34 }
 0x5c4   : > { %v3139_v55 = vadd.f32 1.0, %v4831_v19 }
 0x5c5   : > { %v4833_v28 = vpop.eup %4832  ;;  %v3251_v61 = vpack.c.bf16 %v3232_v12, %v3231_v27 }
 0x5c6   : > { %4842 = vrcp.f32 %v3139_v55  ;;  %v3140_v21 = vadd.f32 1.0, %v4833_v28 }
 0x5c7   : > { %4506 = vmatprep.mubr.msk.bf16.mxu1 %vm488_vm0, %v3251_v61 }
 0x5c8   : > { %v4835_v57 = vpop.eup %4834  ;;  %4844 = vrcp.f32 %v3140_v21 }
 0x5c9   : > { %v3233_v22 = vmul.f32 %v4835_v57, %v6871_v46 }
 0x5ca   : > { %v4837_v14 = vpop.eup %4836 }
 0x5cb   : > { %v4839_v2 = vpop.eup %4838  ;;  %v3234_v31 = vmul.f32 %v4837_v14, %v6876_v29 }
 0x5cc   : > { %v3141_v16 = vadd.f32 1.0, %v4839_v2 }
 0x5cd   : > { %v4841_v30 = vpop.eup %4840  ;;  %v3252_v32 = vpack.c.bf16 %v3234_v31, %v3233_v22 }
 0x5ce   : > { %4846 = vrcp.f32 %v3141_v16  ;;  %v3142_v6 = vadd.f32 1.0, %v4841_v30 }
 0x5cf   : > { %4507 = vmatmul.mubr.msk.bf16.gmra.mrb[80].mxu1 %vm488_vm0, %v3252_v32 }
 0x5d0   : > { %v4843_v42 = vpop.eup %4842  ;;  %4848 = vrcp.f32 %v3142_v6 }
 0x5d1   : > { %v3235_v36 = vmul.f32 %v4843_v42, %v6884_v1 }
 0x5d2   : > { %v4845_v40 = vpop.eup %4844 }
 0x5d3   : > { %v3236_v62 = vmul.f32 %v4845_v40, %v3004_v24 }
 0x5d5   : > { %v3253_v50 = vpack.c.bf16 %v3236_v62, %v3235_v36 }
 0x5d7   : > { %4510 = vmatprep.mubr.msk.bf16.mxu1 %vm488_vm0, %v3253_v50 }
 0x5d8   : > { %v4847_v4 = vpop.eup %4846 }
 0x5d9   : > { %v3237_v63 = vmul.f32 %v4847_v4, %v3009_v5 }
 0x5da   : > { %v4849_v46 = vpop.eup %4848 }
 0x5db   : > { %v3238_v29 = vmul.f32 %v4849_v46, %v3012_v53 }
 0x5dd   : > { %v3254_v15 = vpack.c.bf16 %v3238_v29, %v3237_v63 }
 0x5df   : > { %4511 = vmatmul.mubr.msk.bf16.gmra.mrb[84].mxu1 %vm488_vm0, %v3254_v15 }
 0x640   : > { %v4484_v59 = vpop.f32.mrb[56].mxu1 }
 0x641   : > { %v3369_v33 = vadd.f32 %v4484_v59, %v6906_v13  ;;  %v3360_v8 = vpop.f32.mrb[57].mxu1 }
 0x642   : > { %v3361_v26 = vadd.f32 %v6906_v13, %v3360_v8  ;;  %v4485_v37 = vpop.f32.mrb[58].mxu1 }
 0x643   : > { %v4158_v52 = vmul.f32 -1.442695, %v3369_v33  ;;  %v3372_v60 = vadd.f32 %v4485_v37, %v6906_v13  ;;  %v3363_v1 = vpop.f32.mrb[59].mxu1 }
 0x644   : > { %v4156_v10 = vmul.f32 -1.442695, %v3361_v26  ;;  %v3364_v20 = vadd.f32 %v6906_v13, %v3363_v1 }
 0x645   : > { %4850 = vpow2.f32 %v4158_v52  ;;  %v4159_v11 = vmul.f32 -1.442695, %v3372_v60 }
 0x646   : > { %4852 = vpow2.f32 %v4156_v10  ;;  %v4157_v23 = vmul.f32 -1.442695, %v3364_v20 }
 0x647   : > { %4854 = vpow2.f32 %v4159_v11 }
 0x648   : > { %4856 = vpow2.f32 %v4157_v23 }
 0x64f   : > { %v4851_v24 = vpop.eup %4850 }
 0x650   : > { %v4853_v49 = vpop.eup %4852  ;;  %v3585_v45 = vadd.f32 1.0, %v4851_v24  ;;  %v4488_v0 = vpop.f32.mrb[60].mxu1 }
 0x651   : > { %v4855_v25 = vpop.eup %4854  ;;  %v3583_v51 = vadd.f32 1.0, %v4853_v49  ;;  %v6913_v9 = vadd.f32 %v4488_v0, %v6906_v13  ;;  %v3376_v7 = vpop.f32.mrb[61].mxu1 }
 0x652   : > { %v4857_v48 = vpop.eup %4856  ;;  %4858 = vrcp.f32 %v3585_v45  ;;  %v3586_v3 = vadd.f32 1.0, %v4855_v25  ;;  %v3377_v58 = vadd.f32 %v6906_v13, %v3376_v7  ;;  %v4489_v47 = vpop.f32.mrb[62].mxu1 }
 0x653   : > { %4860 = vrcp.f32 %v3583_v51  ;;  %v3584_v41 = vadd.f32 1.0, %v4857_v48  ;;  %v4162_v56 = vmul.f32 -1.442695, %v6913_v9  ;;  %v3388_v38 = vadd.f32 %v4489_v47, %v6906_v13  ;;  %v3379_v17 = vpop.f32.mrb[63].mxu1 }
 0x654   : > { %4862 = vrcp.f32 %v3586_v3  ;;  %v4160_v5 = vmul.f32 -1.442695, %v3377_v58  ;;  %v3380_v39 = vadd.f32 %v6906_v13, %v3379_v17 }
 0x655   : > { %4864 = vrcp.f32 %v3584_v41  ;;  %v4163_v54 = vmul.f32 -1.442695, %v3388_v38 }
 0x656   : > { %4866 = vpow2.f32 %v4162_v56  ;;  %v4161_v44 = vmul.f32 -1.442695, %v3380_v39 }
 0x657   : > { %4868 = vpow2.f32 %v4160_v5 }
 0x658   : > { %4870 = vpow2.f32 %v4163_v54 }
 0x659   : > { %4872 = vpow2.f32 %v4161_v44 }
 0x65c   : > { %v4859_v35 = vpop.eup %4858 }
 0x65d   : > { %v4861_v53 = vpop.eup %4860  ;;  %v3681_v43 = vmul.f32 %v4859_v35, %v3369_v33 }
 0x65e   : > { %v4863_v34 = vpop.eup %4862  ;;  %v3679_v18 = vmul.f32 %v4861_v53, %v3361_v26 }
 0x65f   : > { %v4865_v19 = vpop.eup %4864  ;;  %3713 = vst.msk [vmem:[%s6921_s23 + $0x10] sm:$0xff] %vm460_vm2, %v3681_v43  ;;  %v3682_v27 = vmul.f32 %v4863_v34, %v3372_v60 }
 0x660   : > { %v4867_v12 = vpop.eup %4866  ;;  %3711 = vst.msk [vmem:[%s6921_s23] sm:$0xff] %vm460_vm2, %v3679_v18  ;;  %v3680_v55 = vmul.f32 %v4865_v19, %v3364_v20  ;;  %v4492_v28 = vpop.f32.mrb[64].mxu1 }
 0x661   : > { %v4869_v61 = vpop.eup %4868  ;;  %3714 = vst.msk [vmem:[%s6921_s23 + $0x18] sm:$0xff] %vm460_vm2, %v3682_v27  ;;  %v3589_v21 = vadd.f32 1.0, %v4867_v12  ;;  %v6930_v57 = vadd.f32 %v4492_v28, %v6906_v13  ;;  %v3392_v14 = vpop.f32.mrb[65].mxu1 }
 0x662   : > { %v4871_v2 = vpop.eup %4870  ;;  %3712 = vst.msk [vmem:[%s6921_s23 + $0x8] sm:$0xff] %vm460_vm2, %v3680_v55  ;;  %v3587_v22 = vadd.f32 1.0, %v4869_v61  ;;  %v6935_v31 = vadd.f32 %v6906_v13, %v3392_v14  ;;  %v4493_v16 = vpop.f32.mrb[66].mxu1 }
 0x663   : > { %v4873_v30 = vpop.eup %4872  ;;  %4874 = vrcp.f32 %v3589_v21  ;;  %v3590_v32 = vadd.f32 1.0, %v4871_v2  ;;  %v4166_v6 = vmul.f32 -1.442695, %v6930_v57  ;;  %v3404_v42 = vadd.f32 %v4493_v16, %v6906_v13  ;;  %v3395_v40 = vpop.f32.mrb[67].mxu1 }
 0x664   : > { %4876 = vrcp.f32 %v3587_v22  ;;  %v3588_v36 = vadd.f32 1.0, %v4873_v30  ;;  %v4164_v62 = vmul.f32 -1.442695, %v6935_v31  ;;  %v6941_v50 = vadd.f32 %v6906_v13, %v3395_v40 }
 0x665   : > { %4878 = vrcp.f32 %v3590_v32  ;;  %v4167_v4 = vmul.f32 -1.442695, %v3404_v42 }
 0x666   : > { %4880 = vrcp.f32 %v3588_v36  ;;  %v4165_v46 = vmul.f32 -1.442695, %v6941_v50 }
 0x667   : > { %4882 = vpow2.f32 %v4166_v6 }
 0x668   : > { %4884 = vpow2.f32 %v4164_v62 }
 0x669   : > { %4886 = vpow2.f32 %v4167_v4 }
 0x66a   : > { %4888 = vpow2.f32 %v4165_v46 }
 0x66d   : > { %v4875_v63 = vpop.eup %4874 }
 0x66e   : > { %v4877_v29 = vpop.eup %4876  ;;  %v3685_v15 = vmul.f32 %v4875_v63, %v6913_v9 }
 0x66f   : > { %v4879_v59 = vpop.eup %4878  ;;  %v3683_v33 = vmul.f32 %v4877_v29, %v3377_v58 }
 0x670   : > { %v4881_v8 = vpop.eup %4880  ;;  %3717 = vst.msk [vmem:[%s6921_s23 + $0x30] sm:$0xff] %vm460_vm2, %v3685_v15  ;;  %v3686_v26 = vmul.f32 %v4879_v59, %v3388_v38 }
 0x671   : > { %v4883_v37 = vpop.eup %4882  ;;  %3715 = vst.msk [vmem:[%s6921_s23 + $0x20] sm:$0xff] %vm460_vm2, %v3683_v33  ;;  %v3684_v52 = vmul.f32 %v4881_v8, %v3380_v39 }
 0x672   : > { %v4885_v60 = vpop.eup %4884  ;;  %3718 = vst.msk [vmem:[%s6921_s23 + $0x38] sm:$0xff] %vm460_vm2, %v3686_v26  ;;  %v3593_v1 = vadd.f32 1.0, %v4883_v37  ;;  %v4496_v11 = vpop.f32.mrb[68].mxu1 }
 0x673   : > { %v4887_v10 = vpop.eup %4886  ;;  %3716 = vst.msk [vmem:[%s6921_s23 + $0x28] sm:$0xff] %vm460_vm2, %v3684_v52  ;;  %v3591_v20 = vadd.f32 1.0, %v4885_v60  ;;  %v3417_v49 = vadd.f32 %v4496_v11, %v6906_v13  ;;  %v3408_v45 = vpop.f32.mrb[69].mxu1 }
 0x674   : > { %v4889_v23 = vpop.eup %4888  ;;  %4890 = vrcp.f32 %v3593_v1  ;;  %v3594_v24 = vadd.f32 1.0, %v4887_v10  ;;  %v6955_v25 = vadd.f32 %v6906_v13, %v3408_v45  ;;  %v4497_v51 = vpop.f32.mrb[70].mxu1 }
 0x675   : > { %4892 = vrcp.f32 %v3591_v20  ;;  %v3592_v0 = vadd.f32 1.0, %v4889_v23  ;;  %v4170_v9 = vmul.f32 -1.442695, %v3417_v49  ;;  %v3420_v7 = vadd.f32 %v4497_v51, %v6906_v13  ;;  %v3411_v48 = vpop.f32.mrb[71].mxu1 }
 0x676   : > { %4894 = vrcp.f32 %v3594_v24  ;;  %v4168_v3 = vmul.f32 -1.442695, %v6955_v25  ;;  %v6960_v58 = vadd.f32 %v6906_v13, %v3411_v48 }
 0x677   : > { %4896 = vrcp.f32 %v3592_v0  ;;  %v4171_v47 = vmul.f32 -1.442695, %v3420_v7 }
 0x678   : > { %4898 = vpow2.f32 %v4170_v9  ;;  %v4169_v41 = vmul.f32 -1.442695, %v6960_v58 }
 0x679   : > { %4900 = vpow2.f32 %v4168_v3 }
 0x67a   : > { %4902 = vpow2.f32 %v4171_v47 }
 0x67b   : > { %4904 = vpow2.f32 %v4169_v41 }
 0x67e   : > { %v4891_v56 = vpop.eup %4890 }
 0x67f   : > { %v4893_v38 = vpop.eup %4892  ;;  %v3689_v17 = vmul.f32 %v4891_v56, %v6930_v57 }
 0x680   : > { %v4895_v5 = vpop.eup %4894  ;;  %v3687_v53 = vmul.f32 %v4893_v38, %v6935_v31 }
 0x681   : > { %v4897_v39 = vpop.eup %4896  ;;  %v3690_v54 = vmul.f32 %v4895_v5, %v3404_v42  ;;  %3731 = vrot.lane.b32.xlu1 %v3689_v17, %s5330_s16 }
 0x682   : > { %v4899_v44 = vpop.eup %4898  ;;  %v4500_v34 = vpop.f32.mrb[72].mxu1  ;;  %v3688_v28 = vmul.f32 %v4897_v39, %v6941_v50 }
 0x683   : > { %v4901_v35 = vpop.eup %4900  ;;  %v3597_v43 = vadd.f32 1.0, %v4899_v44  ;;  %3733 = vrot.lane.b32.xlu0 %v3690_v54, %s5330_s16  ;;  %v6968_v27 = vadd.f32 %v4500_v34, %v6906_v13  ;;  %v3424_v12 = vpop.f32.mrb[73].mxu1 }
 0x684   : > { %v4903_v18 = vpop.eup %4902  ;;  %v3595_v19 = vadd.f32 1.0, %v4901_v35  ;;  %v6973_v21 = vadd.f32 %v6906_v13, %v3424_v12  ;;  %v4501_v57 = vpop.f32.mrb[74].mxu1 }
 0x685   : > { %v4905_v55 = vpop.eup %4904  ;;  %4906 = vrcp.f32 %v3597_v43  ;;  %v3598_v61 = vadd.f32 1.0, %v4903_v18  ;;  %3727 = vrot.lane.b32.xlu1 %v3687_v53, %s5330_s16  ;;  %v4174_v2 = vmul.f32 -1.442695, %v6968_v27  ;;  %v3436_v22 = vadd.f32 %v4501_v57, %v6906_v13  ;;  %v3427_v31 = vpop.f32.mrb[75].mxu1 }
 0x686   : > { %4908 = vrcp.f32 %v3595_v19  ;;  %v3596_v14 = vadd.f32 1.0, %v4905_v55  ;;  %v4172_v16 = vmul.f32 -1.442695, %v6973_v21  ;;  %v6980_v30 = vadd.f32 %v6906_v13, %v3427_v31 }
 0x687   : > { %4910 = vrcp.f32 %v3598_v61  ;;  %3729 = vrot.lane.b32.xlu0 %v3688_v28, %s5330_s16  ;;  %v4175_v32 = vmul.f32 -1.442695, %v3436_v22 }
 0x688   : > { %4912 = vrcp.f32 %v3596_v14  ;;  %v4173_v6 = vmul.f32 -1.442695, %v6980_v30 }
 0x689   : > { %4914 = vpow2.f32 %v4174_v2 }
 0x68a   : > { %4916 = vpow2.f32 %v4172_v16 }
 0x68b   : > { %4918 = vpow2.f32 %v4175_v32 }
 0x68c   : > { %4920 = vpow2.f32 %v4173_v6 }
 0x68f   : > { %v4907_v42 = vpop.eup %4906 }
 0x690   : > { %v4909_v40 = vpop.eup %4908  ;;  %v3693_v36 = vmul.f32 %v4907_v42, %v3417_v49 }
 0x691   : > { %v4911_v62 = vpop.eup %4910  ;;  %v3691_v15 = vmul.f32 %v4909_v40, %v6955_v25 }
 0x692   : > { %v4913_v50 = vpop.eup %4912  ;;  %v3694_v4 = vmul.f32 %v4911_v62, %v3420_v7  ;;  %3739 = vrot.lane.b32.xlu1 %v3693_v36, %s5330_s16  ;;  %v4504_v63 = vpop.f32.mrb[76].mxu1 }
 0x693   : > { %v4915_v46 = vpop.eup %4914  ;;  %v6986_v33 = vadd.f32 %v4504_v63, %v6906_v13  ;;  %v3440_v8 = vpop.f32.mrb[77].mxu1  ;;  %v3692_v37 = vmul.f32 %v4913_v50, %v6960_v58 }
 0x694   : > { %v4917_v29 = vpop.eup %4916  ;;  %v3601_v59 = vadd.f32 1.0, %v4915_v46  ;;  %3741 = vrot.lane.b32.xlu0 %v3694_v4, %s5330_s16  ;;  %v6991_v60 = vadd.f32 %v6906_v13, %v3440_v8  ;;  %v4505_v1 = vpop.f32.mrb[78].mxu1 }
 0x695   : > { %v4919_v26 = vpop.eup %4918  ;;  %v3599_v52 = vadd.f32 1.0, %v4917_v29  ;;  %v4178_v11 = vmul.f32 -1.442695, %v6986_v33  ;;  %v3452_v23 = vadd.f32 %v4505_v1, %v6906_v13  ;;  %v3443_v24 = vpop.f32.mrb[79].mxu1 }
 0x696   : > { %v4921_v10 = vpop.eup %4920  ;;  %4922 = vrcp.f32 %v3601_v59  ;;  %v3602_v20 = vadd.f32 1.0, %v4919_v26  ;;  %3735 = vrot.lane.b32.xlu1 %v3691_v15, %s5330_s16  ;;  %v4176_v45 = vmul.f32 -1.442695, %v6991_v60  ;;  %v6998_v0 = vadd.f32 %v6906_v13, %v3443_v24 }
 0x697   : > { %4924 = vrcp.f32 %v3599_v52  ;;  %v3600_v49 = vadd.f32 1.0, %v4921_v10  ;;  %v4179_v25 = vmul.f32 -1.442695, %v3452_v23 }
 0x698   : > { %4926 = vrcp.f32 %v3602_v20  ;;  %3737 = vrot.lane.b32.xlu0 %v3692_v37, %s5330_s16  ;;  %v4177_v51 = vmul.f32 -1.442695, %v6998_v0 }
 0x699   : > { %4928 = vrcp.f32 %v3600_v49 }
 0x69a   : > { %4930 = vpow2.f32 %v4178_v11 }
 0x69b   : > { %4932 = vpow2.f32 %v4176_v45 }
 0x69c   : > { %4934 = vpow2.f32 %v4179_v25 }
 0x69d   : > { %4936 = vpow2.f32 %v4177_v51 }
 0x6a0   : > { %v4923_v9 = vpop.eup %4922 }
 0x6a1   : > { %v4925_v7 = vpop.eup %4924  ;;  %v3697_v48 = vmul.f32 %v4923_v9, %v6968_v27 }
 0x6a2   : > { %v4927_v3 = vpop.eup %4926  ;;  %v4508_v41 = vpop.f32.mrb[80].mxu1  ;;  %v3695_v39 = vmul.f32 %v4925_v7, %v6973_v21 }
 0x6a3   : > { %v4929_v58 = vpop.eup %4928  ;;  %v3698_v47 = vmul.f32 %v4927_v3, %v3436_v22  ;;  %3771 = vrot.lane.b32.xlu1 %v3697_v48, %s5331_s20  ;;  %v7005_v38 = vadd.f32 %v4508_v41, %v6906_v13  ;;  %v3456_v17 = vpop.f32.mrb[81].mxu1 }
 0x6a4   : > { %v4931_v56 = vpop.eup %4930  ;;  %v7009_v44 = vadd.f32 %v6906_v13, %v3456_v17  ;;  %v4509_v35 = vpop.f32.mrb[82].mxu1  ;;  %v3696_v43 = vmul.f32 %v4929_v58, %v6980_v30 }
 0x6a5   : > { %v4933_v5 = vpop.eup %4932  ;;  %v3605_v54 = vadd.f32 1.0, %v4931_v56  ;;  %3773 = vrot.lane.b32.xlu0 %v3698_v47, %s5331_s20  ;;  %v7014_v18 = vadd.f32 %v4509_v35, %v6906_v13  ;;  %v3459_v19 = vpop.f32.mrb[83].mxu1  ;;  %v4182_v55 = vmul.f32 -1.442695, %v7005_v38 }
 0x6a6   : > { %v4935_v53 = vpop.eup %4934  ;;  %v3603_v34 = vadd.f32 1.0, %v4933_v5  ;;  %v7018_v28 = vadd.f32 %v6906_v13, %v3459_v19  ;;  %v4180_v21 = vmul.f32 -1.442695, %v7009_v44 }
 0x6a7   : > { %v4937_v27 = vpop.eup %4936  ;;  %4938 = vrcp.f32 %v3605_v54  ;;  %v3606_v12 = vadd.f32 1.0, %v4935_v53  ;;  %3767 = vrot.lane.b32.xlu1 %v3695_v39, %s5331_s20  ;;  %v4183_v57 = vmul.f32 -1.442695, %v7014_v18 }
 0x6a8   : > { %4940 = vrcp.f32 %v3603_v34  ;;  %v3604_v61 = vadd.f32 1.0, %v4937_v27  ;;  %v4181_v14 = vmul.f32 -1.442695, %v7018_v28 }
 0x6a9   : > { %4942 = vrcp.f32 %v3606_v12  ;;  %3769 = vrot.lane.b32.xlu0 %v3696_v43, %s5331_s20 }
 0x6aa   : > { %4944 = vrcp.f32 %v3604_v61 }
 0x6ab   : > { %4946 = vpow2.f32 %v4182_v55 }
 0x6ac   : > { %4948 = vpow2.f32 %v4180_v21 }
 0x6ad   : > { %4950 = vpow2.f32 %v4183_v57 }
 0x6ae   : > { %4952 = vpow2.f32 %v4181_v14 }
 0x6b1   : > { %v4939_v2 = vpop.eup %4938 }
 0x6b2   : > { %v4941_v22 = vpop.eup %4940  ;;  %v3701_v31 = vmul.f32 %v4939_v2, %v6986_v33  ;;  %v4512_v30 = vpop.f32.mrb[84].mxu1 }
 0x6b3   : > { %v4943_v16 = vpop.eup %4942  ;;  %v7028_v42 = vadd.f32 %v4512_v30, %v6906_v13  ;;  %v3472_v40 = vpop.f32.mrb[85].mxu1  ;;  %v3699_v46 = vmul.f32 %v4941_v22, %v6991_v60 }
 0x6b4   : > { %v4945_v32 = vpop.eup %4944  ;;  %v3702_v6 = vmul.f32 %v4943_v16, %v3452_v23  ;;  %3779 = vrot.lane.b32.xlu1 %v3701_v31, %s5331_s20  ;;  %v3473_v62 = vadd.f32 %v6906_v13, %v3472_v40  ;;  %v4513_v50 = vpop.f32.mrb[86].mxu1 }
 0x6b5   : > { %v4947_v36 = vpop.eup %4946  ;;  %v3484_v29 = vadd.f32 %v4513_v50, %v6906_v13  ;;  %v3475_v15 = vpop.f32.mrb[87].mxu1  ;;  %v3700_v37 = vmul.f32 %v4945_v32, %v6998_v0  ;;  %v4186_v1 = vmul.f32 -1.442695, %v7028_v42 }
 0x6b6   : > { %v4949_v4 = vpop.eup %4948  ;;  %v3609_v63 = vadd.f32 1.0, %v4947_v36  ;;  %3781 = vrot.lane.b32.xlu0 %v3702_v6, %s5331_s20  ;;  %v3476_v8 = vadd.f32 %v6906_v13, %v3475_v15  ;;  %v4184_v10 = vmul.f32 -1.442695, %v3473_v62 }
 0x6b7   : > { %v4951_v59 = vpop.eup %4950  ;;  %v3607_v33 = vadd.f32 1.0, %v4949_v4  ;;  %v4187_v20 = vmul.f32 -1.442695, %v3484_v29 }
 0x6b8   : > { %v4953_v26 = vpop.eup %4952  ;;  %4954 = vrcp.f32 %v3609_v63  ;;  %v3610_v52 = vadd.f32 1.0, %v4951_v59  ;;  %3775 = vrot.lane.b32.xlu1 %v3699_v46, %s5331_s20  ;;  %v4185_v11 = vmul.f32 -1.442695, %v3476_v8 }
 0x6b9   : > { %4956 = vrcp.f32 %v3607_v33  ;;  %v3608_v60 = vadd.f32 1.0, %v4953_v26 }
 0x6ba   : > { %4958 = vrcp.f32 %v3610_v52  ;;  %3777 = vrot.lane.b32.xlu0 %v3700_v37, %s5331_s20 }
 0x6bb   : > { %4960 = vrcp.f32 %v3608_v60 }
 0x6bc   : > { %4962 = vpow2.f32 %v4186_v1 }
 0x6bd   : > { %4964 = vpow2.f32 %v4184_v10 }
 0x6be   : > { %4966 = vpow2.f32 %v4187_v20 }
 0x6bf   : > { %4968 = vpow2.f32 %v4185_v11 }
 0x6c2   : > { %v4955_v13 = vpop.eup %4954 }
 0x6c3   : > { %v4957_v23 = vpop.eup %4956  ;;  %v3705_v24 = vmul.f32 %v4955_v13, %v7005_v38 }
 0x6c4   : > { %v4959_v49 = vpop.eup %4958  ;;  %v3703_v9 = vmul.f32 %v4957_v23, %v7009_v44 }
 0x6c5   : > { %v4961_v45 = vpop.eup %4960  ;;  %v3706_v0 = vmul.f32 %v4959_v49, %v7014_v18  ;;  %3811 = vrot.lane.b32.xlu1 %v3705_v24, %s5332_s13 }
 0x6c6   : > { %v4963_v25 = vpop.eup %4962  ;;  %v3704_v47 = vmul.f32 %v4961_v45, %v7018_v28 }
 0x6c7   : > { %v4965_v51 = vpop.eup %4964  ;;  %v3613_v7 = vadd.f32 1.0, %v4963_v25  ;;  %3813 = vrot.lane.b32.xlu0 %v3706_v0, %s5332_s13 }
 0x6c8   : > { %v4967_v48 = vpop.eup %4966  ;;  %v3611_v3 = vadd.f32 1.0, %v4965_v51 }
 0x6c9   : > { %v4969_v58 = vpop.eup %4968  ;;  %3807 = vrot.lane.b32.xlu1 %v3703_v9, %s5332_s13  ;;  %v3614_v41 = vadd.f32 1.0, %v4967_v48 }
 0x6ca   : > { %4970 = vrcp.f32 %v3611_v3  ;;  %v3612_v56 = vadd.f32 1.0, %v4969_v58 }
 0x6cb   : > { %4972 = vrcp.f32 %v3613_v7  ;;  %3809 = vrot.lane.b32.xlu0 %v3704_v47, %s5332_s13 }
 0x6cc   : > { %4974 = vrcp.f32 %v3612_v56 }
 0x6cd   : > { %4976 = vrcp.f32 %v3614_v41 }
 0x6d4   : > { %v4971_v38 = vpop.eup %4970 }
 0x6d5   : > { %v4973_v17 = vpop.eup %4972  ;;  %v3707_v5 = vmul.f32 %v4971_v38, %v3473_v62 }
 0x6d6   : > { %v4975_v39 = vpop.eup %4974  ;;  %v3709_v35 = vmul.f32 %v4973_v17, %v7028_v42 }
 0x6d7   : > { %v3708_v54 = vmul.f32 %v4975_v39, %v3476_v8  ;;  %3815 = vrot.lane.b32.xlu1 %v3707_v5, %s5332_s13  ;;  %v4977_v44 = vpop.eup %4976 }
 0x6d8   : > { %v3710_v53 = vmul.f32 %v4977_v44, %v3484_v29 }
 0x6d9   : > { %3817 = vrot.lane.b32.xlu0 %v3708_v54, %s5332_s13 }
 0x6db   : > { %3819 = vrot.lane.b32.xlu1 %v3709_v35, %s5332_s13 }
 0x6dd   : > { %3821 = vrot.lane.b32.xlu0 %v3710_v53, %s5332_s13  ;;  %s7197_s13 = sld [smem:[#allocation31_spill]] }
 0x6e3   : > { %s7101_s1 = scalar_lea.hbm %s7197_s13, %s4194_s22 }
 0x6f3   : > { %v3732_v43 = vpop.permute.xlu1 %3731 }
 0x6f4   : > { %3753 = vst.msk [vmem:[%s6921_s23 + $0x10] sm:$0xff] %vm655_vm6, %v3732_v43 }
 0x6f5   : > { %v3734_v34 = vpop.permute.xlu0 %3733 }
 0x6f6   : > { %3754 = vst.msk [vmem:[%s6921_s23 + $0x18] sm:$0xff] %vm655_vm6, %v3734_v34 }
 0x6f7   : > { %v3728_v18 = vpop.permute.xlu1 %3727 }
 0x6f8   : > { %3751 = vst.msk [vmem:[%s6921_s23] sm:$0xff] %vm655_vm6, %v3728_v18 }
 0x6f9   : > { %v3730_v19 = vpop.permute.xlu0 %3729 }
 0x6fa   : > { %3752 = vst.msk [vmem:[%s6921_s23 + $0x8] sm:$0xff] %vm655_vm6, %v3730_v19 }
 0x704   : > { %v3740_v27 = vpop.permute.xlu1 %3739 }
 0x705   : > { %3757 = vst.msk [vmem:[%s6921_s23 + $0x30] sm:$0xff] %vm655_vm6, %v3740_v27 }
 0x706   : > { %v3742_v12 = vpop.permute.xlu0 %3741 }
 0x707   : > { %3758 = vst.msk [vmem:[%s6921_s23 + $0x38] sm:$0xff] %vm655_vm6, %v3742_v12 }
 0x708   : > { %v3736_v55 = vpop.permute.xlu1 %3735 }
 0x709   : > { %3755 = vst.msk [vmem:[%s6921_s23 + $0x20] sm:$0xff] %vm655_vm6, %v3736_v55 }
 0x70a   : > { %v3738_v28 = vpop.permute.xlu0 %3737 }
 0x70b   : > { %3756 = vst.msk [vmem:[%s6921_s23 + $0x28] sm:$0xff] %vm655_vm6, %v3738_v28 }
 0x715   : > { %v3772_v61 = vpop.permute.xlu1 %3771 }
 0x716   : > { %3793 = vst.msk [vmem:[%s6921_s23 + $0x10] sm:$0xff] %vm688_vm7, %v3772_v61 }
 0x717   : > { %v3774_v21 = vpop.permute.xlu0 %3773 }
 0x718   : > { %3794 = vst.msk [vmem:[%s6921_s23 + $0x18] sm:$0xff] %vm688_vm7, %v3774_v21 }
 0x719   : > { %v3768_v57 = vpop.permute.xlu1 %3767 }
 0x71a   : > { %3791 = vst.msk [vmem:[%s6921_s23] sm:$0xff] %vm688_vm7, %v3768_v57 }
 0x71b   : > { %v3770_v14 = vpop.permute.xlu0 %3769 }
 0x71c   : > { %3792 = vst.msk [vmem:[%s6921_s23 + $0x8] sm:$0xff] %vm688_vm7, %v3770_v14 }
 0x726   : > { %v3780_v2 = vpop.permute.xlu1 %3779 }
 0x727   : > { %3797 = vst.msk [vmem:[%s6921_s23 + $0x30] sm:$0xff] %vm688_vm7, %v3780_v2 }
 0x728   : > { %v3782_v22 = vpop.permute.xlu0 %3781 }
 0x729   : > { %3798 = vst.msk [vmem:[%s6921_s23 + $0x38] sm:$0xff] %vm688_vm7, %v3782_v22 }
 0x72a   : > { %v3776_v31 = vpop.permute.xlu1 %3775 }
 0x72b   : > { %3795 = vst.msk [vmem:[%s6921_s23 + $0x20] sm:$0xff] %vm688_vm7, %v3776_v31 }
 0x72c   : > { %v3778_v16 = vpop.permute.xlu0 %3777 }
 0x72d   : > { %3796 = vst.msk [vmem:[%s6921_s23 + $0x28] sm:$0xff] %vm688_vm7, %v3778_v16 }
 0x737   : > { %v3812_v30 = vpop.permute.xlu1 %3811 }
 0x738   : > { %3833 = vst.msk [vmem:[%s6921_s23 + $0x10] sm:$0xff] %vm721_vm8, %v3812_v30 }
 0x739   : > { %v3814_v32 = vpop.permute.xlu0 %3813 }
 0x73a   : > { %3834 = vst.msk [vmem:[%s6921_s23 + $0x18] sm:$0xff] %vm721_vm8, %v3814_v32 }
 0x73b   : > { %v3808_v6 = vpop.permute.xlu1 %3807 }
 0x73c   : > { %3831 = vst.msk [vmem:[%s6921_s23] sm:$0xff] %vm721_vm8, %v3808_v6 }
 0x73d   : > { %v3810_v42 = vpop.permute.xlu0 %3809 }
 0x73e   : > { %3832 = vst.msk [vmem:[%s6921_s23 + $0x8] sm:$0xff] %vm721_vm8, %v3810_v42 }
 0x749   : > { %v3816_v40 = vpop.permute.xlu1 %3815 }
 0x74a   : > { %3835 = vst.msk [vmem:[%s6921_s23 + $0x20] sm:$0xff] %vm721_vm8, %v3816_v40 }
 0x74b   : > { %v3818_v36 = vpop.permute.xlu0 %3817 }
 0x74c   : > { %3836 = vst.msk [vmem:[%s6921_s23 + $0x28] sm:$0xff] %vm721_vm8, %v3818_v36 }
 0x74d   : > { %v3820_v62 = vpop.permute.xlu1 %3819 }
 0x74e   : > { %3837 = vst.msk [vmem:[%s6921_s23 + $0x30] sm:$0xff] %vm721_vm8, %v3820_v62 }
 0x74f   : > { %v3822_v50 = vpop.permute.xlu0 %3821 }
 0x750   : > { %3838 = vst.msk [vmem:[%s6921_s23 + $0x38] sm:$0xff] %vm721_vm8, %v3822_v50 }
 0x751   : > { %5245 = shalt.err (!%p5242_p10)
}
 0x752   : > { %s5246_s25 = scalar_lea.hbm %s7101_s1, 1024  ;;  %s5250_s18 = scalar_lea.hbm %s7197_s13, 2048 }
 0x753   : > { %p5247_p11 = scmp.ne.s32.totalorder %s7101_s1, %s5246_s25  ;;  %p5251_p7 = scmp.lt.u32.totalorder %s7101_s1, %s7197_s13 }
 0x754   : > { %p5252_p6 = scmp.lt.u32.totalorder %s5250_s18, %s5246_s25  ;;  %p5254_p12 = scmp.lt.u32.totalorder %s5246_s25, %s7101_s1 }
 0x755   : > { %p5248_p3 = pnand %p5247_p11, %p7198_p1 }
 0x756   : > { %p5253_p9 = por %p5252_p6, %p5251_p7 }
 0x757   : > { %p5249_p5 = pneg %p5248_p3 }
 0x758   : > { %p5255_p13 = por %p5254_p12, %p5253_p9 }
 0x75a   : > { %p5256_p0 = pnand %p5255_p13, %p5249_p5 }
 0x75c   : > { %5259 = shalt.err (!%p5256_p0)
}
 0x75d   : > { %s5340_s27 = smov 128  }
 0x75e   : > { %4549 = dma.vmem_to_hbm [thread:$0]  (%p7198_p1), %s7105_s21, 1024, %s7101_s1, %s3840_s15, %s5340_s27, %s5340_s27, %s5330_s16  }
 0x75f PF: > { %s3868_s26 = sand.u32 1, %s5302_s30   ;;  %p7199_p2 = scmp.ne.s32.totalorder %s7178_s24, 0 }
 0x760   : > { %p7200_p8 = scmp.ge.s32.totalorder %s5314_s12, 2  ;;  %s3869_s28 = scalar_lea.sflag [#allocation8], %s3868_s26 }
 0x762   : > { %p4581_p4 = pnand %p7200_p8, %p7199_p2 }
 0x764   : > { %5297 = dma.done.wait (!%p4581_p4), %s3869_s28, 1024  }
 0x765   : > { %5299 = vsyncadd (!%p4581_p4), %s3869_s28, 4294966272  ;;  %p26_p10 = scmp.ge.s32.totalorder %s5615_s19, 4   ;;  %s7201_s30 = smov %s5306_s10 }
 0x766   : > { %s7202_s10 = smov %s5310_s11  ;;  %s7203_s11 = smov %s5626_s17 }
 0x767   : > { %s7204_s12 = smov %s5615_s19  ;;  %28 = sbr.rel (!%p26_p10) target bundleno = 12 (0xc), region = 149 }
 0x76e   :  { %3874 = vsyncpa [#allocation7], 1 }
 0x76f   :  { %3876 = vsyncpa [#allocation7 + $0x1], 1 }
 0x770   :  { %3877 = vsyncpa [#allocation10], 1 }
 0x771   :  { %3878 = vsyncpa [#allocation13], 1 }
 0x772   :  { %3879 = vsyncpa [#allocation16], 1 }
 0x773   :  { %3880 = vsyncpa [#allocation19], 1 }
 0x774   :  { %3881 = vsyncpa [#allocation8], 1 }
 0x775   :  { %3883 = vsyncpa [#allocation8 + $0x1], 1 }

</bundles_post_ra>
